<compile_context>
chip_gen: v7x
topology: tpu7x:2x2x1
jax: 0.10.0
libtpu: 0.0.40
codegen_flags: <defaults>
</compile_context>

<pallas_src>
import jax
import jax.numpy as jnp
from jax.experimental import pallas as pl
from jax.experimental.pallas import tpu as pltpu


_PARAM_ORDER = ("w1", "b1", "w2", "b2", "w3", "b3", "w4", "b4",
                "w5", "b5", "w6", "b6", "w7", "b7")
_OUT_PAD = 128   # lane-dense padded width of the final Linear(128,1) weight/bias
_OUT_STORE = 8   # real output array width (column 0 is the model output)


def _default_compute_dtype():
    """bf16 elementwise only on chips with a bf16 VPU (v6e / v7x); f32 elsewhere (v5e...)."""
    try:
        kind = jax.devices()[0].device_kind.lower()
    except Exception:
        return jnp.float32
    if "v6" in kind or "v7" in kind:
        return jnp.bfloat16
    return jnp.float32


def _regression_kernel(
    x_ref,
    w1, b1, w2, b2, w3, b3, w4, b4, w5, b5, w6, b6, w7, b7,
    o_ref,
):
    leaky = lambda h: jnp.maximum(h, 0.01 * h)
    relu = lambda h: jnp.maximum(h, 0.0)

    def dense(h, w_ref, b_ref):
        # bf16 operands on the MXU, f32 accumulation; bias add + activation in the bias
        # dtype (bf16 on v6e/v7x, f32 on v5e); final layer's f32 bias keeps the output f32.
        acc = jnp.dot(h.astype(jnp.bfloat16), w_ref[...],
                      preferred_element_type=jnp.float32)
        return acc.astype(b_ref.dtype) + b_ref[...]

    h = leaky(dense(x_ref[...], w1, b1))   # Linear(in,256) + folded BatchNorm + LeakyReLU
    h = leaky(dense(h, w2, b2))            # Linear(256,512) + LeakyReLU (+ Dropout: id)
    h = relu(dense(h, w3, b3))             # Linear(512,256) + ReLU
    h = relu(dense(h, w4, b4))             # Linear(256,256) (+ Dropout: id) + ReLU
    h = relu(dense(h, w5, b5))             # Linear(256,256) + ReLU
    h = relu(dense(h, w6, b6))             # Linear(256,128) (+ Dropout: id) + ReLU
    out = dense(h, w7, b7)                 # Linear(128,1) padded to 128 lanes, f32

    # Store only the first _OUT_STORE columns (column 0 is the real output).
    o_ref[...] = out[:, :o_ref.shape[1]].astype(o_ref.dtype)


def regression_forward(x, params, *, tm=512, compute_dtype=None):
    """x: (B, input_size) float32; params: dict from prepare_params(). Returns (B, 1)."""
    B, in_size = x.shape
    if compute_dtype is None:
        compute_dtype = _default_compute_dtype()

    # Clamp the tile to the (128-rounded) batch so tiny batches don't over-pad.
    # For large batches the default TM=512 amortizes the ~0.35us per-step pipeline cost.
    tm = min(tm, max(128, pl.cdiv(B, 128) * 128))
    n_tiles = pl.cdiv(B, tm)
    Bp = n_tiles * tm

    x = x.astype(jnp.bfloat16)                       # x is only consumed as a bf16 MXU operand
    if Bp != B:
        x = jnp.pad(x, ((0, Bp - B), (0, 0)))        # pad partial batch tile; sliced off below

    plist = []
    for k in _PARAM_ORDER:
        p = params[k]
        if k in ("b1", "b2", "b3", "b4", "b5", "b6"):
            p = p.astype(compute_dtype)              # bias add / activation dtype
        plist.append(p)

    in_specs = [pl.BlockSpec((tm, in_size), lambda i: (i, 0))]
    # Constant index_map -> weights/biases DMA'd once, VMEM-resident across grid steps.
    in_specs += [pl.BlockSpec(p.shape, lambda i: (0, 0)) for p in plist]
    out_specs = pl.BlockSpec((tm, _OUT_STORE), lambda i: (i, 0))

    flops = 2 * Bp * (in_size * 256 + 256 * 512 + 512 * 256 + 256 * 256
                      + 256 * 256 + 256 * 128 + 128 * _OUT_PAD)
    bytes_accessed = (int(x.size) * x.dtype.itemsize
                      + sum(int(p.size) * p.dtype.itemsize for p in plist)
                      + Bp * _OUT_STORE * 4)

    out = pl.pallas_call(
        _regression_kernel,
        out_shape=jax.ShapeDtypeStruct((Bp, _OUT_STORE), jnp.float32),
        grid=(n_tiles,),
        in_specs=in_specs,
        out_specs=out_specs,
        compiler_params=pltpu.CompilerParams(
            dimension_semantics=("parallel",),        # shards batch across v7x's 2 TCs
            vmem_limit_bytes=48 * 1024 * 1024),       # > default scoped limit, < v7x physical
        cost_estimate=pl.CostEstimate(
            flops=flops, transcendentals=0, bytes_accessed=bytes_accessed),
    )(x, *plist)
    return out[:B, :1]


def init_params(key, input_size):
    """Synthetic parameters with the PyTorch module's shapes.

    nn.Linear stores weight as (out, in); we store the transpose (in, out) so the
    kernel computes x @ W + b. Biases kept 2D (1, out) for TPU-friendly layout.
    """
    dims = [(input_size, 256), (256, 512), (512, 256),
            (256, 256), (256, 256), (256, 128), (128, 1)]
    keys = jax.random.split(key, 2 * len(dims) + 4)
    params = {}
    for i, (din, dout) in enumerate(dims):
        scale = 1.0 / jnp.sqrt(jnp.float32(din))
        params[f"w{i+1}"] = jax.random.uniform(
            keys[2 * i], (din, dout), jnp.float32, -1.0, 1.0) * scale
        params[f"b{i+1}"] = jax.random.uniform(
            keys[2 * i + 1], (1, dout), jnp.float32, -1.0, 1.0) * scale
    # BatchNorm1d(256) affine params + running stats (eval mode)
    params["bn_gamma"] = 1.0 + 0.1 * jax.random.normal(keys[-4], (1, 256), jnp.float32)
    params["bn_beta"] = 0.05 * jax.random.normal(keys[-3], (1, 256), jnp.float32)
    params["bn_mean"] = 0.1 * jax.random.normal(keys[-2], (1, 256), jnp.float32)
    params["bn_var"] = 1.0 + 0.05 * jax.random.uniform(keys[-1], (1, 256), jnp.float32)
    return params


def prepare_params(raw, eps=1e-5):
    """One-time offline prep: fold eval-mode BN into layer 1, cast weights to bf16,
    pad the 1-wide final layer to a 128-lane slab. Biases kept f32 (cast per-call)."""
    s = raw["bn_gamma"] * jax.lax.rsqrt(raw["bn_var"] + eps)          # (1, 256)
    p = {}
    p["w1"] = (raw["w1"] * s).astype(jnp.bfloat16)
    p["b1"] = (raw["b1"] - raw["bn_mean"]) * s + raw["bn_beta"]
    for k in range(2, 7):
        p[f"w{k}"] = raw[f"w{k}"].astype(jnp.bfloat16)
        p[f"b{k}"] = raw[f"b{k}"]
    w7p = jnp.zeros((128, _OUT_PAD), jnp.float32).at[:, :1].set(raw["w7"])
    b7p = jnp.zeros((1, _OUT_PAD), jnp.float32).at[:, :1].set(raw["b7"])
    p["w7"] = w7p.astype(jnp.bfloat16)
    p["b7"] = b7p
    return p


def _reference_prepared(x, p, compute_dtype):
    """Pure-JAX reference using the SAME prepared bf16 params and the same compute path
    as the kernel (tight structural comparison)."""
    leaky = lambda h: jnp.maximum(h, 0.01 * h)
    relu = lambda h: jnp.maximum(h, 0.0)

    def dense(h, w, b, out_dtype):
        acc = jnp.dot(h.astype(jnp.bfloat16), w, preferred_element_type=jnp.float32)
        return acc.astype(out_dtype) + b.astype(out_dtype)

    h = x.astype(jnp.bfloat16)
    h = leaky(dense(h, p["w1"], p["b1"], compute_dtype))
    h = leaky(dense(h, p["w2"], p["b2"], compute_dtype))
    h = relu(dense(h, p["w3"], p["b3"], compute_dtype))
    h = relu(dense(h, p["w4"], p["b4"], compute_dtype))
    h = relu(dense(h, p["w5"], p["b5"], compute_dtype))
    h = relu(dense(h, p["w6"], p["b6"], compute_dtype))
    return dense(h, p["w7"], p["b7"], jnp.float32)[:, :1]


def _reference_f32(x, raw, eps=1e-5):
    """Exact eval-mode module semantics in f32 (loose sanity bound vs bf16 compute)."""
    leaky = lambda h: jnp.where(h > 0, h, 0.01 * h)
    relu = lambda h: jnp.maximum(h, 0.0)
    h = x @ raw["w1"] + raw["b1"]
    h = (h - raw["bn_mean"]) / jnp.sqrt(raw["bn_var"] + eps) * raw["bn_gamma"] + raw["bn_beta"]
    h = leaky(h)
    h = leaky(h @ raw["w2"] + raw["b2"])
    h = relu(h @ raw["w3"] + raw["b3"])
    h = relu(h @ raw["w4"] + raw["b4"])
    h = relu(h @ raw["w5"] + raw["b5"])
    h = relu(h @ raw["w6"] + raw["b6"])
    return h @ raw["w7"] + raw["b7"]


if __name__ == "__main__":
    # Small shapes consistent with the module: input_size=32, output=1.
    INPUT_SIZE = 32
    key = jax.random.PRNGKey(0)
    kx, kp, kx2 = jax.random.split(key, 3)
    raw = init_params(kp, INPUT_SIZE)
    prep = prepare_params(raw)
    cdt = _default_compute_dtype()

    # Case 1: B=200 -> tile clamps to 256, single grid step, partial-tile padding.
    B = 200
    x = jax.random.normal(kx, (B, INPUT_SIZE), jnp.float32)
    out = jax.block_until_ready(regression_forward(x, prep))
    assert out.shape == (B, 1), out.shape

    ref_same = _reference_prepared(x, prep, cdt)
    assert jnp.allclose(out, ref_same, atol=1e-2, rtol=1e-2), \
        float(jnp.max(jnp.abs(out - ref_same)))

    ref_f32 = _reference_f32(x, raw)
    max_err = float(jnp.max(jnp.abs(out - ref_f32)))
    assert max_err < 0.2, max_err

    # Case 2: B=1100 with TM=512 -> 3 grid steps + padding (exercises the pipelined grid).
    B2 = 1100
    x2 = jax.random.normal(kx2, (B2, INPUT_SIZE), jnp.float32)
    out2 = jax.block_until_ready(regression_forward(x2, prep, tm=512))
    assert out2.shape == (B2, 1), out2.shape
    ref2 = _reference_prepared(x2, prep, cdt)
    assert jnp.allclose(out2, ref2, atol=1e-2, rtol=1e-2), \
        float(jnp.max(jnp.abs(out2 - ref2)))

    print("KERNEL_OK")
</pallas_src>

<mosaic_0001>
module attributes {stable_mosaic.version = 11 : i64} {
  func.func @_regression_kernel(%arg0: i32, %arg1: memref<256x32xbf16, #tpu.memory_space<vmem>>, %arg2: memref<32x256xbf16, #tpu.memory_space<vmem>>, %arg3: memref<1x256xf32, #tpu.memory_space<vmem>>, %arg4: memref<256x512xbf16, #tpu.memory_space<vmem>>, %arg5: memref<1x512xf32, #tpu.memory_space<vmem>>, %arg6: memref<512x256xbf16, #tpu.memory_space<vmem>>, %arg7: memref<1x256xf32, #tpu.memory_space<vmem>>, %arg8: memref<256x256xbf16, #tpu.memory_space<vmem>>, %arg9: memref<1x256xf32, #tpu.memory_space<vmem>>, %arg10: memref<256x256xbf16, #tpu.memory_space<vmem>>, %arg11: memref<1x256xf32, #tpu.memory_space<vmem>>, %arg12: memref<256x128xbf16, #tpu.memory_space<vmem>>, %arg13: memref<1x128xf32, #tpu.memory_space<vmem>>, %arg14: memref<128x128xbf16, #tpu.memory_space<vmem>>, %arg15: memref<1x128xf32, #tpu.memory_space<vmem>>, %arg16: memref<256x8xf32, #tpu.memory_space<vmem>>) attributes {dimension_semantics = [#tpu.dimension_semantics<parallel>], iteration_bounds = array<i64: 1>, scalar_prefetch = 0 : i64, scratch_operands = 0 : i64, tpu.core_type = #tpu.core_type<tc>, window_params = [{transform_indices = @transform_0, window_bounds = array<i64: 256, 32>}, {pipeline_mode = #tpu.pipeline_mode<synchronous>, transform_indices = @transform_1, window_bounds = array<i64: 32, 256>}, {pipeline_mode = #tpu.pipeline_mode<synchronous>, transform_indices = @transform_2, window_bounds = array<i64: 1, 256>}, {pipeline_mode = #tpu.pipeline_mode<synchronous>, transform_indices = @transform_3, window_bounds = array<i64: 256, 512>}, {pipeline_mode = #tpu.pipeline_mode<synchronous>, transform_indices = @transform_4, window_bounds = array<i64: 1, 512>}, {pipeline_mode = #tpu.pipeline_mode<synchronous>, transform_indices = @transform_5, window_bounds = array<i64: 512, 256>}, {pipeline_mode = #tpu.pipeline_mode<synchronous>, transform_indices = @transform_6, window_bounds = array<i64: 1, 256>}, {pipeline_mode = #tpu.pipeline_mode<synchronous>, transform_indices = @transform_7, window_bounds = array<i64: 256, 256>}, {pipeline_mode = #tpu.pipeline_mode<synchronous>, transform_indices = @transform_8, window_bounds = array<i64: 1, 256>}, {pipeline_mode = #tpu.pipeline_mode<synchronous>, transform_indices = @transform_9, window_bounds = array<i64: 256, 256>}, {pipeline_mode = #tpu.pipeline_mode<synchronous>, transform_indices = @transform_10, window_bounds = array<i64: 1, 256>}, {pipeline_mode = #tpu.pipeline_mode<synchronous>, transform_indices = @transform_11, window_bounds = array<i64: 256, 128>}, {pipeline_mode = #tpu.pipeline_mode<synchronous>, transform_indices = @transform_12, window_bounds = array<i64: 1, 128>}, {pipeline_mode = #tpu.pipeline_mode<synchronous>, transform_indices = @transform_13, window_bounds = array<i64: 128, 128>}, {pipeline_mode = #tpu.pipeline_mode<synchronous>, transform_indices = @transform_14, window_bounds = array<i64: 1, 128>}, {transform_indices = @transform_15, window_bounds = array<i64: 256, 8>}]} {
    %c0 = arith.constant 0 : index
    %c0_0 = arith.constant 0 : index
    %0 = vector.load %arg1[%c0, %c0_0] : memref<256x32xbf16, #tpu.memory_space<vmem>>, vector<256x32xbf16>
    %c0_1 = arith.constant 0 : index
    %c0_2 = arith.constant 0 : index
    %1 = vector.load %arg2[%c0_1, %c0_2] : memref<32x256xbf16, #tpu.memory_space<vmem>>, vector<32x256xbf16>
    %cst = arith.constant dense<0.000000e+00> : vector<256x256xf32>
    %2 = tpu.matmul %0, %1, %cst {dimension_numbers = #tpu.dot_dimension_numbers<[1], [0], [0], [1], [0, 0, 1, 1], [], []>} : vector<256x32xbf16>, vector<32x256xbf16>, vector<256x256xf32> -> vector<256x256xf32>
    %c0_3 = arith.constant 0 : index
    %c0_4 = arith.constant 0 : index
    %3 = vector.load %arg3[%c0_3, %c0_4] : memref<1x256xf32, #tpu.memory_space<vmem>>, vector<1x256xf32>
    %4 = vector.broadcast %3 : vector<1x256xf32> to vector<256x256xf32>
    %5 = arith.addf %2, %4 : vector<256x256xf32>
    %cst_5 = arith.constant 0.00999999977 : f32
    %6 = vector.broadcast %cst_5 : f32 to vector<256x256xf32>
    %7 = arith.mulf %6, %5 : vector<256x256xf32>
    %8 = arith.maximumf %5, %7 : vector<256x256xf32>
    %9 = arith.truncf %8 : vector<256x256xf32> to vector<256x256xbf16>
    %c0_6 = arith.constant 0 : index
    %c0_7 = arith.constant 0 : index
    %10 = vector.load %arg4[%c0_6, %c0_7] : memref<256x512xbf16, #tpu.memory_space<vmem>>, vector<256x512xbf16>
    %cst_8 = arith.constant dense<0.000000e+00> : vector<256x512xf32>
    %11 = tpu.matmul %9, %10, %cst_8 {dimension_numbers = #tpu.dot_dimension_numbers<[1], [0], [0], [1], [0, 0, 1, 1], [], []>} : vector<256x256xbf16>, vector<256x512xbf16>, vector<256x512xf32> -> vector<256x512xf32>
    %c0_9 = arith.constant 0 : index
    %c0_10 = arith.constant 0 : index
    %12 = vector.load %arg5[%c0_9, %c0_10] : memref<1x512xf32, #tpu.memory_space<vmem>>, vector<1x512xf32>
    %13 = vector.broadcast %12 : vector<1x512xf32> to vector<256x512xf32>
    %14 = arith.addf %11, %13 : vector<256x512xf32>
    %cst_11 = arith.constant 0.00999999977 : f32
    %15 = vector.broadcast %cst_11 : f32 to vector<256x512xf32>
    %16 = arith.mulf %15, %14 : vector<256x512xf32>
    %17 = arith.maximumf %14, %16 : vector<256x512xf32>
    %18 = arith.truncf %17 : vector<256x512xf32> to vector<256x512xbf16>
    %c0_12 = arith.constant 0 : index
    %c0_13 = arith.constant 0 : index
    %19 = vector.load %arg6[%c0_12, %c0_13] : memref<512x256xbf16, #tpu.memory_space<vmem>>, vector<512x256xbf16>
    %cst_14 = arith.constant dense<0.000000e+00> : vector<256x256xf32>
    %20 = tpu.matmul %18, %19, %cst_14 {dimension_numbers = #tpu.dot_dimension_numbers<[1], [0], [0], [1], [0, 0, 1, 1], [], []>} : vector<256x512xbf16>, vector<512x256xbf16>, vector<256x256xf32> -> vector<256x256xf32>
    %c0_15 = arith.constant 0 : index
    %c0_16 = arith.constant 0 : index
    %21 = vector.load %arg7[%c0_15, %c0_16] : memref<1x256xf32, #tpu.memory_space<vmem>>, vector<1x256xf32>
    %22 = vector.broadcast %21 : vector<1x256xf32> to vector<256x256xf32>
    %23 = arith.addf %20, %22 : vector<256x256xf32>
    %cst_17 = arith.constant 0.000000e+00 : f32
    %24 = vector.broadcast %cst_17 : f32 to vector<256x256xf32>
    %25 = arith.maximumf %23, %24 : vector<256x256xf32>
    %26 = arith.truncf %25 : vector<256x256xf32> to vector<256x256xbf16>
    %c0_18 = arith.constant 0 : index
    %c0_19 = arith.constant 0 : index
    %27 = vector.load %arg8[%c0_18, %c0_19] : memref<256x256xbf16, #tpu.memory_space<vmem>>, vector<256x256xbf16>
    %cst_20 = arith.constant dense<0.000000e+00> : vector<256x256xf32>
    %28 = tpu.matmul %26, %27, %cst_20 {dimension_numbers = #tpu.dot_dimension_numbers<[1], [0], [0], [1], [0, 0, 1, 1], [], []>} : vector<256x256xbf16>, vector<256x256xbf16>, vector<256x256xf32> -> vector<256x256xf32>
    %c0_21 = arith.constant 0 : index
    %c0_22 = arith.constant 0 : index
    %29 = vector.load %arg9[%c0_21, %c0_22] : memref<1x256xf32, #tpu.memory_space<vmem>>, vector<1x256xf32>
    %30 = vector.broadcast %29 : vector<1x256xf32> to vector<256x256xf32>
    %31 = arith.addf %28, %30 : vector<256x256xf32>
    %cst_23 = arith.constant 0.000000e+00 : f32
    %32 = vector.broadcast %cst_23 : f32 to vector<256x256xf32>
    %33 = arith.maximumf %31, %32 : vector<256x256xf32>
    %34 = arith.truncf %33 : vector<256x256xf32> to vector<256x256xbf16>
    %c0_24 = arith.constant 0 : index
    %c0_25 = arith.constant 0 : index
    %35 = vector.load %arg10[%c0_24, %c0_25] : memref<256x256xbf16, #tpu.memory_space<vmem>>, vector<256x256xbf16>
    %cst_26 = arith.constant dense<0.000000e+00> : vector<256x256xf32>
    %36 = tpu.matmul %34, %35, %cst_26 {dimension_numbers = #tpu.dot_dimension_numbers<[1], [0], [0], [1], [0, 0, 1, 1], [], []>} : vector<256x256xbf16>, vector<256x256xbf16>, vector<256x256xf32> -> vector<256x256xf32>
    %c0_27 = arith.constant 0 : index
    %c0_28 = arith.constant 0 : index
    %37 = vector.load %arg11[%c0_27, %c0_28] : memref<1x256xf32, #tpu.memory_space<vmem>>, vector<1x256xf32>
    %38 = vector.broadcast %37 : vector<1x256xf32> to vector<256x256xf32>
    %39 = arith.addf %36, %38 : vector<256x256xf32>
    %cst_29 = arith.constant 0.000000e+00 : f32
    %40 = vector.broadcast %cst_29 : f32 to vector<256x256xf32>
    %41 = arith.maximumf %39, %40 : vector<256x256xf32>
    %42 = arith.truncf %41 : vector<256x256xf32> to vector<256x256xbf16>
    %c0_30 = arith.constant 0 : index
    %c0_31 = arith.constant 0 : index
    %43 = vector.load %arg12[%c0_30, %c0_31] : memref<256x128xbf16, #tpu.memory_space<vmem>>, vector<256x128xbf16>
    %cst_32 = arith.constant dense<0.000000e+00> : vector<256x128xf32>
    %44 = tpu.matmul %42, %43, %cst_32 {dimension_numbers = #tpu.dot_dimension_numbers<[1], [0], [0], [1], [0, 0, 1, 1], [], []>} : vector<256x256xbf16>, vector<256x128xbf16>, vector<256x128xf32> -> vector<256x128xf32>
    %c0_33 = arith.constant 0 : index
    %c0_34 = arith.constant 0 : index
    %45 = vector.load %arg13[%c0_33, %c0_34] : memref<1x128xf32, #tpu.memory_space<vmem>>, vector<1x128xf32>
    %46 = vector.broadcast %45 : vector<1x128xf32> to vector<256x128xf32>
    %47 = arith.addf %44, %46 : vector<256x128xf32>
    %cst_35 = arith.constant 0.000000e+00 : f32
    %48 = vector.broadcast %cst_35 : f32 to vector<256x128xf32>
    %49 = arith.maximumf %47, %48 : vector<256x128xf32>
    %50 = arith.truncf %49 : vector<256x128xf32> to vector<256x128xbf16>
    %c0_36 = arith.constant 0 : index
    %c0_37 = arith.constant 0 : index
    %51 = vector.load %arg14[%c0_36, %c0_37] : memref<128x128xbf16, #tpu.memory_space<vmem>>, vector<128x128xbf16>
    %cst_38 = arith.constant dense<0.000000e+00> : vector<256x128xf32>
    %52 = tpu.matmul %50, %51, %cst_38 {dimension_numbers = #tpu.dot_dimension_numbers<[1], [0], [0], [1], [0, 0, 1, 1], [], []>} : vector<256x128xbf16>, vector<128x128xbf16>, vector<256x128xf32> -> vector<256x128xf32>
    %c0_39 = arith.constant 0 : index
    %c0_40 = arith.constant 0 : index
    %53 = vector.load %arg15[%c0_39, %c0_40] : memref<1x128xf32, #tpu.memory_space<vmem>>, vector<1x128xf32>
    %54 = vector.broadcast %53 : vector<1x128xf32> to vector<256x128xf32>
    %55 = arith.addf %52, %54 : vector<256x128xf32>
    %56 = vector.extract_strided_slice %55 {offsets = [0, 0], sizes = [256, 8], strides = [1, 1]} : vector<256x128xf32> to vector<256x8xf32>
    %c0_41 = arith.constant 0 : index
    %c0_42 = arith.constant 0 : index
    %57 = vector.load %arg16[%c0_41, %c0_42] : memref<256x8xf32, #tpu.memory_space<vmem>>, vector<256x8xf32>
    tpu.vector_store %arg16[%c0_41, %c0_42], %56 {strides = array<i32>} : memref<256x8xf32, #tpu.memory_space<vmem>>, vector<256x8xf32>,
    return
  }
  func.func @transform_0(%arg0: i32) -> (i32, i32) {
    %c0_i32 = arith.constant 0 : i32
    %c0_i32_0 = arith.constant 0 : i32
    return %arg0, %c0_i32 : i32, i32
  }
  func.func @transform_1(%arg0: i32) -> (i32, i32) {
    %c0_i32 = arith.constant 0 : i32
    %c0_i32_0 = arith.constant 0 : i32
    %c0_i32_1 = arith.constant 0 : i32
    return %c0_i32, %c0_i32_0 : i32, i32
  }
  func.func @transform_2(%arg0: i32) -> (i32, i32) {
    %c0_i32 = arith.constant 0 : i32
    %c0_i32_0 = arith.constant 0 : i32
    %c0_i32_1 = arith.constant 0 : i32
    return %c0_i32, %c0_i32_0 : i32, i32
  }
  func.func @transform_3(%arg0: i32) -> (i32, i32) {
    %c0_i32 = arith.constant 0 : i32
    %c0_i32_0 = arith.constant 0 : i32
    %c0_i32_1 = arith.constant 0 : i32
    return %c0_i32, %c0_i32_0 : i32, i32
  }
  func.func @transform_4(%arg0: i32) -> (i32, i32) {
    %c0_i32 = arith.constant 0 : i32
    %c0_i32_0 = arith.constant 0 : i32
    %c0_i32_1 = arith.constant 0 : i32
    return %c0_i32, %c0_i32_0 : i32, i32
  }
  func.func @transform_5(%arg0: i32) -> (i32, i32) {
    %c0_i32 = arith.constant 0 : i32
    %c0_i32_0 = arith.constant 0 : i32
    %c0_i32_1 = arith.constant 0 : i32
    return %c0_i32, %c0_i32_0 : i32, i32
  }
  func.func @transform_6(%arg0: i32) -> (i32, i32) {
    %c0_i32 = arith.constant 0 : i32
    %c0_i32_0 = arith.constant 0 : i32
    %c0_i32_1 = arith.constant 0 : i32
    return %c0_i32, %c0_i32_0 : i32, i32
  }
  func.func @transform_7(%arg0: i32) -> (i32, i32) {
    %c0_i32 = arith.constant 0 : i32
    %c0_i32_0 = arith.constant 0 : i32
    %c0_i32_1 = arith.constant 0 : i32
    return %c0_i32, %c0_i32_0 : i32, i32
  }
  func.func @transform_8(%arg0: i32) -> (i32, i32) {
    %c0_i32 = arith.constant 0 : i32
    %c0_i32_0 = arith.constant 0 : i32
    %c0_i32_1 = arith.constant 0 : i32
    return %c0_i32, %c0_i32_0 : i32, i32
  }
  func.func @transform_9(%arg0: i32) -> (i32, i32) {
    %c0_i32 = arith.constant 0 : i32
    %c0_i32_0 = arith.constant 0 : i32
    %c0_i32_1 = arith.constant 0 : i32
    return %c0_i32, %c0_i32_0 : i32, i32
  }
  func.func @transform_10(%arg0: i32) -> (i32, i32) {
    %c0_i32 = arith.constant 0 : i32
    %c0_i32_0 = arith.constant 0 : i32
    %c0_i32_1 = arith.constant 0 : i32
    return %c0_i32, %c0_i32_0 : i32, i32
  }
  func.func @transform_11(%arg0: i32) -> (i32, i32) {
    %c0_i32 = arith.constant 0 : i32
    %c0_i32_0 = arith.constant 0 : i32
    %c0_i32_1 = arith.constant 0 : i32
    return %c0_i32, %c0_i32_0 : i32, i32
  }
  func.func @transform_12(%arg0: i32) -> (i32, i32) {
    %c0_i32 = arith.constant 0 : i32
    %c0_i32_0 = arith.constant 0 : i32
    %c0_i32_1 = arith.constant 0 : i32
    return %c0_i32, %c0_i32_0 : i32, i32
  }
  func.func @transform_13(%arg0: i32) -> (i32, i32) {
    %c0_i32 = arith.constant 0 : i32
    %c0_i32_0 = arith.constant 0 : i32
    %c0_i32_1 = arith.constant 0 : i32
    return %c0_i32, %c0_i32_0 : i32, i32
  }
  func.func @transform_14(%arg0: i32) -> (i32, i32) {
    %c0_i32 = arith.constant 0 : i32
    %c0_i32_0 = arith.constant 0 : i32
    %c0_i32_1 = arith.constant 0 : i32
    return %c0_i32, %c0_i32_0 : i32, i32
  }
  func.func @transform_15(%arg0: i32) -> (i32, i32) {
    %c0_i32 = arith.constant 0 : i32
    %c0_i32_0 = arith.constant 0 : i32
    return %arg0, %c0_i32 : i32, i32
  }
}

</mosaic_0001>

<bundles_post_ra>
// kernel: tpu_custom_call.1
= control target key start
LH: loop header
LB: loop body
LE: loop exit
PB: predicated region body
PF: predicated region fallthrough
CT: control target
= control target key end

     0   :  { %s6434_s0 = inlined_call_operand.vmem [shape: bf16[256,32], index: 0, kind: input, shape index: {}]   ;;  %s6435_s1 = inlined_call_operand.hbm [shape: bf16[32,256], index: 1, kind: input, shape index: {}]   ;;  %s6436_s2 = inlined_call_operand.vmem [shape: f32[1,256], index: 2, kind: input, shape index: {}]   ;;  %s6437_s3 = inlined_call_operand.hbm [shape: bf16[256,512], index: 3, kind: input, shape index: {}]   ;;  %s6438_s4 = inlined_call_operand.vmem [shape: f32[1,512], index: 4, kind: input, shape index: {}]   ;;  %s6439_s5 = inlined_call_operand.hbm [shape: bf16[512,256], index: 5, kind: input, shape index: {}]   ;;  %s6440_s6 = inlined_call_operand.vmem [shape: f32[1,256], index: 6, kind: input, shape index: {}]   ;;  %s6441_s7 = inlined_call_operand.hbm [shape: bf16[256,256], index: 7, kind: input, shape index: {}]   ;;  %s6442_s8 = inlined_call_operand.hbm [shape: f32[1,256], index: 8, kind: input, shape index: {}]   ;;  %s6443_s9 = inlined_call_operand.hbm [shape: bf16[256,256], index: 9, kind: input, shape index: {}]   ;;  %s6444_s10 = inlined_call_operand.hbm [shape: f32[1,256], index: 10, kind: input, shape index: {}]   ;;  %s6445_s11 = inlined_call_operand.vmem [shape: bf16[256,128], index: 11, kind: input, shape index: {}]   ;;  %s6446_s12 = inlined_call_operand.vmem [shape: f32[1,128], index: 12, kind: input, shape index: {}]   ;;  %s6447_s13 = inlined_call_operand.vmem [shape: bf16[128,128], index: 13, kind: input, shape index: {}]   ;;  %s6448_s14 = inlined_call_operand.vmem [shape: f32[1,128], index: 14, kind: input, shape index: {}]   ;;  %s6449_s15 = inlined_call_operand.vmem [shape: f32[256,8], index: 15, kind: output, shape index: {}]  }
   0x1   :  { %6455 = sst [smem:[#allocation21_spill]] %s6449_s15 }
   0x2   :  { %20 = vsyncpa [#allocation3], 0 }
   0x3   :  { %21 = vsyncpa [#allocation5], 0 }
   0x4   :  { %22 = vsyncpa [#allocation8], 0 }
   0x5   :  { %23 = vsyncpa [#allocation11], 0  ;;  %s5359_s18 = smov [#allocation4]   ;;  %s5197_s22 = scalar_lea.hbm %s6437_s3, 8192 }
   0x6   :  { %s45_s19 = sshll.u32 %s5359_s18, 4  ;;  %p5198_p0 = scmp.ne.s32.totalorder %s6437_s3, %s5197_s22  ;;  %s46_s19 = int_to_ptr.vmem [resolvable:$true] %s45_s19 }
   0x7   :  { %p5201_p1 = scmp.lt.u32.totalorder %s5197_s22, %s6437_s3 }
   0x9   :  { %p5203_p2 = pnand %p5201_p1, %p5198_p0 }
   0xb   :  { %5206 = shalt.err (!%p5203_p2)
}
   0xc   :  { %s5207_s27 = scalar_lea.vmem %s46_s19, 8192  ;;  %p5212_p4 = scmp.lt.s32.totalorder %s46_s19, %s46_s19 }
   0xd   :  { %p5208_p3 = scmp.ne.s32.totalorder %s46_s19, %s5207_s27  ;;  %p5213_p5 = scmp.lt.s32.totalorder %s5207_s27, %s5207_s27 }
   0xf   :  { %p5214_p6 = por %p5213_p5, %p5212_p4 }
  0x11   :  { %p5215_p7 = pnand %p5214_p6, %p5208_p3 }
  0x13   :  { %5218 = shalt.err (!%p5215_p7)
}
  0x14   :  { %s5360_s28 = smov 256   ;;  %s5361_s29 = smov 16  }
  0x15   :  { %51 = dma.hbm_to_vmem [thread:$0]  %s6437_s3, 8192, %s46_s19, [#allocation5], %s5360_s28, %s5360_s28, %s5361_s29  }
  0x16   :  { %s5362_s17 = smov [#allocation7]   ;;  %s5363_s20 = smov [#allocation10]  }
  0x17   :  { %s73_s18 = sshll.u32 %s5362_s17, 4  ;;  %s95_s21 = sshll.u32 %s5363_s20, 4  ;;  %s74_s18 = int_to_ptr.vmem [resolvable:$true] %s73_s18  ;;  %s96_s21 = int_to_ptr.vmem [resolvable:$true] %s95_s21 }
  0x18   :  { %s5219_s24 = scalar_lea.hbm %s6441_s7, 4096 }
  0x19   :  { %p5220_p8 = scmp.ne.s32.totalorder %s6441_s7, %s5219_s24  ;;  %p5223_p9 = scmp.lt.u32.totalorder %s5219_s24, %s6441_s7 }
  0x1b   :  { %p5225_p10 = pnand %p5223_p9, %p5220_p8 }
  0x1d   :  { %5228 = shalt.err (!%p5225_p10)
}
  0x1e   :  { %s5229_s3 = scalar_lea.vmem %s74_s18, 4096  ;;  %p5234_p12 = scmp.lt.s32.totalorder %s74_s18, %s74_s18 }
  0x1f   :  { %p5230_p11 = scmp.ne.s32.totalorder %s74_s18, %s5229_s3  ;;  %p5235_p13 = scmp.lt.s32.totalorder %s5229_s3, %s5229_s3 }
  0x21   :  { %p5236_p0 = por %p5235_p13, %p5234_p12 }
  0x23   :  { %p5237_p1 = pnand %p5236_p0, %p5230_p11 }
  0x25   :  { %5240 = shalt.err (!%p5237_p1)
}
  0x26   :  { %s5364_s19 = smov 128   ;;  %s5365_s28 = smov 8  }
  0x27   :  { %79 = dma.hbm_to_vmem [thread:$0]  %s6441_s7, 4096, %s74_s18, [#allocation8], %s5364_s19, %s5364_s19, %s5365_s28  }
  0x28   :  { %s5241_s17 = scalar_lea.hbm %s6443_s9, 4096 }
  0x29   :  { %p5242_p2 = scmp.ne.s32.totalorder %s6443_s9, %s5241_s17  ;;  %p5245_p3 = scmp.lt.u32.totalorder %s5241_s17, %s6443_s9 }
  0x2b   :  { %p5247_p4 = pnand %p5245_p3, %p5242_p2 }
  0x2d   :  { %5250 = shalt.err (!%p5247_p4)
}
  0x2e   :  { %s5251_s25 = scalar_lea.vmem %s96_s21, 4096  ;;  %p5256_p6 = scmp.lt.s32.totalorder %s96_s21, %s96_s21 }
  0x2f   :  { %p5252_p5 = scmp.ne.s32.totalorder %s96_s21, %s5251_s25  ;;  %p5257_p7 = scmp.lt.s32.totalorder %s5251_s25, %s5251_s25 }
  0x31   :  { %p5258_p8 = por %p5257_p7, %p5256_p6 }
  0x33   :  { %p5259_p9 = pnand %p5258_p8, %p5252_p5 }
  0x35   :  { %5262 = shalt.err (!%p5259_p9)
}
  0x36   :  { %101 = dma.hbm_to_vmem [thread:$0]  %s6443_s9, 4096, %s96_s21, [#allocation11], %s5364_s19, %s5364_s19, %s5365_s28  }
  0x37   :  { %s5366_s26 = smov [#allocation2]   ;;  %s5367_s3 = smov [#allocation6]  }
  0x38   :  { %s31_s27 = sshll.u32 %s5366_s26, 4  ;;  %s59_s29 = sshll.u32 %s5367_s3, 4  ;;  %s32_s27 = int_to_ptr.vmem [resolvable:$true] %s31_s27  ;;  %s60_s29 = int_to_ptr.vmem [resolvable:$true] %s59_s29 }
  0x39   :  { %s5263_s16 = scalar_lea.hbm %s6435_s1, 512 }
  0x3a   :  { %p5264_p10 = scmp.ne.s32.totalorder %s6435_s1, %s5263_s16  ;;  %p5267_p11 = scmp.lt.u32.totalorder %s5263_s16, %s6435_s1 }
  0x3c   :  { %p5269_p12 = pnand %p5267_p11, %p5264_p10 }
  0x3e   :  { %5272 = shalt.err (!%p5269_p12)
}
  0x3f   :  { %s5273_s9 = scalar_lea.vmem %s32_s27, 512  ;;  %p5278_p0 = scmp.lt.s32.totalorder %s32_s27, %s32_s27 }
  0x40   :  { %p5274_p13 = scmp.ne.s32.totalorder %s32_s27, %s5273_s9  ;;  %p5279_p1 = scmp.lt.s32.totalorder %s5273_s9, %s5273_s9 }
  0x42   :  { %p5280_p2 = por %p5279_p1, %p5278_p0 }
  0x44   :  { %p5281_p3 = pnand %p5280_p2, %p5274_p13 }
  0x46   :  { %5284 = shalt.err (!%p5281_p3)
}
  0x47   :  { %37 = dma.hbm_to_vmem [thread:$0]  %s6435_s1, 512, %s32_s27, [#allocation3], %s5364_s19, %s5364_s19, %s5365_s28  }
  0x48   :  { %s5285_s18 = scalar_lea.hbm %s6439_s5, 8192 }
  0x49   :  { %p5286_p4 = scmp.ne.s32.totalorder %s6439_s5, %s5285_s18  ;;  %p5289_p5 = scmp.lt.u32.totalorder %s5285_s18, %s6439_s5 }
  0x4b   :  { %p5291_p6 = pnand %p5289_p5, %p5286_p4 }
  0x4d   :  { %5294 = shalt.err (!%p5291_p6)
}
  0x4e   :  { %s5295_s16 = scalar_lea.vmem %s60_s29, 8192  ;;  %p5300_p8 = scmp.lt.s32.totalorder %s60_s29, %s60_s29 }
  0x4f   :  { %p5296_p7 = scmp.ne.s32.totalorder %s60_s29, %s5295_s16  ;;  %p5301_p9 = scmp.lt.s32.totalorder %s5295_s16, %s5295_s16 }
  0x51   :  { %p5302_p10 = por %p5301_p9, %p5300_p8 }
  0x53   :  { %p5303_p11 = pnand %p5302_p10, %p5296_p7 }
  0x55   :  { %5306 = shalt.err (!%p5303_p11)
}
  0x56   :  { %65 = dma.hbm_to_vmem [thread:$0]  %s6439_s5, 8192, %s60_s29, [#allocation5], %s5364_s19, %s5364_s19, %s5365_s28  }
  0x57   :  { %s5368_s17 = smov [#allocation9]   ;;  %s5369_s22 = smov [#allocation12]  }
  0x58   :  { %s86_s20 = sshll.u32 %s5368_s17, 4  ;;  %s108_s23 = sshll.u32 %s5369_s22, 4  ;;  %s87_s20 = int_to_ptr.vmem [resolvable:$true] %s86_s20  ;;  %s109_s23 = int_to_ptr.vmem [resolvable:$true] %s108_s23 }
  0x59   :  { %s5307_s24 = scalar_lea.hbm %s6442_s8, 32 }
  0x5a   :  { %p5308_p12 = scmp.ne.s32.totalorder %s6442_s8, %s5307_s24  ;;  %p5311_p13 = scmp.lt.u32.totalorder %s5307_s24, %s6442_s8 }
  0x5c   :  { %p5313_p0 = pnand %p5311_p13, %p5308_p12 }
  0x5e   :  { %5316 = shalt.err (!%p5313_p0)
}
  0x5f   :  { %s5317_s5 = scalar_lea.vmem %s87_s20, 32  ;;  %p5322_p2 = scmp.lt.s32.totalorder %s87_s20, %s87_s20 }
  0x60   :  { %p5318_p1 = scmp.ne.s32.totalorder %s87_s20, %s5317_s5  ;;  %p5323_p3 = scmp.lt.s32.totalorder %s5317_s5, %s5317_s5 }
  0x62   :  { %p5324_p4 = por %p5323_p3, %p5322_p2 }
  0x64   :  { %p5325_p5 = pnand %p5324_p4, %p5318_p1 }
  0x66   :  { %5328 = shalt.err (!%p5325_p5)
}
  0x67   :  { %89 = dma.hbm_to_vmem [thread:$0]  %s6442_s8, 32, %s87_s20, [#allocation8]  }
  0x68   :  { %s5329_s30 = scalar_lea.hbm %s6444_s10, 32 }
  0x69   :  { %p5330_p6 = scmp.ne.s32.totalorder %s6444_s10, %s5329_s30  ;;  %p5333_p7 = scmp.lt.u32.totalorder %s5329_s30, %s6444_s10 }
  0x6b   :  { %p5335_p8 = pnand %p5333_p7, %p5330_p6 }
  0x6d   :  { %5338 = shalt.err (!%p5335_p8)
}
  0x6e   :  { %s5339_s17 = scalar_lea.vmem %s109_s23, 32  ;;  %p5344_p10 = scmp.lt.s32.totalorder %s109_s23, %s109_s23 }
  0x6f   :  { %p5340_p9 = scmp.ne.s32.totalorder %s109_s23, %s5339_s17  ;;  %p5345_p11 = scmp.lt.s32.totalorder %s5339_s17, %s5339_s17 }
  0x71   :  { %p5346_p12 = por %p5345_p11, %p5344_p10 }
  0x73   :  { %p5347_p13 = pnand %p5346_p12, %p5340_p9 }
  0x75   :  { %5350 = shalt.err (!%p5347_p13)
}
  0x76   :  { %111 = dma.hbm_to_vmem [thread:$0]  %s6444_s10, 32, %s109_s23, [#allocation11]  }
  0x77   :  { %5351 = dma.done.wait [#allocation3], 512  }
  0x78   :  { %5352 = vsyncadd [#allocation3], 4294966784 }
  0x79   :  { %5353 = dma.done.wait [#allocation5], 16384  }
  0x7a   :  { %5354 = vsyncadd [#allocation5], 4294950912 }
  0x7b   :  { %5355 = dma.done.wait [#allocation8], 4128  }
  0x7c   :  { %5356 = vsyncadd [#allocation8], 4294963168 }
  0x7d   :  { %5357 = dma.done.wait [#allocation11], 4128  }
  0x7e   :  { %5358 = vsyncadd [#allocation11], 4294963168  ;;  %v5370_v0 = vmov 0   ;;  %v4863_v1 = vld [vmem:[#allocation2 + $0x4] ss:$8 sps:$4 sm:$0xff]   ;;  %vm290_vm0 = vcmask 261120  }
  0x7f   :  { %371 = vmatprep.mubr.bf16.mxu0 %v5370_v0  ;;  %v4865_v2 = vld [vmem:[#allocation2] ss:$8 sps:$4 sm:$0xff]   ;;  %339 = vmatprep.subr.bf16.mxu0 %v4863_v1  ;;  %v4866_v3 = vld [vmem:[#allocation2 + $0x14] ss:$8 sps:$4 sm:$0xff]   ;;  %v4868_v4 = vld [vmem:[#allocation2 + $0x10] ss:$8 sps:$4 sm:$0xff]  }
  0x80   :  { %340 = vmatpush1.bf16.msra.mxu0 %v4865_v2  ;;  %v4869_v5 = vld [vmem:[%s6434_s0] sm:$0xff]   ;;  %v4870_v6 = vld [vmem:[%s6434_s0 + $0x8] sm:$0xff]   ;;  %v4871_v8 = vld [vmem:[%s6434_s0 + $0x10] sm:$0xff]   ;;  %vm4244_vm1 = vcmask 64512  }
  0x81   :  { %341 = vmatprep.subr.bf16.mxu0 %v4866_v3  ;;  %v4885_v7 = vld [vmem:[#allocation4 + $0x4] ss:$16 sps:$4 sm:$0xff]   ;;  %v4887_v9 = vld [vmem:[#allocation4 + $0x8] ss:$16 sps:$4 sm:$0xff]   ;;  %v4889_v10 = vld [vmem:[#allocation4 + $0xc] ss:$16 sps:$4 sm:$0xff]  }
  0x82   :  { %1098 = vmatprep.subr.bf16.mxu1 %v4885_v7  ;;  %v4890_v11 = vld [vmem:[#allocation4] ss:$16 sps:$4 sm:$0xff]   ;;  %v4891_v12 = vld [vmem:[#allocation4 + $0x24] ss:$16 sps:$4 sm:$0xff]   ;;  %v4893_v13 = vld [vmem:[#allocation4 + $0x28] ss:$16 sps:$4 sm:$0xff]  }
  0x83   :  { %1099 = vmatpush1.bf16.msra.mxu1 %v4890_v11  ;;  %v4895_v14 = vld [vmem:[#allocation4 + $0x2c] ss:$16 sps:$4 sm:$0xff]   ;;  %v4896_v15 = vld [vmem:[#allocation4 + $0x20] ss:$16 sps:$4 sm:$0xff]   ;;  %v4897_v16 = vld [vmem:[#allocation4 + $0x44] ss:$16 sps:$4 sm:$0xff]  }
  0x84   :  { %342 = vmatpush1.bf16.msra.mxu0 %v4868_v4  ;;  %1100 = vmatprep.subr.bf16.mxu1 %v4891_v12  ;;  %v4901_v17 = vld [vmem:[#allocation4 + $0x4c] ss:$16 sps:$4 sm:$0xff]   ;;  %v4902_v18 = vld [vmem:[#allocation4 + $0x40] ss:$16 sps:$4 sm:$0xff]   ;;  %v4899_v19 = vld [vmem:[#allocation4 + $0x48] ss:$16 sps:$4 sm:$0xff]  }
  0x85   :  { %1291 = vmatprep.subr.bf16.mxu0 %v4889_v10  ;;  %v4903_v20 = vld [vmem:[#allocation4 + $0x64] ss:$16 sps:$4 sm:$0xff]   ;;  %v4907_v21 = vld [vmem:[#allocation4 + $0x6c] ss:$16 sps:$4 sm:$0xff]   ;;  %v4905_v23 = vld [vmem:[#allocation4 + $0x68] ss:$16 sps:$4 sm:$0xff]  }
  0x86   :  { %v4872_v22 = vld [vmem:[%s6434_s0 + $0x18] sm:$0xff]   ;;  %v4908_v24 = vld [vmem:[#allocation4 + $0x60] ss:$16 sps:$4 sm:$0xff]   ;;  %v4909_v25 = vld [vmem:[#allocation4 + $0x84] ss:$16 sps:$4 sm:$0xff]  }
  0x87   :  { %4305 = vmatmul.mubr.msk.bf16.vlgmr.msra.gmra.mrb[0].mxu0 %vm290_vm0, %v4869_v5  ;;  %1101 = vmatpush1.bf16.msra.mxu1 %v4896_v15  ;;  %v4913_v26 = vld [vmem:[#allocation4 + $0x8c] ss:$16 sps:$4 sm:$0xff]   ;;  %v4914_v27 = vld [vmem:[#allocation4 + $0x80] ss:$16 sps:$4 sm:$0xff]   ;;  %v4911_v28 = vld [vmem:[#allocation4 + $0x88] ss:$16 sps:$4 sm:$0xff]  }
  0x88   :  { %381 = vmatprep.mubr.bf16.mxu0 %v5370_v0  ;;  %1292 = vmatpush1.bf16.msra.mxu0 %v4887_v9  ;;  %v4915_v29 = vld [vmem:[#allocation4 + $0xa4] ss:$16 sps:$4 sm:$0xff]   ;;  %v4919_v30 = vld [vmem:[#allocation4 + $0xac] ss:$16 sps:$4 sm:$0xff]   ;;  %v4917_v32 = vld [vmem:[#allocation4 + $0xa8] ss:$16 sps:$4 sm:$0xff]  }
  0x89   :  { %1293 = vmatprep.subr.bf16.mxu0 %v4895_v14  ;;  %1102 = vmatprep.subr.bf16.mxu1 %v4897_v16  ;;  %v4873_v31 = vld [vmem:[%s6434_s0 + $0x20] sm:$0xff]   ;;  %v4925_v35 = vld [vmem:[#allocation4 + $0xcc] ss:$16 sps:$4 sm:$0xff]   ;;  %v4923_v37 = vld [vmem:[#allocation4 + $0xc8] ss:$16 sps:$4 sm:$0xff]  }
  0x8a   :  { %v4920_v33 = vld [vmem:[#allocation4 + $0xa0] ss:$16 sps:$4 sm:$0xff]   ;;  %v4921_v34 = vld [vmem:[#allocation4 + $0xc4] ss:$16 sps:$4 sm:$0xff]   ;;  %v4931_v39 = vld [vmem:[#allocation4 + $0xec] ss:$16 sps:$4 sm:$0xff]  }
  0x8b   :  { %1103 = vmatpush1.bf16.msra.mxu1 %v4902_v18  ;;  %v4926_v36 = vld [vmem:[#allocation4 + $0xc0] ss:$16 sps:$4 sm:$0xff]   ;;  %v4927_v38 = vld [vmem:[#allocation4 + $0xe4] ss:$16 sps:$4 sm:$0xff]   ;;  %v4874_v40 = vld [vmem:[%s6434_s0 + $0x28] sm:$0xff]  }
  0x8c   :  { %1294 = vmatpush1.bf16.msra.mxu0 %v4893_v13  ;;  %1104 = vmatprep.subr.bf16.mxu1 %v4903_v20  ;;  %v4929_v41 = vld [vmem:[#allocation4 + $0xe8] ss:$16 sps:$4 sm:$0xff]   ;;  %v4932_v42 = vld [vmem:[#allocation4 + $0xe0] ss:$16 sps:$4 sm:$0xff]   ;;  %v4933_v43 = vld [vmem:[#allocation4 + $0x104] ss:$16 sps:$4 sm:$0xff]  }
  0x8d   :  { %1295 = vmatprep.subr.bf16.mxu0 %v4901_v17  ;;  %v4937_v44 = vld [vmem:[#allocation4 + $0x10c] ss:$16 sps:$4 sm:$0xff]   ;;  %v4938_v45 = vld [vmem:[#allocation4 + $0x100] ss:$16 sps:$4 sm:$0xff]   ;;  %v4935_v47 = vld [vmem:[#allocation4 + $0x108] ss:$16 sps:$4 sm:$0xff]  }
  0x8e   :  { %v4875_v46 = vld [vmem:[%s6434_s0 + $0x30] sm:$0xff]   ;;  %v4943_v49 = vld [vmem:[#allocation4 + $0x12c] ss:$16 sps:$4 sm:$0xff]   ;;  %v4941_v51 = vld [vmem:[#allocation4 + $0x128] ss:$16 sps:$4 sm:$0xff]  }
  0x8f   :  { %4306 = vmatmul.mubr.msk.bf16.gmra.mrb[4].mxu0 %vm290_vm0, %v4870_v6  ;;  %1105 = vmatpush1.bf16.msra.mxu1 %v4908_v24  ;;  %v4939_v48 = vld [vmem:[#allocation4 + $0x124] ss:$16 sps:$4 sm:$0xff]   ;;  %v4944_v50 = vld [vmem:[#allocation4 + $0x120] ss:$16 sps:$4 sm:$0xff]   ;;  %v4949_v53 = vld [vmem:[#allocation4 + $0x14c] ss:$16 sps:$4 sm:$0xff]  }
  0x90   :  { %391 = vmatprep.mubr.bf16.mxu0 %v5370_v0  ;;  %1296 = vmatpush1.bf16.msra.mxu0 %v4899_v19  ;;  %v4945_v52 = vld [vmem:[#allocation4 + $0x144] ss:$16 sps:$4 sm:$0xff]   ;;  %v4950_v54 = vld [vmem:[#allocation4 + $0x140] ss:$16 sps:$4 sm:$0xff]   ;;  %v4947_v55 = vld [vmem:[#allocation4 + $0x148] ss:$16 sps:$4 sm:$0xff]  }
  0x91   :  { %1297 = vmatprep.subr.bf16.mxu0 %v4907_v21  ;;  %1106 = vmatprep.subr.bf16.mxu1 %v4909_v25  ;;  %v4951_v56 = vld [vmem:[#allocation4 + $0x164] ss:$16 sps:$4 sm:$0xff]   ;;  %v4955_v57 = vld [vmem:[#allocation4 + $0x16c] ss:$16 sps:$4 sm:$0xff]   ;;  %v4956_v59 = vld [vmem:[#allocation4 + $0x160] ss:$16 sps:$4 sm:$0xff]  }
  0x92   :  { %v4876_v58 = vld [vmem:[%s6434_s0 + $0x38] sm:$0xff]   ;;  %v4957_v61 = vld [vmem:[#allocation4 + $0x184] ss:$16 sps:$4 sm:$0xff]   ;;  %v4962_v63 = vld [vmem:[#allocation4 + $0x180] ss:$16 sps:$4 sm:$0xff]  }
  0x93   :  { %1107 = vmatpush1.bf16.msra.mxu1 %v4914_v27  ;;  %v4953_v60 = vld [vmem:[#allocation4 + $0x168] ss:$16 sps:$4 sm:$0xff]   ;;  %v4961_v62 = vld [vmem:[#allocation4 + $0x18c] ss:$16 sps:$4 sm:$0xff]   ;;  %v4877_v2 = vld [vmem:[%s6434_s0 + $0x40] sm:$0xff]  }
  0x94   :  { %1298 = vmatpush1.bf16.msra.mxu0 %v4905_v23  ;;  %1108 = vmatprep.subr.bf16.mxu1 %v4915_v29  ;;  %v4959_v1 = vld [vmem:[#allocation4 + $0x188] ss:$16 sps:$4 sm:$0xff]   ;;  %v4879_v4 = vld [vmem:[%s6434_s0 + $0x50] sm:$0xff]   ;;  %v4967_v7 = vld [vmem:[#allocation4 + $0x1ac] ss:$16 sps:$4 sm:$0xff]   ;;  %v180_v23 = vlaneseq }
  0x95   :  { %1299 = vmatprep.subr.bf16.mxu0 %v4913_v26  ;;  %v4878_v3 = vld [vmem:[%s6434_s0 + $0x48] sm:$0xff]   ;;  %v4880_v5 = vld [vmem:[%s6434_s0 + $0x58] sm:$0xff]   ;;  %v4963_v6 = vld [vmem:[#allocation4 + $0x1a4] ss:$16 sps:$4 sm:$0xff]  }
  0x96   :  { %v4968_v9 = vld [vmem:[#allocation4 + $0x1a0] ss:$16 sps:$4 sm:$0xff]   ;;  %v4969_v10 = vld [vmem:[#allocation4 + $0x1c4] ss:$16 sps:$4 sm:$0xff]   ;;  %v4973_v11 = vld [vmem:[#allocation4 + $0x1cc] ss:$16 sps:$4 sm:$0xff]  }
  0x97   :  { %4307 = vmatmul.mubr.msk.bf16.gmra.mrb[8].mxu0 %vm290_vm0, %v4871_v8  ;;  %1109 = vmatpush1.bf16.msra.mxu1 %v4920_v33  ;;  %v4965_v8 = vld [vmem:[#allocation4 + $0x1a8] ss:$16 sps:$4 sm:$0xff]   ;;  %v4974_v13 = vld [vmem:[#allocation4 + $0x1c0] ss:$16 sps:$4 sm:$0xff]   ;;  %v4975_v15 = vld [vmem:[#allocation4 + $0x1e4] ss:$16 sps:$4 sm:$0xff]  }
  0x98   :  { %401 = vmatprep.mubr.bf16.mxu0 %v5370_v0  ;;  %1300 = vmatpush1.bf16.msra.mxu0 %v4911_v28  ;;  %v4971_v12 = vld [vmem:[#allocation4 + $0x1c8] ss:$16 sps:$4 sm:$0xff]   ;;  %v4881_v14 = vld [vmem:[%s6434_s0 + $0x60] sm:$0xff]   ;;  %v4979_v16 = vld [vmem:[#allocation4 + $0x1ec] ss:$16 sps:$4 sm:$0xff]   ;;  %v5627_v24 = vshrl.u32 %v180_v23, 7 }
  0x99   :  { %1301 = vmatprep.subr.bf16.mxu0 %v4919_v30  ;;  %1110 = vmatprep.subr.bf16.mxu1 %v4921_v34  ;;  %v4977_v17 = vld [vmem:[#allocation4 + $0x1e8] ss:$16 sps:$4 sm:$0xff]   ;;  %v4980_v18 = vld [vmem:[#allocation4 + $0x1e0] ss:$16 sps:$4 sm:$0xff]   ;;  %v4995_v23 = vld [vmem:[#allocation6 + $0x44] ss:$8 sps:$4 sm:$0xff]  }
  0x9a   :  { %v4882_v19 = vld [vmem:[%s6434_s0 + $0x68] sm:$0xff]   ;;  %v4883_v20 = vld [vmem:[%s6434_s0 + $0x70] sm:$0xff]   ;;  %v4884_v21 = vld [vmem:[%s6434_s0 + $0x78] sm:$0xff]   ;;  %v5630_v25 = vsub.s32 0, %v5627_v24 }
  0x9b   :  { %1111 = vmatpush1.bf16.msra.mxu1 %v4926_v36  ;;  %v178_v26 = vld [vmem:[%s6436_s2] sm:$0x3]  ;;  %s6464_s2 = sld [smem:[#allocation21_spill]] }
  0x9c   :  { %1302 = vmatpush1.bf16.msra.mxu0 %v4917_v32  ;;  %1112 = vmatprep.subr.bf16.mxu1 %v4927_v38  ;;  %6456 = vst [vmem:[#allocation17_spill] sm:$0xff] %v5630_v25  ;;  %v5639_v27 = vrot.slane %v178_v26, %v5630_v25 }
  0x9d   :  { %1303 = vmatprep.subr.bf16.mxu0 %v4925_v35 }
  0x9f   :  { %4308 = vmatmul.mubr.msk.bf16.gmra.mrb[12].mxu0 %vm290_vm0, %v4872_v22  ;;  %1113 = vmatpush1.bf16.msra.mxu1 %v4932_v42  ;;  %v4983_v22 = vld [vmem:[#allocation6 + $0x4] ss:$8 sps:$4 sm:$0xff]  }
  0xa0   :  { %411 = vmatprep.mubr.bf16.mxu0 %v5370_v0  ;;  %1304 = vmatpush1.bf16.msra.mxu0 %v4923_v37 }
  0xa1   :  { %1305 = vmatprep.subr.bf16.mxu0 %v4931_v39  ;;  %1114 = vmatprep.subr.bf16.mxu1 %v4933_v43 }
  0xa3   :  { %1115 = vmatpush1.bf16.msra.mxu1 %v4938_v45 }
  0xa4   :  { %1306 = vmatpush1.bf16.msra.mxu0 %v4929_v41  ;;  %1116 = vmatprep.subr.bf16.mxu1 %v4939_v48 }
  0xa5   :  { %1307 = vmatprep.subr.bf16.mxu0 %v4937_v44 }
  0xa7   :  { %4309 = vmatmul.mubr.msk.bf16.gmra.mrb[16].mxu0 %vm290_vm0, %v4873_v31  ;;  %1117 = vmatpush1.bf16.msra.mxu1 %v4944_v50 }
  0xa8   :  { %421 = vmatprep.mubr.bf16.mxu0 %v5370_v0  ;;  %1308 = vmatpush1.bf16.msra.mxu0 %v4935_v47 }
  0xa9   :  { %1309 = vmatprep.subr.bf16.mxu0 %v4943_v49  ;;  %1118 = vmatprep.subr.bf16.mxu1 %v4945_v52  ;;  %v4981_v52 = vld [vmem:[#allocation6] ss:$8 sps:$4 sm:$0xff]  }
  0xab   :  { %1119 = vmatpush1.bf16.msra.mxu1 %v4950_v54 }
  0xac   :  { %1310 = vmatpush1.bf16.msra.mxu0 %v4941_v51  ;;  %1120 = vmatprep.subr.bf16.mxu1 %v4951_v56  ;;  %v4986_v56 = vld [vmem:[#allocation6 + $0x14] ss:$8 sps:$4 sm:$0xff]  }
  0xad   :  { %1311 = vmatprep.subr.bf16.mxu0 %v4949_v53 }
  0xaf   :  { %4310 = vmatmul.mubr.msk.bf16.gmra.mrb[20].mxu0 %vm290_vm0, %v4874_v40  ;;  %1121 = vmatpush1.bf16.msra.mxu1 %v4956_v59 }
  0xb0   :  { %431 = vmatprep.mubr.bf16.mxu0 %v5370_v0  ;;  %1312 = vmatpush1.bf16.msra.mxu0 %v4947_v55 }
  0xb1   :  { %1313 = vmatprep.subr.bf16.mxu0 %v4955_v57  ;;  %1122 = vmatprep.subr.bf16.mxu1 %v4957_v61  ;;  %v4984_v61 = vld [vmem:[#allocation6 + $0x10] ss:$8 sps:$4 sm:$0xff]  }
  0xb3   :  { %1123 = vmatpush1.bf16.msra.mxu1 %v4962_v63 }
  0xb4   :  { %1314 = vmatpush1.bf16.msra.mxu0 %v4953_v60  ;;  %1124 = vmatprep.subr.bf16.mxu1 %v4963_v6 }
  0xb5   :  { %1315 = vmatprep.subr.bf16.mxu0 %v4961_v62 }
  0xb7   :  { %4311 = vmatmul.mubr.msk.bf16.gmra.mrb[24].mxu0 %vm290_vm0, %v4875_v46  ;;  %1125 = vmatpush1.bf16.msra.mxu1 %v4968_v9 }
  0xb8   :  { %441 = vmatprep.mubr.bf16.mxu0 %v5370_v0  ;;  %1316 = vmatpush1.bf16.msra.mxu0 %v4959_v1  ;;  %v4989_v1 = vld [vmem:[#allocation6 + $0x24] ss:$8 sps:$4 sm:$0xff]  }
  0xb9   :  { %1317 = vmatprep.subr.bf16.mxu0 %v4967_v7  ;;  %1126 = vmatprep.subr.bf16.mxu1 %v4969_v10 }
  0xbb   :  { %1127 = vmatpush1.bf16.msra.mxu1 %v4974_v13 }
  0xbc   :  { %1318 = vmatpush1.bf16.msra.mxu0 %v4965_v8  ;;  %1128 = vmatprep.subr.bf16.mxu1 %v4975_v15  ;;  %v4992_v15 = vld [vmem:[#allocation6 + $0x34] ss:$8 sps:$4 sm:$0xff]  }
  0xbd   :  { %1319 = vmatprep.subr.bf16.mxu0 %v4973_v11  ;;  %v4987_v11 = vld [vmem:[#allocation6 + $0x20] ss:$8 sps:$4 sm:$0xff]  }
  0xbf   :  { %4312 = vmatmul.mubr.msk.bf16.gmra.mrb[28].mxu0 %vm290_vm0, %v4876_v58  ;;  %1129 = vmatpush1.bf16.msra.mxu1 %v4980_v18 }
  0xc0   :  { %451 = vmatprep.mubr.bf16.mxu0 %v5370_v0  ;;  %1320 = vmatpush1.bf16.msra.mxu0 %v4971_v12 }
  0xc1   :  { %1321 = vmatprep.subr.bf16.mxu0 %v4979_v16  ;;  %2200 = vmatprep.subr.bf16.mxu1 %v4983_v22 }
  0xc4   :  { %1322 = vmatpush1.bf16.msra.mxu0 %v4977_v17 }
  0xc7   :  { %4313 = vmatmul.mubr.msk.bf16.gmra.mrb[32].mxu0 %vm290_vm0, %v4877_v2 }
  0xc8   :  { %461 = vmatprep.mubr.bf16.mxu0 %v5370_v0 }
  0xcf   :  { %4314 = vmatmul.mubr.msk.bf16.gmra.mrb[36].mxu0 %vm290_vm0, %v4878_v3 }
  0xd0   :  { %471 = vmatprep.mubr.bf16.mxu0 %v5370_v0 }
  0xd7   :  { %4315 = vmatmul.mubr.msk.bf16.gmra.mrb[40].mxu0 %vm290_vm0, %v4879_v4 }
  0xd8   :  { %481 = vmatprep.mubr.bf16.mxu0 %v5370_v0 }
  0xdf   :  { %4316 = vmatmul.mubr.msk.bf16.gmra.mrb[44].mxu0 %vm290_vm0, %v4880_v5 }
  0xe0   :  { %491 = vmatprep.mubr.bf16.mxu0 %v5370_v0 }
  0xe7   :  { %4317 = vmatmul.mubr.msk.bf16.gmra.mrb[48].mxu0 %vm290_vm0, %v4881_v14 }
  0xe8   :  { %501 = vmatprep.mubr.bf16.mxu0 %v5370_v0 }
  0xef   :  { %4318 = vmatmul.mubr.msk.bf16.gmra.mrb[52].mxu0 %vm290_vm0, %v4882_v19 }
  0xf0   :  { %511 = vmatprep.mubr.bf16.mxu0 %v5370_v0 }
  0xf7   :  { %4319 = vmatmul.mubr.msk.bf16.gmra.mrb[56].mxu0 %vm290_vm0, %v4883_v20  ;;  %v4990_v20 = vld [vmem:[#allocation6 + $0x30] ss:$8 sps:$4 sm:$0xff]  }
  0xf8   :  { %521 = vmatprep.mubr.bf16.mxu0 %v5370_v0  ;;  %v5636_v0 = vsub.s32 1, %v5627_v24 }
  0xfa   :  { %6457 = vst [vmem:[#allocation18_spill] sm:$0xff] %v5636_v0  ;;  %v5642_v28 = vrot.slane %v178_v26, %v5636_v0 }
  0xff   :  { %4320 = vmatmul.mubr.msk.bf16.gmra.mrb[60].mxu0 %vm290_vm0, %v4884_v21 }
 0x15a   :  { %v373_v29 = vpop.f32.mrb[0].mxu0 }
 0x15b   :  { %v374_v30 = vadd.f32 %v373_v29, %v5639_v27  ;;  %v375_v31 = vpop.f32.mrb[1].mxu0 }
 0x15c   :  { %v376_v32 = vadd.f32 %v375_v31, %v5642_v28  ;;  %v377_v33 = vpop.f32.mrb[2].mxu0 }
 0x15d   :  { %v532_v34 = vmul.f32 0.01, %v374_v30  ;;  %v378_v35 = vadd.f32 %v377_v33, %v5639_v27  ;;  %v379_v36 = vpop.f32.mrb[3].mxu0 }
 0x15e   :  { %v380_v37 = vadd.f32 %v379_v36, %v5642_v28  ;;  %v533_v38 = vmul.f32 0.01, %v376_v32 }
 0x15f   :  { %v534_v39 = vmul.f32 0.01, %v378_v35  ;;  %v596_v41 = vmax.f32 %v374_v30, %v532_v34 }
 0x160   :  { %v535_v40 = vmul.f32 0.01, %v380_v37  ;;  %v597_v44 = vmax.f32 %v376_v32, %v533_v38 }
 0x161   :  { %v598_v42 = vmax.f32 %v378_v35, %v534_v39 }
 0x162   :  { %v383_v43 = vpop.f32.mrb[4].mxu0  ;;  %v599_v45 = vmax.f32 %v380_v37, %v535_v40  ;;  %v4993_v37 = vld [vmem:[#allocation6 + $0x40] ss:$8 sps:$4 sm:$0xff]  }
 0x163   :  { %v384_v46 = vadd.f32 %v383_v43, %v5639_v27  ;;  %v385_v47 = vpop.f32.mrb[5].mxu0  ;;  %v660_v48 = vpack.c.bf16 %v598_v42, %v596_v41  ;;  %v4998_v41 = vld [vmem:[#allocation6 + $0x54] ss:$8 sps:$4 sm:$0xff]  }
 0x164   :  { %v386_v49 = vadd.f32 %v385_v47, %v5642_v28  ;;  %v387_v50 = vpop.f32.mrb[6].mxu0  ;;  %v661_v51 = vpack.c.bf16 %v599_v45, %v597_v44 }
 0x165   :  { %v536_v53 = vmul.f32 0.01, %v384_v46  ;;  %v388_v54 = vadd.f32 %v387_v50, %v5639_v27  ;;  %v389_v55 = vpop.f32.mrb[7].mxu0 }
 0x166   :  { %v537_v57 = vmul.f32 0.01, %v386_v49  ;;  %v390_v58 = vadd.f32 %v389_v55, %v5642_v28  ;;  %1130 = vmatprep.mubr.bf16.mxu1 %v661_v51  ;;  %1323 = vmatprep.mubr.bf16.mxu0 %v661_v51 }
 0x167   :  { %v538_v59 = vmul.f32 0.01, %v388_v54  ;;  %1131 = vmatmul.mubr.bf16.vlgmr.msra.gmra.mrb[0].mxu1 %v660_v48  ;;  %1324 = vmatmul.mubr.bf16.vlgmr.msra.gmra.mrb[64].mxu0 %v660_v48  ;;  %v600_v62 = vmax.f32 %v384_v46, %v536_v53  ;;  %v4996_v46 = vld [vmem:[#allocation6 + $0x50] ss:$8 sps:$4 sm:$0xff]  }
 0x168   :  { %v539_v60 = vmul.f32 0.01, %v390_v58  ;;  %2201 = vmatpush1.bf16.msra.mxu1 %v4981_v52  ;;  %v601_v2 = vmax.f32 %v386_v49, %v537_v57  ;;  %v5001_v49 = vld [vmem:[#allocation6 + $0x64] ss:$8 sps:$4 sm:$0xff]  }
 0x169   :  { %v602_v63 = vmax.f32 %v388_v54, %v538_v59  ;;  %2202 = vmatprep.subr.bf16.mxu1 %v4986_v56  ;;  %v4999_v59 = vld [vmem:[#allocation6 + $0x60] ss:$8 sps:$4 sm:$0xff]  }
 0x16a   :  { %v603_v3 = vmax.f32 %v390_v58, %v539_v60  ;;  %v393_v4 = vpop.f32.mrb[8].mxu0 }
 0x16b   :  { %v394_v5 = vadd.f32 %v393_v4, %v5639_v27  ;;  %v395_v6 = vpop.f32.mrb[9].mxu0  ;;  %v662_v7 = vpack.c.bf16 %v602_v63, %v600_v62  ;;  %v5004_v63 = vld [vmem:[#allocation6 + $0x74] ss:$8 sps:$4 sm:$0xff]  }
 0x16c   :  { %v396_v8 = vadd.f32 %v395_v6, %v5642_v28  ;;  %v397_v9 = vpop.f32.mrb[10].mxu0  ;;  %v663_v10 = vpack.c.bf16 %v603_v3, %v601_v2  ;;  %2203 = vmatpush1.bf16.msra.mxu1 %v4984_v61 }
 0x16d   :  { %v540_v12 = vmul.f32 0.01, %v394_v5  ;;  %v398_v13 = vadd.f32 %v397_v9, %v5639_v27  ;;  %v399_v14 = vpop.f32.mrb[11].mxu0  ;;  %2204 = vmatprep.subr.bf16.mxu1 %v4989_v1 }
 0x16e   :  { %v541_v16 = vmul.f32 0.01, %v396_v8  ;;  %v400_v17 = vadd.f32 %v399_v14, %v5642_v28  ;;  %1140 = vmatprep.mubr.bf16.mxu1 %v663_v10  ;;  %1333 = vmatprep.mubr.bf16.mxu0 %v663_v10 }
 0x16f   :  { %v542_v18 = vmul.f32 0.01, %v398_v13  ;;  %1141 = vmatmul.mubr.bf16.gmra.mrb[4].mxu1 %v662_v7  ;;  %1334 = vmatmul.mubr.bf16.gmra.mrb[68].mxu0 %v662_v7  ;;  %v604_v21 = vmax.f32 %v394_v5, %v540_v12  ;;  %v5002_v5 = vld [vmem:[#allocation6 + $0x70] ss:$8 sps:$4 sm:$0xff]  }
 0x170   :  { %v543_v19 = vmul.f32 0.01, %v400_v17  ;;  %2205 = vmatpush1.bf16.msra.mxu1 %v4987_v11  ;;  %v605_v26 = vmax.f32 %v396_v8, %v541_v16  ;;  %v5007_v8 = vld [vmem:[#allocation6 + $0x84] ss:$8 sps:$4 sm:$0xff]  }
 0x171   :  { %v606_v22 = vmax.f32 %v398_v13, %v542_v18  ;;  %2206 = vmatprep.subr.bf16.mxu1 %v4992_v15  ;;  %v5005_v18 = vld [vmem:[#allocation6 + $0x80] ss:$8 sps:$4 sm:$0xff]  }
 0x172   :  { %v607_v29 = vmax.f32 %v400_v17, %v543_v19  ;;  %v403_v30 = vpop.f32.mrb[12].mxu0 }
 0x173   :  { %v404_v31 = vadd.f32 %v403_v30, %v5639_v27  ;;  %v405_v32 = vpop.f32.mrb[13].mxu0  ;;  %v664_v33 = vpack.c.bf16 %v606_v22, %v604_v21  ;;  %v5010_v22 = vld [vmem:[#allocation6 + $0x94] ss:$8 sps:$4 sm:$0xff]  }
 0x174   :  { %v406_v34 = vadd.f32 %v405_v32, %v5642_v28  ;;  %v407_v35 = vpop.f32.mrb[14].mxu0  ;;  %v665_v36 = vpack.c.bf16 %v607_v29, %v605_v26  ;;  %2207 = vmatpush1.bf16.msra.mxu1 %v4990_v20 }
 0x175   :  { %v544_v38 = vmul.f32 0.01, %v404_v31  ;;  %v408_v39 = vadd.f32 %v407_v35, %v5639_v27  ;;  %v409_v40 = vpop.f32.mrb[15].mxu0  ;;  %2208 = vmatprep.subr.bf16.mxu1 %v4995_v23 }
 0x176   :  { %v545_v42 = vmul.f32 0.01, %v406_v34  ;;  %v410_v43 = vadd.f32 %v409_v40, %v5642_v28  ;;  %1150 = vmatprep.mubr.bf16.mxu1 %v665_v36  ;;  %1343 = vmatprep.mubr.bf16.mxu0 %v665_v36 }
 0x177   :  { %v546_v44 = vmul.f32 0.01, %v408_v39  ;;  %1151 = vmatmul.mubr.bf16.gmra.mrb[8].mxu1 %v664_v33  ;;  %1344 = vmatmul.mubr.bf16.gmra.mrb[72].mxu0 %v664_v33  ;;  %v608_v47 = vmax.f32 %v404_v31, %v544_v38  ;;  %v5008_v31 = vld [vmem:[#allocation6 + $0x90] ss:$8 sps:$4 sm:$0xff]  }
 0x178   :  { %v547_v45 = vmul.f32 0.01, %v410_v43  ;;  %2209 = vmatpush1.bf16.msra.mxu1 %v4993_v37  ;;  %v609_v50 = vmax.f32 %v406_v34, %v545_v42  ;;  %v5013_v34 = vld [vmem:[#allocation6 + $0xa4] ss:$8 sps:$4 sm:$0xff]  }
 0x179   :  { %v610_v48 = vmax.f32 %v408_v39, %v546_v44  ;;  %2210 = vmatprep.subr.bf16.mxu1 %v4998_v41  ;;  %v5011_v44 = vld [vmem:[#allocation6 + $0xa0] ss:$8 sps:$4 sm:$0xff]  }
 0x17a   :  { %v611_v51 = vmax.f32 %v410_v43, %v547_v45  ;;  %v413_v52 = vpop.f32.mrb[16].mxu0 }
 0x17b   :  { %v414_v53 = vadd.f32 %v413_v52, %v5639_v27  ;;  %v415_v54 = vpop.f32.mrb[17].mxu0  ;;  %v666_v55 = vpack.c.bf16 %v610_v48, %v608_v47  ;;  %v5016_v48 = vld [vmem:[#allocation6 + $0xb4] ss:$8 sps:$4 sm:$0xff]  }
 0x17c   :  { %v416_v56 = vadd.f32 %v415_v54, %v5642_v28  ;;  %v417_v57 = vpop.f32.mrb[18].mxu0  ;;  %v667_v58 = vpack.c.bf16 %v611_v51, %v609_v50  ;;  %2211 = vmatpush1.bf16.msra.mxu1 %v4996_v46 }
 0x17d   :  { %v548_v60 = vmul.f32 0.01, %v414_v53  ;;  %v418_v61 = vadd.f32 %v417_v57, %v5639_v27  ;;  %v419_v62 = vpop.f32.mrb[19].mxu0  ;;  %2212 = vmatprep.subr.bf16.mxu1 %v5001_v49 }
 0x17e   :  { %v549_v1 = vmul.f32 0.01, %v416_v56  ;;  %v420_v2 = vadd.f32 %v419_v62, %v5642_v28  ;;  %1160 = vmatprep.mubr.bf16.mxu1 %v667_v58  ;;  %1353 = vmatprep.mubr.bf16.mxu0 %v667_v58 }
 0x17f   :  { %v550_v3 = vmul.f32 0.01, %v418_v61  ;;  %1161 = vmatmul.mubr.bf16.gmra.mrb[12].mxu1 %v666_v55  ;;  %1354 = vmatmul.mubr.bf16.gmra.mrb[76].mxu0 %v666_v55  ;;  %v612_v6 = vmax.f32 %v414_v53, %v548_v60  ;;  %v5014_v53 = vld [vmem:[#allocation6 + $0xb0] ss:$8 sps:$4 sm:$0xff]  }
 0x180   :  { %v551_v4 = vmul.f32 0.01, %v420_v2  ;;  %2213 = vmatpush1.bf16.msra.mxu1 %v4999_v59  ;;  %v613_v9 = vmax.f32 %v416_v56, %v549_v1  ;;  %v5019_v56 = vld [vmem:[#allocation6 + $0xc4] ss:$8 sps:$4 sm:$0xff]  }
 0x181   :  { %v614_v7 = vmax.f32 %v418_v61, %v550_v3  ;;  %2214 = vmatprep.subr.bf16.mxu1 %v5004_v63  ;;  %v5017_v3 = vld [vmem:[#allocation6 + $0xc0] ss:$8 sps:$4 sm:$0xff]  }
 0x182   :  { %v615_v10 = vmax.f32 %v420_v2, %v551_v4  ;;  %v423_v11 = vpop.f32.mrb[20].mxu0 }
 0x183   :  { %v424_v12 = vadd.f32 %v423_v11, %v5639_v27  ;;  %v425_v13 = vpop.f32.mrb[21].mxu0  ;;  %v668_v14 = vpack.c.bf16 %v614_v7, %v612_v6  ;;  %v5022_v7 = vld [vmem:[#allocation6 + $0xd4] ss:$8 sps:$4 sm:$0xff]  }
 0x184   :  { %v426_v15 = vadd.f32 %v425_v13, %v5642_v28  ;;  %v427_v16 = vpop.f32.mrb[22].mxu0  ;;  %v669_v17 = vpack.c.bf16 %v615_v10, %v613_v9  ;;  %2215 = vmatpush1.bf16.msra.mxu1 %v5002_v5 }
 0x185   :  { %v552_v19 = vmul.f32 0.01, %v424_v12  ;;  %v428_v20 = vadd.f32 %v427_v16, %v5639_v27  ;;  %v429_v21 = vpop.f32.mrb[23].mxu0  ;;  %2216 = vmatprep.subr.bf16.mxu1 %v5007_v8 }
 0x186   :  { %v553_v23 = vmul.f32 0.01, %v426_v15  ;;  %v430_v26 = vadd.f32 %v429_v21, %v5642_v28  ;;  %1170 = vmatprep.mubr.bf16.mxu1 %v669_v17  ;;  %1363 = vmatprep.mubr.bf16.mxu0 %v669_v17 }
 0x187   :  { %v554_v29 = vmul.f32 0.01, %v428_v20  ;;  %1171 = vmatmul.mubr.bf16.gmra.mrb[16].mxu1 %v668_v14  ;;  %1364 = vmatmul.mubr.bf16.gmra.mrb[80].mxu0 %v668_v14  ;;  %v616_v32 = vmax.f32 %v424_v12, %v552_v19  ;;  %v5020_v12 = vld [vmem:[#allocation6 + $0xd0] ss:$8 sps:$4 sm:$0xff]  }
 0x188   :  { %v555_v30 = vmul.f32 0.01, %v430_v26  ;;  %2217 = vmatpush1.bf16.msra.mxu1 %v5005_v18  ;;  %v617_v35 = vmax.f32 %v426_v15, %v553_v23  ;;  %v5025_v15 = vld [vmem:[#allocation6 + $0xe4] ss:$8 sps:$4 sm:$0xff]  }
 0x189   :  { %v618_v33 = vmax.f32 %v428_v20, %v554_v29  ;;  %2218 = vmatprep.subr.bf16.mxu1 %v5010_v22  ;;  %v5023_v29 = vld [vmem:[#allocation6 + $0xe0] ss:$8 sps:$4 sm:$0xff]  }
 0x18a   :  { %v619_v36 = vmax.f32 %v430_v26, %v555_v30  ;;  %v433_v37 = vpop.f32.mrb[24].mxu0 }
 0x18b   :  { %v434_v38 = vadd.f32 %v433_v37, %v5639_v27  ;;  %v435_v39 = vpop.f32.mrb[25].mxu0  ;;  %v670_v40 = vpack.c.bf16 %v618_v33, %v616_v32 }
 0x18c   :  { %v436_v41 = vadd.f32 %v435_v39, %v5642_v28  ;;  %v437_v42 = vpop.f32.mrb[26].mxu0  ;;  %v671_v43 = vpack.c.bf16 %v619_v36, %v617_v35  ;;  %2219 = vmatpush1.bf16.msra.mxu1 %v5008_v31 }
 0x18d   :  { %v556_v45 = vmul.f32 0.01, %v434_v38  ;;  %v438_v46 = vadd.f32 %v437_v42, %v5639_v27  ;;  %v439_v47 = vpop.f32.mrb[27].mxu0  ;;  %2220 = vmatprep.subr.bf16.mxu1 %v5013_v34 }
 0x18e   :  { %v557_v49 = vmul.f32 0.01, %v436_v41  ;;  %v440_v50 = vadd.f32 %v439_v47, %v5642_v28  ;;  %1180 = vmatprep.mubr.bf16.mxu1 %v671_v43  ;;  %1373 = vmatprep.mubr.bf16.mxu0 %v671_v43 }
 0x18f   :  { %v558_v51 = vmul.f32 0.01, %v438_v46  ;;  %1181 = vmatmul.mubr.bf16.gmra.mrb[20].mxu1 %v670_v40  ;;  %1374 = vmatmul.mubr.bf16.gmra.mrb[84].mxu0 %v670_v40  ;;  %v620_v54 = vmax.f32 %v434_v38, %v556_v45 }
 0x190   :  { %v559_v52 = vmul.f32 0.01, %v440_v50  ;;  %2221 = vmatpush1.bf16.msra.mxu1 %v5011_v44  ;;  %v621_v57 = vmax.f32 %v436_v41, %v557_v49 }
 0x191   :  { %v622_v55 = vmax.f32 %v438_v46, %v558_v51  ;;  %2222 = vmatprep.subr.bf16.mxu1 %v5016_v48 }
 0x192   :  { %v623_v58 = vmax.f32 %v440_v50, %v559_v52  ;;  %v443_v59 = vpop.f32.mrb[28].mxu0 }
 0x193   :  { %v444_v60 = vadd.f32 %v443_v59, %v5639_v27  ;;  %v445_v61 = vpop.f32.mrb[29].mxu0  ;;  %v672_v62 = vpack.c.bf16 %v622_v55, %v620_v54 }
 0x194   :  { %v446_v63 = vadd.f32 %v445_v61, %v5642_v28  ;;  %v447_v1 = vpop.f32.mrb[30].mxu0  ;;  %v673_v2 = vpack.c.bf16 %v623_v58, %v621_v57  ;;  %2223 = vmatpush1.bf16.msra.mxu1 %v5014_v53 }
 0x195   :  { %v560_v4 = vmul.f32 0.01, %v444_v60  ;;  %v448_v5 = vadd.f32 %v447_v1, %v5639_v27  ;;  %v449_v6 = vpop.f32.mrb[31].mxu0  ;;  %2224 = vmatprep.subr.bf16.mxu1 %v5019_v56 }
 0x196   :  { %v561_v8 = vmul.f32 0.01, %v446_v63  ;;  %v450_v9 = vadd.f32 %v449_v6, %v5642_v28  ;;  %1190 = vmatprep.mubr.bf16.mxu1 %v673_v2  ;;  %1383 = vmatprep.mubr.bf16.mxu0 %v673_v2 }
 0x197   :  { %v562_v10 = vmul.f32 0.01, %v448_v5  ;;  %1191 = vmatmul.mubr.bf16.gmra.mrb[24].mxu1 %v672_v62  ;;  %1384 = vmatmul.mubr.bf16.gmra.mrb[88].mxu0 %v672_v62  ;;  %v624_v13 = vmax.f32 %v444_v60, %v560_v4 }
 0x198   :  { %v563_v11 = vmul.f32 0.01, %v450_v9  ;;  %2225 = vmatpush1.bf16.msra.mxu1 %v5017_v3  ;;  %v625_v16 = vmax.f32 %v446_v63, %v561_v8 }
 0x199   :  { %v626_v14 = vmax.f32 %v448_v5, %v562_v10  ;;  %2226 = vmatprep.subr.bf16.mxu1 %v5022_v7 }
 0x19a   :  { %v627_v17 = vmax.f32 %v450_v9, %v563_v11  ;;  %v453_v18 = vpop.f32.mrb[32].mxu0 }
 0x19b   :  { %v454_v19 = vadd.f32 %v453_v18, %v5639_v27  ;;  %v455_v20 = vpop.f32.mrb[33].mxu0  ;;  %v674_v21 = vpack.c.bf16 %v626_v14, %v624_v13 }
 0x19c   :  { %v456_v22 = vadd.f32 %v455_v20, %v5642_v28  ;;  %v457_v23 = vpop.f32.mrb[34].mxu0  ;;  %v675_v26 = vpack.c.bf16 %v627_v17, %v625_v16  ;;  %2227 = vmatpush1.bf16.msra.mxu1 %v5020_v12 }
 0x19d   :  { %v564_v30 = vmul.f32 0.01, %v454_v19  ;;  %v458_v31 = vadd.f32 %v457_v23, %v5639_v27  ;;  %v459_v32 = vpop.f32.mrb[35].mxu0  ;;  %2228 = vmatprep.subr.bf16.mxu1 %v5025_v15 }
 0x19e   :  { %v565_v33 = vmul.f32 0.01, %v456_v22  ;;  %v460_v34 = vadd.f32 %v459_v32, %v5642_v28  ;;  %1200 = vmatprep.mubr.bf16.mxu1 %v675_v26  ;;  %1393 = vmatprep.mubr.bf16.mxu0 %v675_v26 }
 0x19f   :  { %v566_v35 = vmul.f32 0.01, %v458_v31  ;;  %1201 = vmatmul.mubr.bf16.gmra.mrb[28].mxu1 %v674_v21  ;;  %1394 = vmatmul.mubr.bf16.gmra.mrb[92].mxu0 %v674_v21  ;;  %v628_v37 = vmax.f32 %v454_v19, %v564_v30 }
 0x1a0   :  { %v567_v36 = vmul.f32 0.01, %v460_v34  ;;  %2229 = vmatpush1.bf16.msra.mxu1 %v5023_v29  ;;  %v629_v39 = vmax.f32 %v456_v22, %v565_v33 }
 0x1a1   :  { %v630_v38 = vmax.f32 %v458_v31, %v566_v35 }
 0x1a2   :  { %v631_v40 = vmax.f32 %v460_v34, %v567_v36  ;;  %v463_v41 = vpop.f32.mrb[36].mxu0 }
 0x1a3   :  { %v464_v42 = vadd.f32 %v463_v41, %v5639_v27  ;;  %v465_v43 = vpop.f32.mrb[37].mxu0  ;;  %v676_v44 = vpack.c.bf16 %v630_v38, %v628_v37 }
 0x1a4   :  { %v466_v45 = vadd.f32 %v465_v43, %v5642_v28  ;;  %v467_v46 = vpop.f32.mrb[38].mxu0  ;;  %v677_v47 = vpack.c.bf16 %v631_v40, %v629_v39 }
 0x1a5   :  { %v568_v48 = vmul.f32 0.01, %v464_v42  ;;  %v468_v49 = vadd.f32 %v467_v46, %v5639_v27  ;;  %v469_v50 = vpop.f32.mrb[39].mxu0 }
 0x1a6   :  { %v569_v51 = vmul.f32 0.01, %v466_v45  ;;  %v470_v52 = vadd.f32 %v469_v50, %v5642_v28  ;;  %1210 = vmatprep.mubr.bf16.mxu1 %v677_v47  ;;  %1403 = vmatprep.mubr.bf16.mxu0 %v677_v47 }
 0x1a7   :  { %v570_v53 = vmul.f32 0.01, %v468_v49  ;;  %1211 = vmatmul.mubr.bf16.gmra.mrb[32].mxu1 %v676_v44  ;;  %1404 = vmatmul.mubr.bf16.gmra.mrb[96].mxu0 %v676_v44  ;;  %v632_v55 = vmax.f32 %v464_v42, %v568_v48 }
 0x1a8   :  { %v571_v54 = vmul.f32 0.01, %v470_v52  ;;  %v633_v57 = vmax.f32 %v466_v45, %v569_v51 }
 0x1a9   :  { %v634_v56 = vmax.f32 %v468_v49, %v570_v53 }
 0x1aa   :  { %v635_v58 = vmax.f32 %v470_v52, %v571_v54  ;;  %v473_v59 = vpop.f32.mrb[40].mxu0  ;;  %v5028_v52 = vld [vmem:[#allocation6 + $0xf4] ss:$8 sps:$4 sm:$0xff]  }
 0x1ab   :  { %v474_v60 = vadd.f32 %v473_v59, %v5639_v27  ;;  %v475_v61 = vpop.f32.mrb[41].mxu0  ;;  %v678_v62 = vpack.c.bf16 %v634_v56, %v632_v55  ;;  %v5026_v56 = vld [vmem:[#allocation6 + $0xf0] ss:$8 sps:$4 sm:$0xff]   ;;  %2230 = vmatprep.subr.bf16.mxu1 %v5028_v52 }
 0x1ac   :  { %v476_v63 = vadd.f32 %v475_v61, %v5642_v28  ;;  %v477_v1 = vpop.f32.mrb[42].mxu0  ;;  %v679_v2 = vpack.c.bf16 %v635_v58, %v633_v57  ;;  %2231 = vmatpush1.bf16.msra.mxu1 %v5026_v56 }
 0x1ad   :  { %v572_v3 = vmul.f32 0.01, %v474_v60  ;;  %v478_v4 = vadd.f32 %v477_v1, %v5639_v27  ;;  %v479_v5 = vpop.f32.mrb[43].mxu0 }
 0x1ae   :  { %v573_v6 = vmul.f32 0.01, %v476_v63  ;;  %v480_v7 = vadd.f32 %v479_v5, %v5642_v28  ;;  %1220 = vmatprep.mubr.bf16.mxu1 %v679_v2  ;;  %1413 = vmatprep.mubr.bf16.mxu0 %v679_v2 }
 0x1af   :  { %v574_v8 = vmul.f32 0.01, %v478_v4  ;;  %1221 = vmatmul.mubr.bf16.gmra.mrb[36].mxu1 %v678_v62  ;;  %1414 = vmatmul.mubr.bf16.gmra.mrb[100].mxu0 %v678_v62  ;;  %v636_v10 = vmax.f32 %v474_v60, %v572_v3 }
 0x1b0   :  { %v575_v9 = vmul.f32 0.01, %v480_v7  ;;  %v637_v12 = vmax.f32 %v476_v63, %v573_v6 }
 0x1b1   :  { %v638_v11 = vmax.f32 %v478_v4, %v574_v8 }
 0x1b2   :  { %v639_v13 = vmax.f32 %v480_v7, %v575_v9  ;;  %v483_v14 = vpop.f32.mrb[44].mxu0 }
 0x1b3   :  { %v484_v15 = vadd.f32 %v483_v14, %v5639_v27  ;;  %v485_v16 = vpop.f32.mrb[45].mxu0  ;;  %v680_v17 = vpack.c.bf16 %v638_v11, %v636_v10 }
 0x1b4   :  { %v486_v18 = vadd.f32 %v485_v16, %v5642_v28  ;;  %v487_v19 = vpop.f32.mrb[46].mxu0  ;;  %v681_v20 = vpack.c.bf16 %v639_v13, %v637_v12  ;;  %v5031_v12 = vld [vmem:[#allocation6 + $0x104] ss:$8 sps:$4 sm:$0xff]  }
 0x1b5   :  { %v576_v21 = vmul.f32 0.01, %v484_v15  ;;  %v488_v22 = vadd.f32 %v487_v19, %v5639_v27  ;;  %v489_v23 = vpop.f32.mrb[47].mxu0  ;;  %2393 = vmatprep.subr.bf16.mxu1 %v5031_v12 }
 0x1b6   :  { %v577_v26 = vmul.f32 0.01, %v486_v18  ;;  %v490_v29 = vadd.f32 %v489_v23, %v5642_v28  ;;  %1230 = vmatprep.mubr.bf16.mxu1 %v681_v20  ;;  %1423 = vmatprep.mubr.bf16.mxu0 %v681_v20 }
 0x1b7   :  { %v578_v30 = vmul.f32 0.01, %v488_v22  ;;  %1231 = vmatmul.mubr.bf16.gmra.mrb[40].mxu1 %v680_v17  ;;  %1424 = vmatmul.mubr.bf16.gmra.mrb[104].mxu0 %v680_v17  ;;  %v640_v32 = vmax.f32 %v484_v15, %v576_v21 }
 0x1b8   :  { %v579_v31 = vmul.f32 0.01, %v490_v29  ;;  %v641_v34 = vmax.f32 %v486_v18, %v577_v26 }
 0x1b9   :  { %v642_v33 = vmax.f32 %v488_v22, %v578_v30 }
 0x1ba   :  { %v643_v35 = vmax.f32 %v490_v29, %v579_v31  ;;  %v493_v36 = vpop.f32.mrb[48].mxu0 }
 0x1bb   :  { %v494_v37 = vadd.f32 %v493_v36, %v5639_v27  ;;  %v495_v38 = vpop.f32.mrb[49].mxu0  ;;  %v682_v39 = vpack.c.bf16 %v642_v33, %v640_v32 }
 0x1bc   :  { %v496_v40 = vadd.f32 %v495_v38, %v5642_v28  ;;  %v497_v41 = vpop.f32.mrb[50].mxu0  ;;  %v683_v42 = vpack.c.bf16 %v643_v35, %v641_v34 }
 0x1bd   :  { %v580_v43 = vmul.f32 0.01, %v494_v37  ;;  %v498_v44 = vadd.f32 %v497_v41, %v5639_v27  ;;  %v499_v45 = vpop.f32.mrb[51].mxu0 }
 0x1be   :  { %v581_v46 = vmul.f32 0.01, %v496_v40  ;;  %v500_v47 = vadd.f32 %v499_v45, %v5642_v28  ;;  %1240 = vmatprep.mubr.bf16.mxu1 %v683_v42  ;;  %1433 = vmatprep.mubr.bf16.mxu0 %v683_v42 }
 0x1bf   :  { %v582_v48 = vmul.f32 0.01, %v498_v44  ;;  %1241 = vmatmul.mubr.bf16.gmra.mrb[44].mxu1 %v682_v39  ;;  %1434 = vmatmul.mubr.bf16.gmra.mrb[108].mxu0 %v682_v39  ;;  %v644_v50 = vmax.f32 %v494_v37, %v580_v43 }
 0x1c0   :  { %v583_v49 = vmul.f32 0.01, %v500_v47  ;;  %v645_v53 = vmax.f32 %v496_v40, %v581_v46 }
 0x1c1   :  { %v646_v51 = vmax.f32 %v498_v44, %v582_v48 }
 0x1c2   :  { %v647_v54 = vmax.f32 %v500_v47, %v583_v49  ;;  %v503_v55 = vpop.f32.mrb[52].mxu0 }
 0x1c3   :  { %v504_v57 = vadd.f32 %v503_v55, %v5639_v27  ;;  %v505_v58 = vpop.f32.mrb[53].mxu0  ;;  %v684_v59 = vpack.c.bf16 %v646_v51, %v644_v50 }
 0x1c4   :  { %v506_v60 = vadd.f32 %v505_v58, %v5642_v28  ;;  %v507_v61 = vpop.f32.mrb[54].mxu0  ;;  %v685_v62 = vpack.c.bf16 %v647_v54, %v645_v53  ;;  %v772_v54 = vsub.s32 3, %v5627_v24 }
 0x1c5   :  { %v584_v63 = vmul.f32 0.01, %v504_v57  ;;  %v508_v1 = vadd.f32 %v507_v61, %v5639_v27  ;;  %v509_v2 = vpop.f32.mrb[55].mxu0 }
 0x1c6   :  { %v585_v3 = vmul.f32 0.01, %v506_v60  ;;  %v510_v4 = vadd.f32 %v509_v2, %v5642_v28  ;;  %1250 = vmatprep.mubr.bf16.mxu1 %v685_v62  ;;  %1443 = vmatprep.mubr.bf16.mxu0 %v685_v62 }
 0x1c7   :  { %v586_v5 = vmul.f32 0.01, %v508_v1  ;;  %1251 = vmatmul.mubr.bf16.gmra.mrb[48].mxu1 %v684_v59  ;;  %1444 = vmatmul.mubr.bf16.gmra.mrb[112].mxu0 %v684_v59  ;;  %v648_v7 = vmax.f32 %v504_v57, %v584_v63 }
 0x1c8   :  { %v587_v6 = vmul.f32 0.01, %v510_v4  ;;  %v649_v9 = vmax.f32 %v506_v60, %v585_v3 }
 0x1c9   :  { %v650_v8 = vmax.f32 %v508_v1, %v586_v5 }
 0x1ca   :  { %v651_v10 = vmax.f32 %v510_v4, %v587_v6  ;;  %v513_v11 = vpop.f32.mrb[56].mxu0 }
 0x1cb   :  { %v514_v13 = vadd.f32 %v513_v11, %v5639_v27  ;;  %v515_v14 = vpop.f32.mrb[57].mxu0  ;;  %v686_v15 = vpack.c.bf16 %v650_v8, %v648_v7 }
 0x1cc   :  { %v516_v16 = vadd.f32 %v515_v14, %v5642_v28  ;;  %v517_v17 = vpop.f32.mrb[58].mxu0  ;;  %v687_v18 = vpack.c.bf16 %v651_v10, %v649_v9 }
 0x1cd   :  { %v588_v19 = vmul.f32 0.01, %v514_v13  ;;  %v518_v20 = vadd.f32 %v517_v17, %v5639_v27  ;;  %v519_v21 = vpop.f32.mrb[59].mxu0 }
 0x1ce   :  { %v589_v22 = vmul.f32 0.01, %v516_v16  ;;  %v520_v23 = vadd.f32 %v519_v21, %v5642_v28  ;;  %1260 = vmatprep.mubr.bf16.mxu1 %v687_v18  ;;  %1453 = vmatprep.mubr.bf16.mxu0 %v687_v18 }
 0x1cf   :  { %v590_v26 = vmul.f32 0.01, %v518_v20  ;;  %1261 = vmatmul.mubr.bf16.gmra.mrb[52].mxu1 %v686_v15  ;;  %1454 = vmatmul.mubr.bf16.gmra.mrb[116].mxu0 %v686_v15  ;;  %v652_v30 = vmax.f32 %v514_v13, %v588_v19 }
 0x1d0   :  { %v591_v29 = vmul.f32 0.01, %v520_v23  ;;  %v653_v32 = vmax.f32 %v516_v16, %v589_v22 }
 0x1d1   :  { %v654_v31 = vmax.f32 %v518_v20, %v590_v26 }
 0x1d2   :  { %v655_v33 = vmax.f32 %v520_v23, %v591_v29  ;;  %v523_v34 = vpop.f32.mrb[60].mxu0 }
 0x1d3   :  { %v524_v35 = vadd.f32 %v523_v34, %v5639_v27  ;;  %v525_v36 = vpop.f32.mrb[61].mxu0  ;;  %v688_v37 = vpack.c.bf16 %v654_v31, %v652_v30 }
 0x1d4   :  { %v526_v38 = vadd.f32 %v525_v36, %v5642_v28  ;;  %v527_v39 = vpop.f32.mrb[62].mxu0  ;;  %v689_v40 = vpack.c.bf16 %v655_v33, %v653_v32 }
 0x1d5   :  { %v592_v41 = vmul.f32 0.01, %v524_v35  ;;  %v528_v42 = vadd.f32 %v527_v39, %v5639_v27  ;;  %v529_v43 = vpop.f32.mrb[63].mxu0  ;;  %v768_v27 = vsub.s32 2, %v5627_v24 }
 0x1d6   :  { %v593_v44 = vmul.f32 0.01, %v526_v38  ;;  %v530_v45 = vadd.f32 %v529_v43, %v5642_v28  ;;  %1270 = vmatprep.mubr.bf16.mxu1 %v689_v40  ;;  %1463 = vmatprep.mubr.bf16.mxu0 %v689_v40  ;;  %v756_v28 = vld [vmem:[%s6438_s4] sm:$0xf] }
 0x1d7   :  { %v594_v46 = vmul.f32 0.01, %v528_v42  ;;  %1271 = vmatmul.mubr.bf16.gmra.mrb[56].mxu1 %v688_v37  ;;  %1464 = vmatmul.mubr.bf16.gmra.mrb[120].mxu0 %v688_v37  ;;  %v656_v48 = vmax.f32 %v524_v35, %v592_v41  ;;  %v5714_v55 = vrot.slane %v756_v28, %v5630_v25  ;;  %v5716_v56 = vrot.slane %v756_v28, %v768_v27 }
 0x1d8   :  { %v595_v47 = vmul.f32 0.01, %v530_v45  ;;  %v657_v50 = vmax.f32 %v526_v38, %v593_v44  ;;  %v5719_v57 = vrot.slane %v756_v28, %v5636_v0  ;;  %v5721_v58 = vrot.slane %v756_v28, %v772_v54  ;;  %v5029_v44 = vld [vmem:[#allocation6 + $0x100] ss:$8 sps:$4 sm:$0xff]  }
 0x1d9   :  { %v658_v49 = vmax.f32 %v528_v42, %v594_v46 }
 0x1da   :  { %v659_v51 = vmax.f32 %v530_v45, %v595_v47  ;;  %v5034_v45 = vld [vmem:[#allocation6 + $0x114] ss:$8 sps:$4 sm:$0xff]  }
 0x1db   :  { %v690_v52 = vpack.c.bf16 %v658_v49, %v656_v48 }
 0x1dc   :  { %v691_v53 = vpack.c.bf16 %v659_v51, %v657_v50 }
 0x1de   :  { %1280 = vmatprep.mubr.bf16.mxu1 %v691_v53  ;;  %1473 = vmatprep.mubr.bf16.mxu0 %v691_v53 }
 0x1df   :  { %1281 = vmatmul.mubr.bf16.gmra.mrb[60].mxu1 %v690_v52  ;;  %1474 = vmatmul.mubr.bf16.gmra.mrb[124].mxu0 %v690_v52 }
 0x23a   :  { %v1132_v59 = vpop.f32.mrb[0].mxu1  ;;  %v1325_v60 = vpop.f32.mrb[64].mxu0 }
 0x23b   :  { %v1133_v61 = vadd.f32 %v1132_v59, %v5714_v55  ;;  %v1326_v62 = vadd.f32 %v1325_v60, %v5716_v56  ;;  %v1134_v63 = vpop.f32.mrb[1].mxu1  ;;  %v1327_v1 = vpop.f32.mrb[65].mxu0 }
 0x23c   :  { %v1135_v24 = vadd.f32 %v1134_v63, %v5719_v57  ;;  %v1328_v2 = vadd.f32 %v1327_v1, %v5721_v58  ;;  %v1136_v3 = vpop.f32.mrb[2].mxu1  ;;  %v1329_v4 = vpop.f32.mrb[66].mxu0  ;;  %v5032_v63 = vld [vmem:[#allocation6 + $0x110] ss:$8 sps:$4 sm:$0xff]  }
 0x23d   :  { %v1484_v5 = vmul.f32 0.01, %v1133_v61  ;;  %v1486_v6 = vmul.f32 0.01, %v1326_v62  ;;  %v1137_v7 = vadd.f32 %v1136_v3, %v5714_v55  ;;  %v1330_v8 = vadd.f32 %v1329_v4, %v5716_v56  ;;  %v1138_v9 = vpop.f32.mrb[3].mxu1  ;;  %v1331_v10 = vpop.f32.mrb[67].mxu0 }
 0x23e   :  { %v1485_v11 = vmul.f32 0.01, %v1135_v24  ;;  %v1487_v12 = vmul.f32 0.01, %v1328_v2  ;;  %v1139_v13 = vadd.f32 %v1138_v9, %v5719_v57  ;;  %v1332_v14 = vadd.f32 %v1331_v10, %v5721_v58  ;;  %v5037_v4 = vld [vmem:[#allocation6 + $0x124] ss:$8 sps:$4 sm:$0xff]  }
 0x23f   :  { %v1488_v15 = vmul.f32 0.01, %v1137_v7  ;;  %v1490_v16 = vmul.f32 0.01, %v1330_v8  ;;  %v1612_v19 = vmax.f32 %v1133_v61, %v1484_v5  ;;  %v1614_v20 = vmax.f32 %v1326_v62, %v1486_v6 }
 0x240   :  { %v1489_v17 = vmul.f32 0.01, %v1139_v13  ;;  %v1491_v18 = vmul.f32 0.01, %v1332_v14  ;;  %v1613_v23 = vmax.f32 %v1135_v24, %v1485_v11  ;;  %v1615_v26 = vmax.f32 %v1328_v2, %v1487_v12 }
 0x241   :  { %v1616_v21 = vmax.f32 %v1137_v7, %v1488_v15  ;;  %v1618_v22 = vmax.f32 %v1330_v8, %v1490_v16 }
 0x242   :  { %v1617_v29 = vmax.f32 %v1139_v13, %v1489_v17  ;;  %v1619_v30 = vmax.f32 %v1332_v14, %v1491_v18  ;;  %v1142_v31 = vpop.f32.mrb[4].mxu1  ;;  %v1335_v32 = vpop.f32.mrb[68].mxu0 }
 0x243   :  { %v1740_v33 = vpack.c.bf16 %v1616_v21, %v1612_v19  ;;  %v5731_v34 = vpack.c.bf16 %v1618_v22, %v1614_v20  ;;  %v1143_v35 = vadd.f32 %v1142_v31, %v5714_v55  ;;  %v1336_v36 = vadd.f32 %v1335_v32, %v5716_v56  ;;  %v1144_v37 = vpop.f32.mrb[5].mxu1  ;;  %v1337_v38 = vpop.f32.mrb[69].mxu0  ;;  %v5035_v22 = vld [vmem:[#allocation6 + $0x120] ss:$8 sps:$4 sm:$0xff]  }
 0x244   :  { %v1145_v39 = vadd.f32 %v1144_v37, %v5719_v57  ;;  %v1338_v40 = vadd.f32 %v1337_v38, %v5721_v58  ;;  %v1146_v41 = vpop.f32.mrb[6].mxu1  ;;  %v1339_v42 = vpop.f32.mrb[70].mxu0  ;;  %v1741_v43 = vpack.c.bf16 %v1617_v29, %v1613_v23  ;;  %v5737_v46 = vpack.c.bf16 %v1619_v30, %v1615_v26  ;;  %v5040_v23 = vld [vmem:[#allocation6 + $0x134] ss:$8 sps:$4 sm:$0xff]  }
 0x245   :  { %v1492_v47 = vmul.f32 0.01, %v1143_v35  ;;  %v1494_v48 = vmul.f32 0.01, %v1336_v36  ;;  %v1147_v49 = vadd.f32 %v1146_v41, %v5714_v55  ;;  %v1340_v50 = vadd.f32 %v1339_v42, %v5716_v56  ;;  %v1148_v51 = vpop.f32.mrb[7].mxu1  ;;  %v1341_v52 = vpop.f32.mrb[71].mxu0 }
 0x246   :  { %v1493_v53 = vmul.f32 0.01, %v1145_v39  ;;  %v1495_v27 = vmul.f32 0.01, %v1338_v40  ;;  %v1149_v28 = vadd.f32 %v1148_v51, %v5719_v57  ;;  %v1342_v54 = vadd.f32 %v1341_v52, %v5721_v58  ;;  %2232 = vmatprep.mubr.bf16.mxu1 %v1741_v43 }
 0x247   :  { %v1496_v59 = vmul.f32 0.01, %v1147_v49  ;;  %v1498_v60 = vmul.f32 0.01, %v1340_v50  ;;  %2233 = vmatmul.mubr.bf16.vlgmr.msra.gmra.mrb[64].mxu1 %v1740_v33  ;;  %v1620_v1 = vmax.f32 %v1143_v35, %v1492_v47  ;;  %v1622_v24 = vmax.f32 %v1336_v36, %v1494_v48 }
 0x248   :  { %v1497_v61 = vmul.f32 0.01, %v1149_v28  ;;  %v1499_v62 = vmul.f32 0.01, %v1342_v54  ;;  %2394 = vmatpush1.bf16.msra.mxu1 %v5029_v44  ;;  %v1621_v5 = vmax.f32 %v1145_v39, %v1493_v53  ;;  %v1623_v6 = vmax.f32 %v1338_v40, %v1495_v27  ;;  %v5038_v44 = vld [vmem:[#allocation6 + $0x130] ss:$8 sps:$4 sm:$0xff]  }
 0x249   :  { %v1624_v2 = vmax.f32 %v1147_v49, %v1496_v59  ;;  %v1626_v3 = vmax.f32 %v1340_v50, %v1498_v60  ;;  %2395 = vmatprep.subr.bf16.mxu1 %v5034_v45  ;;  %v5043_v50 = vld [vmem:[#allocation6 + $0x144] ss:$8 sps:$4 sm:$0xff]  }
 0x24a   :  { %v1625_v7 = vmax.f32 %v1149_v28, %v1497_v61  ;;  %v1627_v8 = vmax.f32 %v1342_v54, %v1499_v62  ;;  %v1152_v9 = vpop.f32.mrb[8].mxu1  ;;  %v1345_v10 = vpop.f32.mrb[72].mxu0 }
 0x24b   :  { %v1153_v11 = vadd.f32 %v1152_v9, %v5714_v55  ;;  %v1346_v12 = vadd.f32 %v1345_v10, %v5716_v56  ;;  %v1154_v13 = vpop.f32.mrb[9].mxu1  ;;  %v1347_v14 = vpop.f32.mrb[73].mxu0  ;;  %v1744_v15 = vpack.c.bf16 %v1624_v2, %v1620_v1  ;;  %v5745_v16 = vpack.c.bf16 %v1626_v3, %v1622_v24 }
 0x24c   :  { %v1155_v17 = vadd.f32 %v1154_v13, %v5719_v57  ;;  %v1348_v18 = vadd.f32 %v1347_v14, %v5721_v58  ;;  %v1156_v19 = vpop.f32.mrb[10].mxu1  ;;  %v1349_v20 = vpop.f32.mrb[74].mxu0  ;;  %v1745_v21 = vpack.c.bf16 %v1625_v7, %v1621_v5  ;;  %2396 = vmatpush1.bf16.msra.mxu1 %v5032_v63  ;;  %v5749_v26 = vpack.c.bf16 %v1627_v8, %v1623_v6  ;;  %v5041_v6 = vld [vmem:[#allocation6 + $0x140] ss:$8 sps:$4 sm:$0xff]   ;;  %v5046_v7 = vld [vmem:[#allocation6 + $0x154] ss:$8 sps:$4 sm:$0xff]  }
 0x24d   :  { %v1500_v29 = vmul.f32 0.01, %v1153_v11  ;;  %v1502_v30 = vmul.f32 0.01, %v1346_v12  ;;  %v1157_v31 = vadd.f32 %v1156_v19, %v5714_v55  ;;  %v1350_v32 = vadd.f32 %v1349_v20, %v5716_v56  ;;  %v1158_v33 = vpop.f32.mrb[11].mxu1  ;;  %v1351_v35 = vpop.f32.mrb[75].mxu0  ;;  %2397 = vmatprep.subr.bf16.mxu1 %v5037_v4 }
 0x24e   :  { %v1501_v36 = vmul.f32 0.01, %v1155_v17  ;;  %v1503_v37 = vmul.f32 0.01, %v1348_v18  ;;  %v1159_v38 = vadd.f32 %v1158_v33, %v5719_v57  ;;  %v1352_v39 = vadd.f32 %v1351_v35, %v5721_v58  ;;  %2242 = vmatprep.mubr.bf16.mxu1 %v1745_v21  ;;  %v5049_v35 = vld [vmem:[#allocation6 + $0x164] ss:$8 sps:$4 sm:$0xff]  }
 0x24f   :  { %v1504_v40 = vmul.f32 0.01, %v1157_v31  ;;  %v1506_v41 = vmul.f32 0.01, %v1350_v32  ;;  %2243 = vmatmul.mubr.bf16.gmra.mrb[68].mxu1 %v1744_v15  ;;  %v1628_v45 = vmax.f32 %v1153_v11, %v1500_v29  ;;  %v1630_v47 = vmax.f32 %v1346_v12, %v1502_v30  ;;  %v5044_v29 = vld [vmem:[#allocation6 + $0x150] ss:$8 sps:$4 sm:$0xff]  }
 0x250   :  { %v1505_v42 = vmul.f32 0.01, %v1159_v38  ;;  %v1507_v43 = vmul.f32 0.01, %v1352_v39  ;;  %2398 = vmatpush1.bf16.msra.mxu1 %v5035_v22  ;;  %v1629_v51 = vmax.f32 %v1155_v17, %v1501_v36  ;;  %v1631_v52 = vmax.f32 %v1348_v18, %v1503_v37 }
 0x251   :  { %v1632_v48 = vmax.f32 %v1157_v31, %v1504_v40  ;;  %v1634_v49 = vmax.f32 %v1350_v32, %v1506_v41  ;;  %2399 = vmatprep.subr.bf16.mxu1 %v5040_v23 }
 0x252   :  { %v1633_v53 = vmax.f32 %v1159_v38, %v1505_v42  ;;  %v1635_v27 = vmax.f32 %v1352_v39, %v1507_v43  ;;  %v1162_v28 = vpop.f32.mrb[12].mxu1  ;;  %v1355_v54 = vpop.f32.mrb[76].mxu0 }
 0x253   :  { %v1163_v59 = vadd.f32 %v1162_v28, %v5714_v55  ;;  %v1356_v60 = vadd.f32 %v1355_v54, %v5716_v56  ;;  %v1164_v61 = vpop.f32.mrb[13].mxu1  ;;  %v1357_v62 = vpop.f32.mrb[77].mxu0  ;;  %v1748_v63 = vpack.c.bf16 %v1632_v48, %v1628_v45  ;;  %v5757_v1 = vpack.c.bf16 %v1634_v49, %v1630_v47  ;;  %v5052_v28 = vld [vmem:[#allocation6 + $0x174] ss:$8 sps:$4 sm:$0xff]  }
 0x254   :  { %v1165_v24 = vadd.f32 %v1164_v61, %v5719_v57  ;;  %v1358_v2 = vadd.f32 %v1357_v62, %v5721_v58  ;;  %v1166_v3 = vpop.f32.mrb[14].mxu1  ;;  %v1359_v4 = vpop.f32.mrb[78].mxu0  ;;  %v1749_v5 = vpack.c.bf16 %v1633_v53, %v1629_v51  ;;  %2400 = vmatpush1.bf16.msra.mxu1 %v5038_v44  ;;  %v5761_v8 = vpack.c.bf16 %v1635_v27, %v1631_v52  ;;  %v5047_v27 = vld [vmem:[#allocation6 + $0x160] ss:$8 sps:$4 sm:$0xff]  }
 0x255   :  { %v1508_v9 = vmul.f32 0.01, %v1163_v59  ;;  %v1510_v10 = vmul.f32 0.01, %v1356_v60  ;;  %v1167_v11 = vadd.f32 %v1166_v3, %v5714_v55  ;;  %v1360_v12 = vadd.f32 %v1359_v4, %v5716_v56  ;;  %v1168_v13 = vpop.f32.mrb[15].mxu1  ;;  %v1361_v14 = vpop.f32.mrb[79].mxu0  ;;  %2401 = vmatprep.subr.bf16.mxu1 %v5043_v50 }
 0x256   :  { %v1509_v15 = vmul.f32 0.01, %v1165_v24  ;;  %v1511_v17 = vmul.f32 0.01, %v1358_v2  ;;  %v1169_v18 = vadd.f32 %v1168_v13, %v5719_v57  ;;  %v1362_v19 = vadd.f32 %v1361_v14, %v5721_v58  ;;  %2252 = vmatprep.mubr.bf16.mxu1 %v1749_v5 }
 0x257   :  { %v1512_v20 = vmul.f32 0.01, %v1167_v11  ;;  %v1514_v21 = vmul.f32 0.01, %v1360_v12  ;;  %2253 = vmatmul.mubr.bf16.gmra.mrb[72].mxu1 %v1748_v63  ;;  %v1636_v30 = vmax.f32 %v1163_v59, %v1508_v9  ;;  %v1638_v31 = vmax.f32 %v1356_v60, %v1510_v10 }
 0x258   :  { %v1513_v22 = vmul.f32 0.01, %v1169_v18  ;;  %v1515_v23 = vmul.f32 0.01, %v1362_v19  ;;  %2402 = vmatpush1.bf16.msra.mxu1 %v5041_v6  ;;  %v1637_v36 = vmax.f32 %v1165_v24, %v1509_v15  ;;  %v1639_v37 = vmax.f32 %v1358_v2, %v1511_v17  ;;  %v5055_v17 = vld [vmem:[#allocation6 + $0x184] ss:$8 sps:$4 sm:$0xff]  }
 0x259   :  { %v1640_v32 = vmax.f32 %v1167_v11, %v1512_v20  ;;  %v1642_v33 = vmax.f32 %v1360_v12, %v1514_v21  ;;  %2403 = vmatprep.subr.bf16.mxu1 %v5046_v7  ;;  %v5050_v11 = vld [vmem:[#allocation6 + $0x170] ss:$8 sps:$4 sm:$0xff]  }
 0x25a   :  { %v1641_v38 = vmax.f32 %v1169_v18, %v1513_v22  ;;  %v1643_v39 = vmax.f32 %v1362_v19, %v1515_v23  ;;  %v1172_v40 = vpop.f32.mrb[16].mxu1  ;;  %v1365_v41 = vpop.f32.mrb[80].mxu0 }
 0x25b   :  { %v1173_v42 = vadd.f32 %v1172_v40, %v5714_v55  ;;  %v1366_v43 = vadd.f32 %v1365_v41, %v5716_v56  ;;  %v1174_v44 = vpop.f32.mrb[17].mxu1  ;;  %v1367_v45 = vpop.f32.mrb[81].mxu0  ;;  %v1752_v47 = vpack.c.bf16 %v1640_v32, %v1636_v30  ;;  %v5769_v48 = vpack.c.bf16 %v1642_v33, %v1638_v31  ;;  %v5053_v41 = vld [vmem:[#allocation6 + $0x180] ss:$8 sps:$4 sm:$0xff]  }
 0x25c   :  { %v1175_v49 = vadd.f32 %v1174_v44, %v5719_v57  ;;  %v1368_v50 = vadd.f32 %v1367_v45, %v5721_v58  ;;  %v1176_v51 = vpop.f32.mrb[18].mxu1  ;;  %v1369_v52 = vpop.f32.mrb[82].mxu0  ;;  %v1753_v53 = vpack.c.bf16 %v1641_v38, %v1637_v36  ;;  %2404 = vmatpush1.bf16.msra.mxu1 %v5044_v29  ;;  %v5773_v54 = vpack.c.bf16 %v1643_v39, %v1639_v37 }
 0x25d   :  { %v1516_v59 = vmul.f32 0.01, %v1173_v42  ;;  %v1518_v60 = vmul.f32 0.01, %v1366_v43  ;;  %v1177_v61 = vadd.f32 %v1176_v51, %v5714_v55  ;;  %v1370_v62 = vadd.f32 %v1369_v52, %v5716_v56  ;;  %v1178_v63 = vpop.f32.mrb[19].mxu1  ;;  %v1371_v24 = vpop.f32.mrb[83].mxu0  ;;  %2405 = vmatprep.subr.bf16.mxu1 %v5049_v35 }
 0x25e   :  { %v1517_v2 = vmul.f32 0.01, %v1175_v49  ;;  %v1519_v3 = vmul.f32 0.01, %v1368_v50  ;;  %v1179_v4 = vadd.f32 %v1178_v63, %v5719_v57  ;;  %v1372_v5 = vadd.f32 %v1371_v24, %v5721_v58  ;;  %2262 = vmatprep.mubr.bf16.mxu1 %v1753_v53  ;;  %v5056_v63 = vld [vmem:[#allocation6 + $0x190] ss:$8 sps:$4 sm:$0xff]  }
 0x25f   :  { %v1520_v6 = vmul.f32 0.01, %v1177_v61  ;;  %v1522_v7 = vmul.f32 0.01, %v1370_v62  ;;  %2263 = vmatmul.mubr.bf16.gmra.mrb[76].mxu1 %v1752_v47  ;;  %v1644_v12 = vmax.f32 %v1173_v42, %v1516_v59  ;;  %v1646_v13 = vmax.f32 %v1366_v43, %v1518_v60  ;;  %v5058_v42 = vld [vmem:[#allocation6 + $0x194] ss:$8 sps:$4 sm:$0xff]  }
 0x260   :  { %v1521_v9 = vmul.f32 0.01, %v1179_v4  ;;  %v1523_v10 = vmul.f32 0.01, %v1372_v5  ;;  %2406 = vmatpush1.bf16.msra.mxu1 %v5047_v27  ;;  %v1645_v18 = vmax.f32 %v1175_v49, %v1517_v2  ;;  %v1647_v19 = vmax.f32 %v1368_v50, %v1519_v3 }
 0x261   :  { %v1648_v14 = vmax.f32 %v1177_v61, %v1520_v6  ;;  %v1650_v15 = vmax.f32 %v1370_v62, %v1522_v7  ;;  %2407 = vmatprep.subr.bf16.mxu1 %v5052_v28 }
 0x262   :  { %v1649_v20 = vmax.f32 %v1179_v4, %v1521_v9  ;;  %v1651_v21 = vmax.f32 %v1372_v5, %v1523_v10  ;;  %v1182_v22 = vpop.f32.mrb[20].mxu1  ;;  %v1375_v23 = vpop.f32.mrb[84].mxu0  ;;  %v5061_v5 = vld [vmem:[#allocation6 + $0x1a4] ss:$8 sps:$4 sm:$0xff]  }
 0x263   :  { %v1183_v29 = vadd.f32 %v1182_v22, %v5714_v55  ;;  %v1376_v30 = vadd.f32 %v1375_v23, %v5716_v56  ;;  %v1184_v31 = vpop.f32.mrb[21].mxu1  ;;  %v1377_v32 = vpop.f32.mrb[85].mxu0  ;;  %v1756_v33 = vpack.c.bf16 %v1648_v14, %v1644_v12  ;;  %v5781_v35 = vpack.c.bf16 %v1650_v15, %v1646_v13 }
 0x264   :  { %v1185_v36 = vadd.f32 %v1184_v31, %v5719_v57  ;;  %v1378_v37 = vadd.f32 %v1377_v32, %v5721_v58  ;;  %v1186_v38 = vpop.f32.mrb[22].mxu1  ;;  %v1379_v39 = vpop.f32.mrb[86].mxu0  ;;  %v1757_v40 = vpack.c.bf16 %v1649_v20, %v1645_v18  ;;  %2408 = vmatpush1.bf16.msra.mxu1 %v5050_v11  ;;  %v5785_v43 = vpack.c.bf16 %v1651_v21, %v1647_v19  ;;  %v5064_v31 = vld [vmem:[#allocation6 + $0x1b4] ss:$8 sps:$4 sm:$0xff]  }
 0x265   :  { %v1524_v44 = vmul.f32 0.01, %v1183_v29  ;;  %v1526_v45 = vmul.f32 0.01, %v1376_v30  ;;  %v1187_v47 = vadd.f32 %v1186_v38, %v5714_v55  ;;  %v1380_v49 = vadd.f32 %v1379_v39, %v5716_v56  ;;  %v1188_v50 = vpop.f32.mrb[23].mxu1  ;;  %v1381_v51 = vpop.f32.mrb[87].mxu0  ;;  %2409 = vmatprep.subr.bf16.mxu1 %v5055_v17 }
 0x266   :  { %v1525_v52 = vmul.f32 0.01, %v1185_v36  ;;  %v1527_v53 = vmul.f32 0.01, %v1378_v37  ;;  %v1189_v27 = vadd.f32 %v1188_v50, %v5719_v57  ;;  %v1382_v28 = vadd.f32 %v1381_v51, %v5721_v58  ;;  %2272 = vmatprep.mubr.bf16.mxu1 %v1757_v40 }
 0x267   :  { %v1528_v59 = vmul.f32 0.01, %v1187_v47  ;;  %v1530_v60 = vmul.f32 0.01, %v1380_v49  ;;  %2273 = vmatmul.mubr.bf16.gmra.mrb[80].mxu1 %v1756_v33  ;;  %v1652_v24 = vmax.f32 %v1183_v29, %v1524_v44  ;;  %v1654_v2 = vmax.f32 %v1376_v30, %v1526_v45  ;;  %v5059_v30 = vld [vmem:[#allocation6 + $0x1a0] ss:$8 sps:$4 sm:$0xff]  }
 0x268   :  { %v1529_v61 = vmul.f32 0.01, %v1189_v27  ;;  %v1531_v62 = vmul.f32 0.01, %v1382_v28  ;;  %2410 = vmatpush1.bf16.msra.mxu1 %v5053_v41  ;;  %v1653_v6 = vmax.f32 %v1185_v36, %v1525_v52  ;;  %v1655_v7 = vmax.f32 %v1378_v37, %v1527_v53  ;;  %v5062_v52 = vld [vmem:[#allocation6 + $0x1b0] ss:$8 sps:$4 sm:$0xff]  }
 0x269   :  { %v1656_v3 = vmax.f32 %v1187_v47, %v1528_v59  ;;  %v1658_v4 = vmax.f32 %v1380_v49, %v1530_v60  ;;  %2411 = vmatprep.subr.bf16.mxu1 %v5058_v42  ;;  %v5067_v60 = vld [vmem:[#allocation6 + $0x1c4] ss:$8 sps:$4 sm:$0xff]  }
 0x26a   :  { %v1657_v9 = vmax.f32 %v1189_v27, %v1529_v61  ;;  %v1659_v10 = vmax.f32 %v1382_v28, %v1531_v62  ;;  %v1192_v11 = vpop.f32.mrb[24].mxu1  ;;  %v1385_v12 = vpop.f32.mrb[88].mxu0 }
 0x26b   :  { %v1193_v13 = vadd.f32 %v1192_v11, %v5714_v55  ;;  %v1386_v14 = vadd.f32 %v1385_v12, %v5716_v56  ;;  %v1194_v15 = vpop.f32.mrb[25].mxu1  ;;  %v1387_v17 = vpop.f32.mrb[89].mxu0  ;;  %v1760_v18 = vpack.c.bf16 %v1656_v3, %v1652_v24  ;;  %v5793_v19 = vpack.c.bf16 %v1658_v4, %v1654_v2 }
 0x26c   :  { %v1195_v20 = vadd.f32 %v1194_v15, %v5719_v57  ;;  %v1388_v21 = vadd.f32 %v1387_v17, %v5721_v58  ;;  %v1196_v22 = vpop.f32.mrb[26].mxu1  ;;  %v1389_v23 = vpop.f32.mrb[90].mxu0  ;;  %v1761_v29 = vpack.c.bf16 %v1657_v9, %v1653_v6  ;;  %2412 = vmatpush1.bf16.msra.mxu1 %v5056_v63  ;;  %v5797_v32 = vpack.c.bf16 %v1659_v10, %v1655_v7  ;;  %v5065_v17 = vld [vmem:[#allocation6 + $0x1c0] ss:$8 sps:$4 sm:$0xff]  }
 0x26d   :  { %v1532_v33 = vmul.f32 0.01, %v1193_v13  ;;  %v1534_v36 = vmul.f32 0.01, %v1386_v14  ;;  %v1197_v37 = vadd.f32 %v1196_v22, %v5714_v55  ;;  %v1390_v38 = vadd.f32 %v1389_v23, %v5716_v56  ;;  %v1198_v39 = vpop.f32.mrb[27].mxu1  ;;  %v1391_v40 = vpop.f32.mrb[91].mxu0  ;;  %2413 = vmatprep.subr.bf16.mxu1 %v5061_v5 }
 0x26e   :  { %v1533_v41 = vmul.f32 0.01, %v1195_v20  ;;  %v1535_v42 = vmul.f32 0.01, %v1388_v21  ;;  %v1199_v44 = vadd.f32 %v1198_v39, %v5719_v57  ;;  %v1392_v45 = vadd.f32 %v1391_v40, %v5721_v58  ;;  %2282 = vmatprep.mubr.bf16.mxu1 %v1761_v29 }
 0x26f   :  { %v1536_v47 = vmul.f32 0.01, %v1197_v37  ;;  %v1538_v49 = vmul.f32 0.01, %v1390_v38  ;;  %2283 = vmatmul.mubr.bf16.gmra.mrb[84].mxu1 %v1760_v18  ;;  %v1660_v53 = vmax.f32 %v1193_v13, %v1532_v33  ;;  %v1662_v27 = vmax.f32 %v1386_v14, %v1534_v36  ;;  %v5070_v18 = vld [vmem:[#allocation6 + $0x1d4] ss:$8 sps:$4 sm:$0xff]  }
 0x270   :  { %v1537_v50 = vmul.f32 0.01, %v1199_v44  ;;  %v1539_v51 = vmul.f32 0.01, %v1392_v45  ;;  %2414 = vmatpush1.bf16.msra.mxu1 %v5059_v30  ;;  %v1661_v61 = vmax.f32 %v1195_v20, %v1533_v41  ;;  %v1663_v62 = vmax.f32 %v1388_v21, %v1535_v42 }
 0x271   :  { %v1664_v28 = vmax.f32 %v1197_v37, %v1536_v47  ;;  %v1666_v59 = vmax.f32 %v1390_v38, %v1538_v49  ;;  %2415 = vmatprep.subr.bf16.mxu1 %v5064_v31 }
 0x272   :  { %v1665_v63 = vmax.f32 %v1199_v44, %v1537_v50  ;;  %v1667_v24 = vmax.f32 %v1392_v45, %v1539_v51  ;;  %v1202_v2 = vpop.f32.mrb[28].mxu1  ;;  %v1395_v3 = vpop.f32.mrb[92].mxu0  ;;  %v5068_v44 = vld [vmem:[#allocation6 + $0x1d0] ss:$8 sps:$4 sm:$0xff]   ;;  %v5073_v51 = vld [vmem:[#allocation6 + $0x1e4] ss:$8 sps:$4 sm:$0xff]  }
 0x273   :  { %v1203_v4 = vadd.f32 %v1202_v2, %v5714_v55  ;;  %v1396_v5 = vadd.f32 %v1395_v3, %v5716_v56  ;;  %v1204_v6 = vpop.f32.mrb[29].mxu1  ;;  %v1397_v7 = vpop.f32.mrb[93].mxu0  ;;  %v1764_v9 = vpack.c.bf16 %v1664_v28, %v1660_v53  ;;  %v5805_v10 = vpack.c.bf16 %v1666_v59, %v1662_v27 }
 0x274   :  { %v1205_v11 = vadd.f32 %v1204_v6, %v5719_v57  ;;  %v1398_v12 = vadd.f32 %v1397_v7, %v5721_v58  ;;  %v1206_v13 = vpop.f32.mrb[30].mxu1  ;;  %v1399_v14 = vpop.f32.mrb[94].mxu0  ;;  %v1765_v15 = vpack.c.bf16 %v1665_v63, %v1661_v61  ;;  %2416 = vmatpush1.bf16.msra.mxu1 %v5062_v52  ;;  %v5809_v20 = vpack.c.bf16 %v1667_v24, %v1663_v62 }
 0x275   :  { %v1540_v21 = vmul.f32 0.01, %v1203_v4  ;;  %v1542_v22 = vmul.f32 0.01, %v1396_v5  ;;  %v1207_v23 = vadd.f32 %v1206_v13, %v5714_v55  ;;  %v1400_v29 = vadd.f32 %v1399_v14, %v5716_v56  ;;  %v1208_v30 = vpop.f32.mrb[31].mxu1  ;;  %v1401_v31 = vpop.f32.mrb[95].mxu0  ;;  %2417 = vmatprep.subr.bf16.mxu1 %v5067_v60 }
 0x276   :  { %v1541_v33 = vmul.f32 0.01, %v1205_v11  ;;  %v1543_v36 = vmul.f32 0.01, %v1398_v12  ;;  %v1209_v37 = vadd.f32 %v1208_v30, %v5719_v57  ;;  %v1402_v38 = vadd.f32 %v1401_v31, %v5721_v58  ;;  %2292 = vmatprep.mubr.bf16.mxu1 %v1765_v15 }
 0x277   :  { %v1544_v39 = vmul.f32 0.01, %v1207_v23  ;;  %v1546_v40 = vmul.f32 0.01, %v1400_v29  ;;  %2293 = vmatmul.mubr.bf16.gmra.mrb[88].mxu1 %v1764_v9  ;;  %v1668_v45 = vmax.f32 %v1203_v4, %v1540_v21  ;;  %v1670_v47 = vmax.f32 %v1396_v5, %v1542_v22 }
 0x278   :  { %v1545_v41 = vmul.f32 0.01, %v1209_v37  ;;  %v1547_v42 = vmul.f32 0.01, %v1402_v38  ;;  %2418 = vmatpush1.bf16.msra.mxu1 %v5065_v17  ;;  %v1669_v52 = vmax.f32 %v1205_v11, %v1541_v33  ;;  %v1671_v53 = vmax.f32 %v1398_v12, %v1543_v36  ;;  %v5071_v11 = vld [vmem:[#allocation6 + $0x1e0] ss:$8 sps:$4 sm:$0xff]  }
 0x279   :  { %v1672_v49 = vmax.f32 %v1207_v23, %v1544_v39  ;;  %v1674_v50 = vmax.f32 %v1400_v29, %v1546_v40  ;;  %2419 = vmatprep.subr.bf16.mxu1 %v5070_v18  ;;  %v5076_v12 = vld [vmem:[#allocation6 + $0x1f4] ss:$8 sps:$4 sm:$0xff]   ;;  %v5074_v39 = vld [vmem:[#allocation6 + $0x1f0] ss:$8 sps:$4 sm:$0xff]  }
 0x27a   :  { %v1673_v27 = vmax.f32 %v1209_v37, %v1545_v41  ;;  %v1675_v28 = vmax.f32 %v1402_v38, %v1547_v42  ;;  %v1212_v59 = vpop.f32.mrb[32].mxu1  ;;  %v1405_v60 = vpop.f32.mrb[96].mxu0 }
 0x27b   :  { %v1213_v61 = vadd.f32 %v1212_v59, %v5714_v55  ;;  %v1406_v62 = vadd.f32 %v1405_v60, %v5716_v56  ;;  %v1214_v63 = vpop.f32.mrb[33].mxu1  ;;  %v1407_v24 = vpop.f32.mrb[97].mxu0  ;;  %v1768_v2 = vpack.c.bf16 %v1672_v49, %v1668_v45  ;;  %v5817_v3 = vpack.c.bf16 %v1674_v50, %v1670_v47 }
 0x27c   :  { %v1215_v4 = vadd.f32 %v1214_v63, %v5719_v57  ;;  %v1408_v5 = vadd.f32 %v1407_v24, %v5721_v58  ;;  %v1216_v6 = vpop.f32.mrb[34].mxu1  ;;  %v1409_v7 = vpop.f32.mrb[98].mxu0  ;;  %v1769_v9 = vpack.c.bf16 %v1673_v27, %v1669_v52  ;;  %2420 = vmatpush1.bf16.msra.mxu1 %v5068_v44  ;;  %v5821_v13 = vpack.c.bf16 %v1675_v28, %v1671_v53 }
 0x27d   :  { %v1548_v14 = vmul.f32 0.01, %v1213_v61  ;;  %v1550_v15 = vmul.f32 0.01, %v1406_v62  ;;  %v1217_v17 = vadd.f32 %v1216_v6, %v5714_v55  ;;  %v1410_v18 = vadd.f32 %v1409_v7, %v5716_v56  ;;  %v1218_v21 = vpop.f32.mrb[35].mxu1  ;;  %v1411_v22 = vpop.f32.mrb[99].mxu0  ;;  %2421 = vmatprep.subr.bf16.mxu1 %v5073_v51 }
 0x27e   :  { %v1549_v23 = vmul.f32 0.01, %v1215_v4  ;;  %v1551_v29 = vmul.f32 0.01, %v1408_v5  ;;  %v1219_v30 = vadd.f32 %v1218_v21, %v5719_v57  ;;  %v1412_v31 = vadd.f32 %v1411_v22, %v5721_v58  ;;  %2302 = vmatprep.mubr.bf16.mxu1 %v1769_v9 }
 0x27f   :  { %v1552_v33 = vmul.f32 0.01, %v1217_v17  ;;  %v1554_v36 = vmul.f32 0.01, %v1410_v18  ;;  %2303 = vmatmul.mubr.bf16.gmra.mrb[92].mxu1 %v1768_v2  ;;  %v1676_v40 = vmax.f32 %v1213_v61, %v1548_v14  ;;  %v1678_v41 = vmax.f32 %v1406_v62, %v1550_v15 }
 0x280   :  { %v1553_v37 = vmul.f32 0.01, %v1219_v30  ;;  %v1555_v38 = vmul.f32 0.01, %v1412_v31  ;;  %2422 = vmatpush1.bf16.msra.mxu1 %v5071_v11  ;;  %v1677_v45 = vmax.f32 %v1215_v4, %v1549_v23  ;;  %v1679_v47 = vmax.f32 %v1408_v5, %v1551_v29 }
 0x281   :  { %v1680_v42 = vmax.f32 %v1217_v17, %v1552_v33  ;;  %v1682_v44 = vmax.f32 %v1410_v18, %v1554_v36  ;;  %2423 = vmatprep.subr.bf16.mxu1 %v5076_v12 }
 0x282   :  { %v1681_v49 = vmax.f32 %v1219_v30, %v1553_v37  ;;  %v1683_v50 = vmax.f32 %v1412_v31, %v1555_v38  ;;  %v1222_v51 = vpop.f32.mrb[36].mxu1  ;;  %v1415_v52 = vpop.f32.mrb[100].mxu0 }
 0x283   :  { %v1223_v53 = vadd.f32 %v1222_v51, %v5714_v55  ;;  %v1416_v27 = vadd.f32 %v1415_v52, %v5716_v56  ;;  %v1224_v28 = vpop.f32.mrb[37].mxu1  ;;  %v1417_v59 = vpop.f32.mrb[101].mxu0  ;;  %v1772_v60 = vpack.c.bf16 %v1680_v42, %v1676_v40  ;;  %v5829_v63 = vpack.c.bf16 %v1682_v44, %v1678_v41 }
 0x284   :  { %v1225_v61 = vadd.f32 %v1224_v28, %v5719_v57  ;;  %v1418_v62 = vadd.f32 %v1417_v59, %v5721_v58  ;;  %v1226_v24 = vpop.f32.mrb[38].mxu1  ;;  %v1419_v2 = vpop.f32.mrb[102].mxu0  ;;  %v1773_v4 = vpack.c.bf16 %v1681_v49, %v1677_v45  ;;  %2424 = vmatpush1.bf16.msra.mxu1 %v5074_v39  ;;  %v5833_v5 = vpack.c.bf16 %v1683_v50, %v1679_v47 }
 0x285   :  { %v1556_v6 = vmul.f32 0.01, %v1223_v53  ;;  %v1558_v7 = vmul.f32 0.01, %v1416_v27  ;;  %v1227_v9 = vadd.f32 %v1226_v24, %v5714_v55  ;;  %v1420_v11 = vadd.f32 %v1419_v2, %v5716_v56  ;;  %v1228_v12 = vpop.f32.mrb[39].mxu1  ;;  %v1421_v14 = vpop.f32.mrb[103].mxu0 }
 0x286   :  { %v1557_v15 = vmul.f32 0.01, %v1225_v61  ;;  %v1559_v17 = vmul.f32 0.01, %v1418_v62  ;;  %v1229_v18 = vadd.f32 %v1228_v12, %v5719_v57  ;;  %v1422_v21 = vadd.f32 %v1421_v14, %v5721_v58  ;;  %2312 = vmatprep.mubr.bf16.mxu1 %v1773_v4 }
 0x287   :  { %v1560_v22 = vmul.f32 0.01, %v1227_v9  ;;  %v1562_v23 = vmul.f32 0.01, %v1420_v11  ;;  %2313 = vmatmul.mubr.bf16.gmra.mrb[96].mxu1 %v1772_v60  ;;  %v1684_v31 = vmax.f32 %v1223_v53, %v1556_v6  ;;  %v1686_v33 = vmax.f32 %v1416_v27, %v1558_v7 }
 0x288   :  { %v1561_v29 = vmul.f32 0.01, %v1229_v18  ;;  %v1563_v30 = vmul.f32 0.01, %v1422_v21  ;;  %v1685_v38 = vmax.f32 %v1225_v61, %v1557_v15  ;;  %v1687_v39 = vmax.f32 %v1418_v62, %v1559_v17 }
 0x289   :  { %v1688_v36 = vmax.f32 %v1227_v9, %v1560_v22  ;;  %v1690_v37 = vmax.f32 %v1420_v11, %v1562_v23 }
 0x28a   :  { %v1689_v40 = vmax.f32 %v1229_v18, %v1561_v29  ;;  %v1691_v41 = vmax.f32 %v1422_v21, %v1563_v30  ;;  %v1232_v42 = vpop.f32.mrb[40].mxu1  ;;  %v1425_v44 = vpop.f32.mrb[104].mxu0 }
 0x28b   :  { %v1233_v45 = vadd.f32 %v1232_v42, %v5714_v55  ;;  %v1426_v47 = vadd.f32 %v1425_v44, %v5716_v56  ;;  %v1234_v49 = vpop.f32.mrb[41].mxu1  ;;  %v1427_v50 = vpop.f32.mrb[105].mxu0  ;;  %v1776_v51 = vpack.c.bf16 %v1688_v36, %v1684_v31  ;;  %v5841_v52 = vpack.c.bf16 %v1690_v37, %v1686_v33 }
 0x28c   :  { %v1235_v53 = vadd.f32 %v1234_v49, %v5719_v57  ;;  %v1428_v27 = vadd.f32 %v1427_v50, %v5721_v58  ;;  %v1236_v28 = vpop.f32.mrb[42].mxu1  ;;  %v1429_v59 = vpop.f32.mrb[106].mxu0  ;;  %v1777_v60 = vpack.c.bf16 %v1689_v40, %v1685_v38  ;;  %v5845_v61 = vpack.c.bf16 %v1691_v41, %v1687_v39 }
 0x28d   :  { %v1564_v62 = vmul.f32 0.01, %v1233_v45  ;;  %v1566_v24 = vmul.f32 0.01, %v1426_v47  ;;  %v1237_v2 = vadd.f32 %v1236_v28, %v5714_v55  ;;  %v1430_v4 = vadd.f32 %v1429_v59, %v5716_v56  ;;  %v1238_v6 = vpop.f32.mrb[43].mxu1  ;;  %v1431_v7 = vpop.f32.mrb[107].mxu0 }
 0x28e   :  { %v1565_v9 = vmul.f32 0.01, %v1235_v53  ;;  %v1567_v11 = vmul.f32 0.01, %v1428_v27  ;;  %v1239_v12 = vadd.f32 %v1238_v6, %v5719_v57  ;;  %v1432_v14 = vadd.f32 %v1431_v7, %v5721_v58  ;;  %2322 = vmatprep.mubr.bf16.mxu1 %v1777_v60 }
 0x28f   :  { %v1568_v15 = vmul.f32 0.01, %v1237_v2  ;;  %v1570_v17 = vmul.f32 0.01, %v1430_v4  ;;  %2323 = vmatmul.mubr.bf16.gmra.mrb[100].mxu1 %v1776_v51  ;;  %v1692_v22 = vmax.f32 %v1233_v45, %v1564_v62  ;;  %v1694_v23 = vmax.f32 %v1426_v47, %v1566_v24 }
 0x290   :  { %v1569_v18 = vmul.f32 0.01, %v1239_v12  ;;  %v1571_v21 = vmul.f32 0.01, %v1432_v14  ;;  %v1693_v31 = vmax.f32 %v1235_v53, %v1565_v9  ;;  %v1695_v33 = vmax.f32 %v1428_v27, %v1567_v11 }
 0x291   :  { %v1696_v29 = vmax.f32 %v1237_v2, %v1568_v15  ;;  %v1698_v30 = vmax.f32 %v1430_v4, %v1570_v17 }
 0x292   :  { %v1697_v36 = vmax.f32 %v1239_v12, %v1569_v18  ;;  %v1699_v37 = vmax.f32 %v1432_v14, %v1571_v21  ;;  %v1242_v38 = vpop.f32.mrb[44].mxu1  ;;  %v1435_v39 = vpop.f32.mrb[108].mxu0 }
 0x293   :  { %v1243_v40 = vadd.f32 %v1242_v38, %v5714_v55  ;;  %v1436_v41 = vadd.f32 %v1435_v39, %v5716_v56  ;;  %v1244_v42 = vpop.f32.mrb[45].mxu1  ;;  %v1437_v44 = vpop.f32.mrb[109].mxu0  ;;  %v1780_v49 = vpack.c.bf16 %v1696_v29, %v1692_v22  ;;  %v5853_v50 = vpack.c.bf16 %v1698_v30, %v1694_v23 }
 0x294   :  { %v1245_v45 = vadd.f32 %v1244_v42, %v5719_v57  ;;  %v1438_v47 = vadd.f32 %v1437_v44, %v5721_v58  ;;  %v1246_v51 = vpop.f32.mrb[46].mxu1  ;;  %v1439_v53 = vpop.f32.mrb[110].mxu0  ;;  %v1781_v27 = vpack.c.bf16 %v1697_v36, %v1693_v31  ;;  %v5857_v28 = vpack.c.bf16 %v1699_v37, %v1695_v33 }
 0x295   :  { %v1572_v59 = vmul.f32 0.01, %v1243_v40  ;;  %v1574_v60 = vmul.f32 0.01, %v1436_v41  ;;  %v1247_v62 = vadd.f32 %v1246_v51, %v5714_v55  ;;  %v1440_v24 = vadd.f32 %v1439_v53, %v5716_v56  ;;  %v1248_v2 = vpop.f32.mrb[47].mxu1  ;;  %v1441_v4 = vpop.f32.mrb[111].mxu0 }
 0x296   :  { %v1573_v6 = vmul.f32 0.01, %v1245_v45  ;;  %v1575_v7 = vmul.f32 0.01, %v1438_v47  ;;  %v1249_v9 = vadd.f32 %v1248_v2, %v5719_v57  ;;  %v1442_v11 = vadd.f32 %v1441_v4, %v5721_v58  ;;  %2332 = vmatprep.mubr.bf16.mxu1 %v1781_v27 }
 0x297   :  { %v1576_v12 = vmul.f32 0.01, %v1247_v62  ;;  %v1578_v14 = vmul.f32 0.01, %v1440_v24  ;;  %2333 = vmatmul.mubr.bf16.gmra.mrb[104].mxu1 %v1780_v49  ;;  %v1700_v18 = vmax.f32 %v1243_v40, %v1572_v59  ;;  %v1702_v21 = vmax.f32 %v1436_v41, %v1574_v60 }
 0x298   :  { %v1577_v15 = vmul.f32 0.01, %v1249_v9  ;;  %v1579_v17 = vmul.f32 0.01, %v1442_v11  ;;  %v1701_v29 = vmax.f32 %v1245_v45, %v1573_v6  ;;  %v1703_v30 = vmax.f32 %v1438_v47, %v1575_v7 }
 0x299   :  { %v1704_v22 = vmax.f32 %v1247_v62, %v1576_v12  ;;  %v1706_v23 = vmax.f32 %v1440_v24, %v1578_v14 }
 0x29a   :  { %v1705_v31 = vmax.f32 %v1249_v9, %v1577_v15  ;;  %v1707_v33 = vmax.f32 %v1442_v11, %v1579_v17  ;;  %v1252_v36 = vpop.f32.mrb[48].mxu1  ;;  %v1445_v37 = vpop.f32.mrb[112].mxu0 }
 0x29b   :  { %v1253_v38 = vadd.f32 %v1252_v36, %v5714_v55  ;;  %v1446_v39 = vadd.f32 %v1445_v37, %v5716_v56  ;;  %v1254_v42 = vpop.f32.mrb[49].mxu1  ;;  %v1447_v44 = vpop.f32.mrb[113].mxu0  ;;  %v1784_v51 = vpack.c.bf16 %v1704_v22, %v1700_v18  ;;  %v5865_v49 = vpack.c.bf16 %v1706_v23, %v1702_v21  ;;  %v5077_v18 = vld [vmem:[#allocation7] ss:$8 sps:$4 sm:$0xff]  }
 0x29c   :  { %v1255_v40 = vadd.f32 %v1254_v42, %v5719_v57  ;;  %v1448_v41 = vadd.f32 %v1447_v44, %v5721_v58  ;;  %v1256_v53 = vpop.f32.mrb[50].mxu1  ;;  %v1449_v45 = vpop.f32.mrb[114].mxu0  ;;  %v1785_v47 = vpack.c.bf16 %v1705_v31, %v1701_v29  ;;  %v5869_v27 = vpack.c.bf16 %v1707_v33, %v1703_v30  ;;  %v5079_v30 = vld [vmem:[#allocation7 + $0x4] ss:$8 sps:$4 sm:$0xff]  }
 0x29d   :  { %v1580_v59 = vmul.f32 0.01, %v1253_v38  ;;  %v1582_v60 = vmul.f32 0.01, %v1446_v39  ;;  %v1257_v62 = vadd.f32 %v1256_v53, %v5714_v55  ;;  %v1450_v24 = vadd.f32 %v1449_v45, %v5716_v56  ;;  %v1258_v2 = vpop.f32.mrb[51].mxu1  ;;  %v1451_v4 = vpop.f32.mrb[115].mxu0  ;;  %2886 = vmatprep.subr.bf16.mxu0 %v5079_v30 }
 0x29e   :  { %v1581_v6 = vmul.f32 0.01, %v1255_v40  ;;  %v1583_v7 = vmul.f32 0.01, %v1448_v41  ;;  %v1259_v9 = vadd.f32 %v1258_v2, %v5719_v57  ;;  %v1452_v11 = vadd.f32 %v1451_v4, %v5721_v58  ;;  %2342 = vmatprep.mubr.bf16.mxu1 %v1785_v47  ;;  %2887 = vmatpush1.bf16.msra.mxu0 %v5077_v18 }
 0x29f   :  { %v1584_v12 = vmul.f32 0.01, %v1257_v62  ;;  %v1586_v14 = vmul.f32 0.01, %v1450_v24  ;;  %2343 = vmatmul.mubr.bf16.gmra.mrb[108].mxu1 %v1784_v51  ;;  %v1708_v21 = vmax.f32 %v1253_v38, %v1580_v59  ;;  %v1710_v22 = vmax.f32 %v1446_v39, %v1582_v60 }
 0x2a0   :  { %v1585_v15 = vmul.f32 0.01, %v1259_v9  ;;  %v1587_v17 = vmul.f32 0.01, %v1452_v11  ;;  %v1709_v31 = vmax.f32 %v1255_v40, %v1581_v6  ;;  %v1711_v33 = vmax.f32 %v1448_v41, %v1583_v7 }
 0x2a1   :  { %v1712_v23 = vmax.f32 %v1257_v62, %v1584_v12  ;;  %v1714_v29 = vmax.f32 %v1450_v24, %v1586_v14 }
 0x2a2   :  { %v1713_v36 = vmax.f32 %v1259_v9, %v1585_v15  ;;  %v1715_v37 = vmax.f32 %v1452_v11, %v1587_v17  ;;  %v1262_v42 = vpop.f32.mrb[52].mxu1  ;;  %v1455_v44 = vpop.f32.mrb[116].mxu0 }
 0x2a3   :  { %v1263_v53 = vadd.f32 %v1262_v42, %v5714_v55  ;;  %v1456_v45 = vadd.f32 %v1455_v44, %v5716_v56  ;;  %v1264_v47 = vpop.f32.mrb[53].mxu1  ;;  %v1457_v51 = vpop.f32.mrb[117].mxu0  ;;  %v1788_v2 = vpack.c.bf16 %v1712_v23, %v1708_v21  ;;  %v5877_v4 = vpack.c.bf16 %v1714_v29, %v1710_v22  ;;  %v5080_v29 = vld [vmem:[#allocation7 + $0x10] ss:$8 sps:$4 sm:$0xff]  }
 0x2a4   :  { %v1265_v38 = vadd.f32 %v1264_v47, %v5719_v57  ;;  %v1458_v39 = vadd.f32 %v1457_v51, %v5721_v58  ;;  %v1266_v40 = vpop.f32.mrb[54].mxu1  ;;  %v1459_v41 = vpop.f32.mrb[118].mxu0  ;;  %v1789_v59 = vpack.c.bf16 %v1713_v36, %v1709_v31  ;;  %v5881_v60 = vpack.c.bf16 %v1715_v37, %v1711_v33  ;;  %v5082_v37 = vld [vmem:[#allocation7 + $0x14] ss:$8 sps:$4 sm:$0xff]  }
 0x2a5   :  { %v1588_v62 = vmul.f32 0.01, %v1263_v53  ;;  %v1590_v24 = vmul.f32 0.01, %v1456_v45  ;;  %v1267_v6 = vadd.f32 %v1266_v40, %v5714_v55  ;;  %v1460_v7 = vadd.f32 %v1459_v41, %v5716_v56  ;;  %v1268_v9 = vpop.f32.mrb[55].mxu1  ;;  %v1461_v11 = vpop.f32.mrb[119].mxu0  ;;  %2888 = vmatprep.subr.bf16.mxu0 %v5082_v37 }
 0x2a6   :  { %v1589_v12 = vmul.f32 0.01, %v1265_v38  ;;  %v1591_v14 = vmul.f32 0.01, %v1458_v39  ;;  %v1269_v15 = vadd.f32 %v1268_v9, %v5719_v57  ;;  %v1462_v17 = vadd.f32 %v1461_v11, %v5721_v58  ;;  %2352 = vmatprep.mubr.bf16.mxu1 %v1789_v59  ;;  %2889 = vmatpush1.bf16.msra.mxu0 %v5080_v29 }
 0x2a7   :  { %v1592_v21 = vmul.f32 0.01, %v1267_v6  ;;  %v1594_v22 = vmul.f32 0.01, %v1460_v7  ;;  %2353 = vmatmul.mubr.bf16.gmra.mrb[112].mxu1 %v1788_v2  ;;  %v1716_v30 = vmax.f32 %v1263_v53, %v1588_v62  ;;  %v1718_v31 = vmax.f32 %v1456_v45, %v1590_v24 }
 0x2a8   :  { %v1593_v23 = vmul.f32 0.01, %v1269_v15  ;;  %v1595_v18 = vmul.f32 0.01, %v1462_v17  ;;  %v1717_v42 = vmax.f32 %v1265_v38, %v1589_v12  ;;  %v1719_v44 = vmax.f32 %v1458_v39, %v1591_v14 }
 0x2a9   :  { %v1720_v33 = vmax.f32 %v1267_v6, %v1592_v21  ;;  %v1722_v36 = vmax.f32 %v1460_v7, %v1594_v22 }
 0x2aa   :  { %v1721_v47 = vmax.f32 %v1269_v15, %v1593_v23  ;;  %v1723_v51 = vmax.f32 %v1462_v17, %v1595_v18  ;;  %v1272_v40 = vpop.f32.mrb[56].mxu1  ;;  %v1465_v41 = vpop.f32.mrb[120].mxu0 }
 0x2ab   :  { %v1273_v9 = vadd.f32 %v1272_v40, %v5714_v55  ;;  %v1466_v59 = vadd.f32 %v1465_v41, %v5716_v56  ;;  %v1274_v11 = vpop.f32.mrb[57].mxu1  ;;  %v1467_v2 = vpop.f32.mrb[121].mxu0  ;;  %v1792_v0 = vpack.c.bf16 %v1720_v33, %v1716_v30  ;;  %v5889_v25 = vpack.c.bf16 %v1722_v36, %v1718_v31  ;;  %v5083_v36 = vld [vmem:[#allocation7 + $0x20] ss:$8 sps:$4 sm:$0xff]  }
 0x2ac   :  { %v1275_v53 = vadd.f32 %v1274_v11, %v5719_v57  ;;  %v1468_v45 = vadd.f32 %v1467_v2, %v5721_v58  ;;  %v1276_v38 = vpop.f32.mrb[58].mxu1  ;;  %v1469_v39 = vpop.f32.mrb[122].mxu0  ;;  %v1793_v62 = vpack.c.bf16 %v1721_v47, %v1717_v42  ;;  %v5893_v24 = vpack.c.bf16 %v1723_v51, %v1719_v44  ;;  %v5085_v51 = vld [vmem:[#allocation7 + $0x24] ss:$8 sps:$4 sm:$0xff]  }
 0x2ad   :  { %6458 = vst [vmem:[#allocation19_spill] sm:$0xff] %v5889_v25  ;;  %v1596_v6 = vmul.f32 0.01, %v1273_v9  ;;  %v1598_v7 = vmul.f32 0.01, %v1466_v59  ;;  %v1277_v12 = vadd.f32 %v1276_v38, %v5714_v55  ;;  %v1470_v14 = vadd.f32 %v1469_v39, %v5716_v56  ;;  %v1278_v15 = vpop.f32.mrb[59].mxu1  ;;  %2890 = vmatprep.subr.bf16.mxu0 %v5085_v51 }
 0x2ae   :  { %6459 = vst [vmem:[#allocation20_spill] sm:$0xff] %v5893_v24  ;;  %v1471_v17 = vpop.f32.mrb[123].mxu0  ;;  %v1597_v21 = vmul.f32 0.01, %v1275_v53  ;;  %v1599_v22 = vmul.f32 0.01, %v1468_v45  ;;  %v1279_v23 = vadd.f32 %v1278_v15, %v5719_v57  ;;  %2362 = vmatprep.mubr.bf16.mxu1 %v1793_v62  ;;  %2891 = vmatpush1.bf16.msra.mxu0 %v5083_v36 }
 0x2af   :  { %v1472_v18 = vadd.f32 %v1471_v17, %v5721_v58  ;;  %v1600_v30 = vmul.f32 0.01, %v1277_v12  ;;  %v1602_v31 = vmul.f32 0.01, %v1470_v14  ;;  %2363 = vmatmul.mubr.bf16.gmra.mrb[116].mxu1 %v1792_v0  ;;  %v1724_v37 = vmax.f32 %v1273_v9, %v1596_v6 }
 0x2b0   :  { %v1601_v33 = vmul.f32 0.01, %v1279_v23  ;;  %v1726_v42 = vmax.f32 %v1466_v59, %v1598_v7  ;;  %v1725_v40 = vmax.f32 %v1275_v53, %v1597_v21  ;;  %v1727_v41 = vmax.f32 %v1468_v45, %v1599_v22 }
 0x2b1   :  { %v1603_v29 = vmul.f32 0.01, %v1472_v18  ;;  %v1728_v44 = vmax.f32 %v1277_v12, %v1600_v30  ;;  %v1730_v47 = vmax.f32 %v1470_v14, %v1602_v31 }
 0x2b2   :  { %v1729_v11 = vmax.f32 %v1279_v23, %v1601_v33  ;;  %v1282_v38 = vpop.f32.mrb[60].mxu1  ;;  %v1475_v39 = vpop.f32.mrb[124].mxu0 }
 0x2b3   :  { %v1731_v2 = vmax.f32 %v1472_v18, %v1603_v29  ;;  %v1283_v15 = vadd.f32 %v1282_v38, %v5714_v55  ;;  %v1476_v62 = vadd.f32 %v1475_v39, %v5716_v56  ;;  %v1284_v17 = vpop.f32.mrb[61].mxu1  ;;  %v1477_v0 = vpop.f32.mrb[125].mxu0  ;;  %v1796_v25 = vpack.c.bf16 %v1728_v44, %v1724_v37 }
 0x2b4   :  { %v5901_v24 = vpack.c.bf16 %v1730_v47, %v1726_v42  ;;  %v1285_v9 = vadd.f32 %v1284_v17, %v5719_v57  ;;  %v1478_v59 = vadd.f32 %v1477_v0, %v5721_v58  ;;  %v1286_v53 = vpop.f32.mrb[62].mxu1  ;;  %v1479_v45 = vpop.f32.mrb[126].mxu0  ;;  %v1797_v6 = vpack.c.bf16 %v1729_v11, %v1725_v40  ;;  %v5086_v47 = vld [vmem:[#allocation7 + $0x30] ss:$8 sps:$4 sm:$0xff]  }
 0x2b5   :  { %v5905_v7 = vpack.c.bf16 %v1731_v2, %v1727_v41  ;;  %v1604_v12 = vmul.f32 0.01, %v1283_v15  ;;  %v1606_v14 = vmul.f32 0.01, %v1476_v62  ;;  %v1287_v21 = vadd.f32 %v1286_v53, %v5714_v55  ;;  %v1288_v23 = vpop.f32.mrb[63].mxu1  ;;  %v1481_v18 = vpop.f32.mrb[127].mxu0 }
 0x2b6   :  { %v1480_v22 = vadd.f32 %v1479_v45, %v5716_v56  ;;  %v1605_v30 = vmul.f32 0.01, %v1285_v9  ;;  %v1607_v31 = vmul.f32 0.01, %v1478_v59  ;;  %v1289_v33 = vadd.f32 %v1288_v23, %v5719_v57  ;;  %2372 = vmatprep.mubr.bf16.mxu1 %v1797_v6  ;;  %v5088_v56 = vld [vmem:[#allocation7 + $0x34] ss:$8 sps:$4 sm:$0xff]  }
 0x2b7   :  { %v1482_v29 = vadd.f32 %v1481_v18, %v5721_v58  ;;  %v1608_v37 = vmul.f32 0.01, %v1287_v21  ;;  %2373 = vmatmul.mubr.bf16.gmra.mrb[120].mxu1 %v1796_v25  ;;  %v1732_v51 = vmax.f32 %v1283_v15, %v1604_v12  ;;  %v1734_v40 = vmax.f32 %v1476_v62, %v1606_v14  ;;  %2892 = vmatprep.subr.bf16.mxu0 %v5088_v56  ;;  %v5089_v25 = vld [vmem:[#allocation7 + $0x40] ss:$8 sps:$4 sm:$0xff]   ;;  %v5091_v15 = vld [vmem:[#allocation7 + $0x44] ss:$8 sps:$4 sm:$0xff]  }
 0x2b8   :  { %v1610_v42 = vmul.f32 0.01, %v1480_v22  ;;  %v1609_v44 = vmul.f32 0.01, %v1289_v33  ;;  %v1733_v11 = vmax.f32 %v1285_v9, %v1605_v30  ;;  %v1735_v2 = vmax.f32 %v1478_v59, %v1607_v31  ;;  %2893 = vmatpush1.bf16.msra.mxu0 %v5086_v47  ;;  %v5094_v62 = vld [vmem:[#allocation7 + $0x54] ss:$8 sps:$4 sm:$0xff]  }
 0x2b9   :  { %v1611_v36 = vmul.f32 0.01, %v1482_v29  ;;  %v1736_v55 = vmax.f32 %v1287_v21, %v1608_v37  ;;  %2894 = vmatprep.subr.bf16.mxu0 %v5091_v15  ;;  %v5092_v9 = vld [vmem:[#allocation7 + $0x50] ss:$8 sps:$4 sm:$0xff]   ;;  %v5097_v59 = vld [vmem:[#allocation7 + $0x64] ss:$8 sps:$4 sm:$0xff]  }
 0x2ba   :  { %v1738_v41 = vmax.f32 %v1480_v22, %v1610_v42  ;;  %v1737_v38 = vmax.f32 %v1289_v33, %v1609_v44  ;;  %v5095_v53 = vld [vmem:[#allocation7 + $0x60] ss:$8 sps:$4 sm:$0xff]   ;;  %v5100_v45 = vld [vmem:[#allocation7 + $0x74] ss:$8 sps:$4 sm:$0xff]   ;;  %v5098_v6 = vld [vmem:[#allocation7 + $0x70] ss:$8 sps:$4 sm:$0xff]  }
 0x2bb   :  { %v1739_v39 = vmax.f32 %v1482_v29, %v1611_v36  ;;  %v1800_v17 = vpack.c.bf16 %v1736_v55, %v1732_v51  ;;  %v5103_v12 = vld [vmem:[#allocation7 + $0x84] ss:$8 sps:$4 sm:$0xff]   ;;  %v5106_v14 = vld [vmem:[#allocation7 + $0x94] ss:$8 sps:$4 sm:$0xff]   ;;  %v5104_v21 = vld [vmem:[#allocation7 + $0x90] ss:$8 sps:$4 sm:$0xff]  }
 0x2bc   :  { %v5911_v57 = vpack.c.bf16 %v1738_v41, %v1734_v40  ;;  %v1801_v58 = vpack.c.bf16 %v1737_v38, %v1733_v11  ;;  %2895 = vmatpush1.bf16.msra.mxu0 %v5089_v25  ;;  %v5107_v22 = vld [vmem:[#allocation7 + $0xa0] ss:$8 sps:$4 sm:$0xff]   ;;  %v5110_v23 = vld [vmem:[#allocation7 + $0xb0] ss:$8 sps:$4 sm:$0xff]  }
 0x2bd   :  { %v5913_v0 = vpack.c.bf16 %v1739_v39, %v1735_v2  ;;  %2896 = vmatprep.subr.bf16.mxu0 %v5094_v62  ;;  %v5113_v18 = vld [vmem:[#allocation7 + $0xc0] ss:$8 sps:$4 sm:$0xff]   ;;  %v5116_v30 = vld [vmem:[#allocation7 + $0xd0] ss:$8 sps:$4 sm:$0xff]  }
 0x2be   :  { %2382 = vmatprep.mubr.bf16.mxu1 %v1801_v58  ;;  %v5119_v31 = vld [vmem:[#allocation7 + $0xe0] ss:$8 sps:$4 sm:$0xff]   ;;  %v5128_v11 = vld [vmem:[#allocation10 + $0x10] ss:$8 sps:$4 sm:$0xff]  }
 0x2bf   :  { %2383 = vmatmul.mubr.bf16.gmra.mrb[124].mxu1 %v1800_v17  ;;  %v5125_v42 = vld [vmem:[#allocation10] ss:$8 sps:$4 sm:$0xff]   ;;  %v5130_v47 = vld [vmem:[#allocation10 + $0x14] ss:$8 sps:$4 sm:$0xff]   ;;  %v5133_v39 = vld [vmem:[#allocation10 + $0x24] ss:$8 sps:$4 sm:$0xff]  }
 0x2c0   :  { %2425 = vmatprep.mubr.bf16.mxu1 %v5737_v46  ;;  %2897 = vmatpush1.bf16.msra.mxu0 %v5092_v9  ;;  %v5101_v46 = vld [vmem:[#allocation7 + $0x80] ss:$8 sps:$4 sm:$0xff]  }
 0x2c1   :  { %2898 = vmatprep.subr.bf16.mxu0 %v5097_v59  ;;  %v5131_v15 = vld [vmem:[#allocation10 + $0x20] ss:$8 sps:$4 sm:$0xff]   ;;  %v5136_v59 = vld [vmem:[#allocation10 + $0x34] ss:$8 sps:$4 sm:$0xff]  }
 0x2c4   :  { %2899 = vmatpush1.bf16.msra.mxu0 %v5095_v53 }
 0x2c5   :  { %2900 = vmatprep.subr.bf16.mxu0 %v5100_v45 }
 0x2c7   :  { %2426 = vmatmul.mubr.bf16.vlgmr.msra.gmra.mrb[64].mxu1 %v5731_v34  ;;  %v5109_v34 = vld [vmem:[#allocation7 + $0xa4] ss:$8 sps:$4 sm:$0xff]  }
 0x2c8   :  { %2435 = vmatprep.mubr.bf16.mxu1 %v5749_v26  ;;  %2901 = vmatpush1.bf16.msra.mxu0 %v5098_v6  ;;  %v5112_v26 = vld [vmem:[#allocation7 + $0xb4] ss:$8 sps:$4 sm:$0xff]  }
 0x2c9   :  { %2902 = vmatprep.subr.bf16.mxu0 %v5103_v12 }
 0x2cc   :  { %2903 = vmatpush1.bf16.msra.mxu0 %v5101_v46 }
 0x2cd   :  { %2904 = vmatprep.subr.bf16.mxu0 %v5106_v14  ;;  %v5134_v14 = vld [vmem:[#allocation10 + $0x30] ss:$8 sps:$4 sm:$0xff]  }
 0x2cf   :  { %2436 = vmatmul.mubr.bf16.gmra.mrb[68].mxu1 %v5745_v16  ;;  %v5115_v16 = vld [vmem:[#allocation7 + $0xc4] ss:$8 sps:$4 sm:$0xff]  }
 0x2d0   :  { %2445 = vmatprep.mubr.bf16.mxu1 %v5761_v8  ;;  %2905 = vmatpush1.bf16.msra.mxu0 %v5104_v21  ;;  %v5118_v8 = vld [vmem:[#allocation7 + $0xd4] ss:$8 sps:$4 sm:$0xff]  }
 0x2d1   :  { %2906 = vmatprep.subr.bf16.mxu0 %v5109_v34 }
 0x2d4   :  { %2907 = vmatpush1.bf16.msra.mxu0 %v5107_v22  ;;  %v5139_v22 = vld [vmem:[#allocation10 + $0x44] ss:$8 sps:$4 sm:$0xff]  }
 0x2d5   :  { %2908 = vmatprep.subr.bf16.mxu0 %v5112_v26 }
 0x2d7   :  { %2446 = vmatmul.mubr.bf16.gmra.mrb[72].mxu1 %v5757_v1  ;;  %v5121_v1 = vld [vmem:[#allocation7 + $0xe4] ss:$8 sps:$4 sm:$0xff]  }
 0x2d8   :  { %2455 = vmatprep.mubr.bf16.mxu1 %v5773_v54  ;;  %2909 = vmatpush1.bf16.msra.mxu0 %v5110_v23  ;;  %v5122_v54 = vld [vmem:[#allocation7 + $0xf0] ss:$8 sps:$4 sm:$0xff]  }
 0x2d9   :  { %2910 = vmatprep.subr.bf16.mxu0 %v5115_v16 }
 0x2dc   :  { %2911 = vmatpush1.bf16.msra.mxu0 %v5113_v18 }
 0x2dd   :  { %2912 = vmatprep.subr.bf16.mxu0 %v5118_v8 }
 0x2df   :  { %2456 = vmatmul.mubr.bf16.gmra.mrb[76].mxu1 %v5769_v48  ;;  %v5124_v48 = vld [vmem:[#allocation7 + $0xf4] ss:$8 sps:$4 sm:$0xff]  }
 0x2e0   :  { %2465 = vmatprep.mubr.bf16.mxu1 %v5785_v43  ;;  %2913 = vmatpush1.bf16.msra.mxu0 %v5116_v30  ;;  %v6461_v43 = vld [vmem:[#allocation19_spill] sm:$0xff]  ;;  %v5137_v30 = vld [vmem:[#allocation10 + $0x40] ss:$8 sps:$4 sm:$0xff]  }
 0x2e1   :  { %2914 = vmatprep.subr.bf16.mxu0 %v5121_v1 }
 0x2e4   :  { %2915 = vmatpush1.bf16.msra.mxu0 %v5119_v31 }
 0x2e5   :  { %2916 = vmatprep.subr.bf16.mxu0 %v5124_v48  ;;  %v5142_v48 = vld [vmem:[#allocation10 + $0x54] ss:$8 sps:$4 sm:$0xff]  }
 0x2e7   :  { %2466 = vmatmul.mubr.bf16.gmra.mrb[80].mxu1 %v5781_v35  ;;  %v6460_v35 = vld [vmem:[#allocation20_spill] sm:$0xff] }
 0x2e8   :  { %2475 = vmatprep.mubr.bf16.mxu1 %v5797_v32  ;;  %2917 = vmatpush1.bf16.msra.mxu0 %v5122_v54  ;;  %v1868_v32 = vld [vmem:[%s6440_s6] sm:$0x3] }
 0x2ef   :  { %2476 = vmatmul.mubr.bf16.gmra.mrb[84].mxu1 %v5793_v19  ;;  %v5127_v19 = vld [vmem:[#allocation10 + $0x4] ss:$8 sps:$4 sm:$0xff]  }
 0x2f0   :  { %2485 = vmatprep.mubr.bf16.mxu1 %v5809_v20  ;;  %3379 = vmatprep.subr.bf16.mxu0 %v5127_v19 }
 0x2f7   :  { %2486 = vmatmul.mubr.bf16.gmra.mrb[88].mxu1 %v5805_v10  ;;  %v6462_v10 = vld [vmem:[#allocation17_spill] sm:$0xff] }
 0x2f8   :  { %2495 = vmatprep.mubr.bf16.mxu1 %v5821_v13  ;;  %v5951_v20 = vrot.slane %v1868_v32, %v6462_v10 }
 0x2ff   :  { %2496 = vmatmul.mubr.bf16.gmra.mrb[92].mxu1 %v5817_v3  ;;  %v6463_v3 = vld [vmem:[#allocation18_spill] sm:$0xff] }
 0x300   :  { %2505 = vmatprep.mubr.bf16.mxu1 %v5833_v5  ;;  %v5954_v13 = vrot.slane %v1868_v32, %v6463_v3 }
 0x307   :  { %2506 = vmatmul.mubr.bf16.gmra.mrb[96].mxu1 %v5829_v63 }
 0x308   :  { %2515 = vmatprep.mubr.bf16.mxu1 %v5845_v61 }
 0x30f   :  { %2516 = vmatmul.mubr.bf16.gmra.mrb[100].mxu1 %v5841_v52 }
 0x310   :  { %2525 = vmatprep.mubr.bf16.mxu1 %v5857_v28 }
 0x317   :  { %2526 = vmatmul.mubr.bf16.gmra.mrb[104].mxu1 %v5853_v50 }
 0x318   :  { %2535 = vmatprep.mubr.bf16.mxu1 %v5869_v27 }
 0x31f   :  { %2536 = vmatmul.mubr.bf16.gmra.mrb[108].mxu1 %v5865_v49 }
 0x320   :  { %2545 = vmatprep.mubr.bf16.mxu1 %v5881_v60 }
 0x327   :  { %2546 = vmatmul.mubr.bf16.gmra.mrb[112].mxu1 %v5877_v4 }
 0x328   :  { %2555 = vmatprep.mubr.bf16.mxu1 %v6460_v35 }
 0x32f   :  { %2556 = vmatmul.mubr.bf16.gmra.mrb[116].mxu1 %v6461_v43 }
 0x330   :  { %2565 = vmatprep.mubr.bf16.mxu1 %v5905_v7 }
 0x337   :  { %2566 = vmatmul.mubr.bf16.gmra.mrb[120].mxu1 %v5901_v24 }
 0x338   :  { %2575 = vmatprep.mubr.bf16.mxu1 %v5913_v0 }
 0x33f   :  { %2576 = vmatmul.mubr.bf16.gmra.mrb[124].mxu1 %v5911_v57 }
 0x39a   :  { %v2427_v63 = vpop.f32.mrb[64].mxu1 }
 0x39b   :  { %v4723_v5 = vadd.f32 %v2427_v63, %v5951_v20  ;;  %v2429_v52 = vpop.f32.mrb[65].mxu1  ;;  %v5140_v63 = vld [vmem:[#allocation10 + $0x50] ss:$8 sps:$4 sm:$0xff]  }
 0x39c   :  { %v4724_v61 = vadd.f32 %v2429_v52, %v5954_v13  ;;  %v2431_v50 = vpop.f32.mrb[66].mxu1 }
 0x39d   :  { %v4725_v28 = vadd.f32 %v2431_v50, %v5951_v20  ;;  %v2433_v49 = vpop.f32.mrb[67].mxu1  ;;  %v2586_v4 = vmax.f32 %v4723_v5, 0.0 }
 0x39e   :  { %v4726_v27 = vadd.f32 %v2433_v49, %v5954_v13  ;;  %v2587_v24 = vmax.f32 %v4724_v61, 0.0  ;;  %v5145_v61 = vld [vmem:[#allocation10 + $0x64] ss:$8 sps:$4 sm:$0xff]  }
 0x39f   :  { %v2588_v60 = vmax.f32 %v4725_v28, 0.0 }
 0x3a0   :  { %v2589_v7 = vmax.f32 %v4726_v27, 0.0 }
 0x3a1   :  { %v2650_v33 = vpack.c.bf16 %v2588_v60, %v2586_v4  ;;  %v5143_v60 = vld [vmem:[#allocation10 + $0x60] ss:$8 sps:$4 sm:$0xff]  }
 0x3a2   :  { %v2651_v29 = vpack.c.bf16 %v2589_v7, %v2587_v24  ;;  %v2437_v37 = vpop.f32.mrb[68].mxu1 }
 0x3a3   :  { %v4727_v44 = vadd.f32 %v2437_v37, %v5951_v20  ;;  %v2439_v36 = vpop.f32.mrb[69].mxu1 }
 0x3a4   :  { %v4728_v51 = vadd.f32 %v2439_v36, %v5954_v13  ;;  %v2441_v40 = vpop.f32.mrb[70].mxu1  ;;  %2918 = vmatprep.mubr.bf16.mxu0 %v2651_v29 }
 0x3a5   :  { %v4729_v55 = vadd.f32 %v2441_v40, %v5951_v20  ;;  %v2443_v41 = vpop.f32.mrb[71].mxu1  ;;  %2919 = vmatmul.mubr.bf16.vlgmr.msra.gmra.mrb[128].mxu0 %v2650_v33  ;;  %v2590_v2 = vmax.f32 %v4727_v44, 0.0  ;;  %v5148_v33 = vld [vmem:[#allocation10 + $0x74] ss:$8 sps:$4 sm:$0xff]  }
 0x3a6   :  { %v4730_v56 = vadd.f32 %v2443_v41, %v5954_v13  ;;  %3380 = vmatpush1.bf16.msra.mxu0 %v5125_v42  ;;  %v2591_v17 = vmax.f32 %v4728_v51, 0.0 }
 0x3a7   :  { %v2592_v38 = vmax.f32 %v4729_v55, 0.0  ;;  %3381 = vmatprep.subr.bf16.mxu0 %v5130_v47  ;;  %v5146_v47 = vld [vmem:[#allocation10 + $0x70] ss:$8 sps:$4 sm:$0xff]   ;;  %v5151_v55 = vld [vmem:[#allocation10 + $0x84] ss:$8 sps:$4 sm:$0xff]  }
 0x3a8   :  { %v2593_v57 = vmax.f32 %v4730_v56, 0.0 }
 0x3a9   :  { %v2652_v58 = vpack.c.bf16 %v2592_v38, %v2590_v2 }
 0x3aa   :  { %v2653_v0 = vpack.c.bf16 %v2593_v57, %v2591_v17  ;;  %v2447_v25 = vpop.f32.mrb[72].mxu1  ;;  %3382 = vmatpush1.bf16.msra.mxu0 %v5128_v11 }
 0x3ab   :  { %v4731_v62 = vadd.f32 %v2447_v25, %v5951_v20  ;;  %v2449_v9 = vpop.f32.mrb[73].mxu1  ;;  %3383 = vmatprep.subr.bf16.mxu0 %v5133_v39  ;;  %v5149_v39 = vld [vmem:[#allocation10 + $0x80] ss:$8 sps:$4 sm:$0xff]  }
 0x3ac   :  { %v4732_v53 = vadd.f32 %v2449_v9, %v5954_v13  ;;  %v2451_v45 = vpop.f32.mrb[74].mxu1  ;;  %2928 = vmatprep.mubr.bf16.mxu0 %v2653_v0 }
 0x3ad   :  { %v4733_v6 = vadd.f32 %v2451_v45, %v5951_v20  ;;  %v2453_v12 = vpop.f32.mrb[75].mxu1  ;;  %2929 = vmatmul.mubr.bf16.gmra.mrb[132].mxu0 %v2652_v58  ;;  %v2594_v21 = vmax.f32 %v4731_v62, 0.0  ;;  %v5154_v58 = vld [vmem:[#allocation10 + $0x94] ss:$8 sps:$4 sm:$0xff]  }
 0x3ae   :  { %v4734_v46 = vadd.f32 %v2453_v12, %v5954_v13  ;;  %3384 = vmatpush1.bf16.msra.mxu0 %v5131_v15  ;;  %v2595_v26 = vmax.f32 %v4732_v53, 0.0 }
 0x3af   :  { %v2596_v34 = vmax.f32 %v4733_v6, 0.0  ;;  %3385 = vmatprep.subr.bf16.mxu0 %v5136_v59  ;;  %v5152_v59 = vld [vmem:[#allocation10 + $0x90] ss:$8 sps:$4 sm:$0xff]   ;;  %v5157_v6 = vld [vmem:[#allocation10 + $0xa4] ss:$8 sps:$4 sm:$0xff]  }
 0x3b0   :  { %v2597_v23 = vmax.f32 %v4734_v46, 0.0 }
 0x3b1   :  { %v2654_v16 = vpack.c.bf16 %v2596_v34, %v2594_v21 }
 0x3b2   :  { %v2655_v18 = vpack.c.bf16 %v2597_v23, %v2595_v26  ;;  %v2457_v8 = vpop.f32.mrb[76].mxu1  ;;  %3386 = vmatpush1.bf16.msra.mxu0 %v5134_v14 }
 0x3b3   :  { %v4735_v1 = vadd.f32 %v2457_v8, %v5951_v20  ;;  %v2459_v31 = vpop.f32.mrb[77].mxu1  ;;  %3387 = vmatprep.subr.bf16.mxu0 %v5139_v22  ;;  %v5155_v22 = vld [vmem:[#allocation10 + $0xa0] ss:$8 sps:$4 sm:$0xff]  }
 0x3b4   :  { %v4736_v54 = vadd.f32 %v2459_v31, %v5954_v13  ;;  %v2461_v35 = vpop.f32.mrb[78].mxu1  ;;  %2938 = vmatprep.mubr.bf16.mxu0 %v2655_v18 }
 0x3b5   :  { %v4737_v43 = vadd.f32 %v2461_v35, %v5951_v20  ;;  %v2463_v19 = vpop.f32.mrb[79].mxu1  ;;  %2939 = vmatmul.mubr.bf16.gmra.mrb[136].mxu0 %v2654_v16  ;;  %v2598_v5 = vmax.f32 %v4735_v1, 0.0  ;;  %v5160_v16 = vld [vmem:[#allocation10 + $0xb4] ss:$8 sps:$4 sm:$0xff]  }
 0x3b6   :  { %v4738_v32 = vadd.f32 %v2463_v19, %v5954_v13  ;;  %3388 = vmatpush1.bf16.msra.mxu0 %v5137_v30  ;;  %v2599_v50 = vmax.f32 %v4736_v54, 0.0 }
 0x3b7   :  { %v2600_v52 = vmax.f32 %v4737_v43, 0.0  ;;  %3389 = vmatprep.subr.bf16.mxu0 %v5142_v48  ;;  %v5158_v48 = vld [vmem:[#allocation10 + $0xb0] ss:$8 sps:$4 sm:$0xff]   ;;  %v5163_v43 = vld [vmem:[#allocation10 + $0xc4] ss:$8 sps:$4 sm:$0xff]  }
 0x3b8   :  { %v2601_v28 = vmax.f32 %v4738_v32, 0.0 }
 0x3b9   :  { %v2656_v49 = vpack.c.bf16 %v2600_v52, %v2598_v5 }
 0x3ba   :  { %v2657_v27 = vpack.c.bf16 %v2601_v28, %v2599_v50  ;;  %v2467_v4 = vpop.f32.mrb[80].mxu1  ;;  %3390 = vmatpush1.bf16.msra.mxu0 %v5140_v63 }
 0x3bb   :  { %v4739_v24 = vadd.f32 %v2467_v4, %v5951_v20  ;;  %v2469_v7 = vpop.f32.mrb[81].mxu1  ;;  %3391 = vmatprep.subr.bf16.mxu0 %v5145_v61  ;;  %v5161_v61 = vld [vmem:[#allocation10 + $0xc0] ss:$8 sps:$4 sm:$0xff]  }
 0x3bc   :  { %v4740_v29 = vadd.f32 %v2469_v7, %v5954_v13  ;;  %v2471_v37 = vpop.f32.mrb[82].mxu1  ;;  %2948 = vmatprep.mubr.bf16.mxu0 %v2657_v27 }
 0x3bd   :  { %v4741_v42 = vadd.f32 %v2471_v37, %v5951_v20  ;;  %v2473_v44 = vpop.f32.mrb[83].mxu1  ;;  %2949 = vmatmul.mubr.bf16.gmra.mrb[140].mxu0 %v2656_v49  ;;  %v2602_v51 = vmax.f32 %v4739_v24, 0.0  ;;  %v5166_v49 = vld [vmem:[#allocation10 + $0xd4] ss:$8 sps:$4 sm:$0xff]  }
 0x3be   :  { %v4742_v36 = vadd.f32 %v2473_v44, %v5954_v13  ;;  %3392 = vmatpush1.bf16.msra.mxu0 %v5143_v60  ;;  %v2603_v41 = vmax.f32 %v4740_v29, 0.0 }
 0x3bf   :  { %v2604_v40 = vmax.f32 %v4741_v42, 0.0  ;;  %3393 = vmatprep.subr.bf16.mxu0 %v5148_v33  ;;  %v5164_v33 = vld [vmem:[#allocation10 + $0xd0] ss:$8 sps:$4 sm:$0xff]   ;;  %v5169_v42 = vld [vmem:[#allocation10 + $0xe4] ss:$8 sps:$4 sm:$0xff]  }
 0x3c0   :  { %v2605_v56 = vmax.f32 %v4742_v36, 0.0 }
 0x3c1   :  { %v2658_v11 = vpack.c.bf16 %v2604_v40, %v2602_v51 }
 0x3c2   :  { %v2659_v2 = vpack.c.bf16 %v2605_v56, %v2603_v41  ;;  %v2477_v38 = vpop.f32.mrb[84].mxu1  ;;  %3394 = vmatpush1.bf16.msra.mxu0 %v5146_v47 }
 0x3c3   :  { %v4743_v17 = vadd.f32 %v2477_v38, %v5951_v20  ;;  %v2479_v57 = vpop.f32.mrb[85].mxu1  ;;  %3395 = vmatprep.subr.bf16.mxu0 %v5151_v55  ;;  %v5167_v55 = vld [vmem:[#allocation10 + $0xe0] ss:$8 sps:$4 sm:$0xff]  }
 0x3c4   :  { %v4744_v0 = vadd.f32 %v2479_v57, %v5954_v13  ;;  %v2481_v25 = vpop.f32.mrb[86].mxu1  ;;  %2958 = vmatprep.mubr.bf16.mxu0 %v2659_v2 }
 0x3c5   :  { %v4745_v15 = vadd.f32 %v2481_v25, %v5951_v20  ;;  %v2483_v62 = vpop.f32.mrb[87].mxu1  ;;  %2959 = vmatmul.mubr.bf16.gmra.mrb[144].mxu0 %v2658_v11  ;;  %v2606_v53 = vmax.f32 %v4743_v17, 0.0 }
 0x3c6   :  { %v4746_v9 = vadd.f32 %v2483_v62, %v5954_v13  ;;  %3396 = vmatpush1.bf16.msra.mxu0 %v5149_v39  ;;  %v2607_v12 = vmax.f32 %v4744_v0, 0.0 }
 0x3c7   :  { %v2608_v45 = vmax.f32 %v4745_v15, 0.0  ;;  %3397 = vmatprep.subr.bf16.mxu0 %v5154_v58 }
 0x3c8   :  { %v2609_v46 = vmax.f32 %v4746_v9, 0.0 }
 0x3c9   :  { %v2660_v14 = vpack.c.bf16 %v2608_v45, %v2606_v53 }
 0x3ca   :  { %v2661_v21 = vpack.c.bf16 %v2609_v46, %v2607_v12  ;;  %v2487_v34 = vpop.f32.mrb[88].mxu1  ;;  %3398 = vmatpush1.bf16.msra.mxu0 %v5152_v59 }
 0x3cb   :  { %v4747_v26 = vadd.f32 %v2487_v34, %v5951_v20  ;;  %v2489_v23 = vpop.f32.mrb[89].mxu1  ;;  %3399 = vmatprep.subr.bf16.mxu0 %v5157_v6 }
 0x3cc   :  { %v4748_v18 = vadd.f32 %v2489_v23, %v5954_v13  ;;  %v2491_v8 = vpop.f32.mrb[90].mxu1  ;;  %2968 = vmatprep.mubr.bf16.mxu0 %v2661_v21 }
 0x3cd   :  { %v4749_v30 = vadd.f32 %v2491_v8, %v5951_v20  ;;  %v2493_v1 = vpop.f32.mrb[91].mxu1  ;;  %2969 = vmatmul.mubr.bf16.gmra.mrb[148].mxu0 %v2660_v14  ;;  %v2610_v54 = vmax.f32 %v4747_v26, 0.0 }
 0x3ce   :  { %v4750_v31 = vadd.f32 %v2493_v1, %v5954_v13  ;;  %3400 = vmatpush1.bf16.msra.mxu0 %v5155_v22  ;;  %v2611_v19 = vmax.f32 %v4748_v18, 0.0 }
 0x3cf   :  { %v2612_v35 = vmax.f32 %v4749_v30, 0.0  ;;  %3401 = vmatprep.subr.bf16.mxu0 %v5160_v16 }
 0x3d0   :  { %v2613_v32 = vmax.f32 %v4750_v31, 0.0 }
 0x3d1   :  { %v2662_v63 = vpack.c.bf16 %v2612_v35, %v2610_v54 }
 0x3d2   :  { %v2663_v5 = vpack.c.bf16 %v2613_v32, %v2611_v19  ;;  %v2497_v52 = vpop.f32.mrb[92].mxu1  ;;  %3402 = vmatpush1.bf16.msra.mxu0 %v5158_v48 }
 0x3d3   :  { %v4751_v50 = vadd.f32 %v2497_v52, %v5951_v20  ;;  %v2499_v28 = vpop.f32.mrb[93].mxu1  ;;  %3403 = vmatprep.subr.bf16.mxu0 %v5163_v43 }
 0x3d4   :  { %v4752_v27 = vadd.f32 %v2499_v28, %v5954_v13  ;;  %v2501_v4 = vpop.f32.mrb[94].mxu1  ;;  %2978 = vmatprep.mubr.bf16.mxu0 %v2663_v5 }
 0x3d5   :  { %v4753_v60 = vadd.f32 %v2501_v4, %v5951_v20  ;;  %v2503_v24 = vpop.f32.mrb[95].mxu1  ;;  %2979 = vmatmul.mubr.bf16.gmra.mrb[152].mxu0 %v2662_v63  ;;  %v2614_v29 = vmax.f32 %v4751_v50, 0.0 }
 0x3d6   :  { %v4754_v7 = vadd.f32 %v2503_v24, %v5954_v13  ;;  %3404 = vmatpush1.bf16.msra.mxu0 %v5161_v61  ;;  %v2615_v44 = vmax.f32 %v4752_v27, 0.0 }
 0x3d7   :  { %v2616_v37 = vmax.f32 %v4753_v60, 0.0  ;;  %3405 = vmatprep.subr.bf16.mxu0 %v5166_v49 }
 0x3d8   :  { %v2617_v36 = vmax.f32 %v4754_v7, 0.0 }
 0x3d9   :  { %v2664_v47 = vpack.c.bf16 %v2616_v37, %v2614_v29 }
 0x3da   :  { %v2665_v51 = vpack.c.bf16 %v2617_v36, %v2615_v44  ;;  %v2507_v40 = vpop.f32.mrb[96].mxu1  ;;  %3406 = vmatpush1.bf16.msra.mxu0 %v5164_v33 }
 0x3db   :  { %v4755_v41 = vadd.f32 %v2507_v40, %v5951_v20  ;;  %v2509_v56 = vpop.f32.mrb[97].mxu1  ;;  %3407 = vmatprep.subr.bf16.mxu0 %v5169_v42 }
 0x3dc   :  { %v4756_v11 = vadd.f32 %v2509_v56, %v5954_v13  ;;  %v2511_v2 = vpop.f32.mrb[98].mxu1  ;;  %2988 = vmatprep.mubr.bf16.mxu0 %v2665_v51 }
 0x3dd   :  { %v4757_v38 = vadd.f32 %v2511_v2, %v5951_v20  ;;  %v2513_v39 = vpop.f32.mrb[99].mxu1  ;;  %2989 = vmatmul.mubr.bf16.gmra.mrb[156].mxu0 %v2664_v47  ;;  %v2618_v57 = vmax.f32 %v4755_v41, 0.0 }
 0x3de   :  { %v4758_v17 = vadd.f32 %v2513_v39, %v5954_v13  ;;  %3408 = vmatpush1.bf16.msra.mxu0 %v5167_v55  ;;  %v2619_v0 = vmax.f32 %v4756_v11, 0.0  ;;  %v5172_v11 = vld [vmem:[#allocation10 + $0xf4] ss:$8 sps:$4 sm:$0xff]  }
 0x3df   :  { %v2620_v58 = vmax.f32 %v4757_v38, 0.0  ;;  %v5170_v38 = vld [vmem:[#allocation10 + $0xf0] ss:$8 sps:$4 sm:$0xff]   ;;  %3409 = vmatprep.subr.bf16.mxu0 %v5172_v11 }
 0x3e0   :  { %v2621_v25 = vmax.f32 %v4758_v17, 0.0 }
 0x3e1   :  { %v2666_v15 = vpack.c.bf16 %v2620_v58, %v2618_v57 }
 0x3e2   :  { %v2667_v62 = vpack.c.bf16 %v2621_v25, %v2619_v0  ;;  %v2517_v9 = vpop.f32.mrb[100].mxu1  ;;  %3410 = vmatpush1.bf16.msra.mxu0 %v5170_v38 }
 0x3e3   :  { %v4759_v59 = vadd.f32 %v2517_v9, %v5951_v20  ;;  %v2519_v53 = vpop.f32.mrb[101].mxu1 }
 0x3e4   :  { %v4760_v45 = vadd.f32 %v2519_v53, %v5954_v13  ;;  %v2521_v6 = vpop.f32.mrb[102].mxu1  ;;  %2998 = vmatprep.mubr.bf16.mxu0 %v2667_v62 }
 0x3e5   :  { %v4761_v12 = vadd.f32 %v2521_v6, %v5951_v20  ;;  %v2523_v46 = vpop.f32.mrb[103].mxu1  ;;  %2999 = vmatmul.mubr.bf16.gmra.mrb[160].mxu0 %v2666_v15  ;;  %v2622_v21 = vmax.f32 %v4759_v59, 0.0 }
 0x3e6   :  { %v4762_v14 = vadd.f32 %v2523_v46, %v5954_v13  ;;  %v2623_v22 = vmax.f32 %v4760_v45, 0.0 }
 0x3e7   :  { %v2624_v34 = vmax.f32 %v4761_v12, 0.0 }
 0x3e8   :  { %v2625_v26 = vmax.f32 %v4762_v14, 0.0 }
 0x3e9   :  { %v2668_v23 = vpack.c.bf16 %v2624_v34, %v2622_v21 }
 0x3ea   :  { %v2669_v16 = vpack.c.bf16 %v2625_v26, %v2623_v22  ;;  %v2527_v18 = vpop.f32.mrb[104].mxu1 }
 0x3eb   :  { %v4763_v8 = vadd.f32 %v2527_v18, %v5951_v20  ;;  %v2529_v30 = vpop.f32.mrb[105].mxu1 }
 0x3ec   :  { %v4764_v1 = vadd.f32 %v2529_v30, %v5954_v13  ;;  %v2531_v31 = vpop.f32.mrb[106].mxu1  ;;  %3008 = vmatprep.mubr.bf16.mxu0 %v2669_v16 }
 0x3ed   :  { %v4765_v48 = vadd.f32 %v2531_v31, %v5951_v20  ;;  %v2533_v54 = vpop.f32.mrb[107].mxu1  ;;  %3009 = vmatmul.mubr.bf16.gmra.mrb[164].mxu0 %v2668_v23  ;;  %v2626_v43 = vmax.f32 %v4763_v8, 0.0 }
 0x3ee   :  { %v4766_v35 = vadd.f32 %v2533_v54, %v5954_v13  ;;  %v2627_v32 = vmax.f32 %v4764_v1, 0.0 }
 0x3ef   :  { %v2628_v19 = vmax.f32 %v4765_v48, 0.0 }
 0x3f0   :  { %v2629_v63 = vmax.f32 %v4766_v35, 0.0 }
 0x3f1   :  { %v2670_v5 = vpack.c.bf16 %v2628_v19, %v2626_v43 }
 0x3f2   :  { %v2671_v52 = vpack.c.bf16 %v2629_v63, %v2627_v32  ;;  %v2537_v61 = vpop.f32.mrb[108].mxu1 }
 0x3f3   :  { %v4767_v50 = vadd.f32 %v2537_v61, %v5951_v20  ;;  %v2539_v28 = vpop.f32.mrb[109].mxu1 }
 0x3f4   :  { %v4768_v49 = vadd.f32 %v2539_v28, %v5954_v13  ;;  %v2541_v27 = vpop.f32.mrb[110].mxu1  ;;  %3018 = vmatprep.mubr.bf16.mxu0 %v2671_v52 }
 0x3f5   :  { %v4769_v4 = vadd.f32 %v2541_v27, %v5951_v20  ;;  %v2543_v60 = vpop.f32.mrb[111].mxu1  ;;  %3019 = vmatmul.mubr.bf16.gmra.mrb[168].mxu0 %v2670_v5  ;;  %v2630_v7 = vmax.f32 %v4767_v50, 0.0 }
 0x3f6   :  { %v4770_v24 = vadd.f32 %v2543_v60, %v5954_v13  ;;  %v2631_v29 = vmax.f32 %v4768_v49, 0.0 }
 0x3f7   :  { %v2632_v33 = vmax.f32 %v4769_v4, 0.0 }
 0x3f8   :  { %v2633_v37 = vmax.f32 %v4770_v24, 0.0 }
 0x3f9   :  { %v2672_v42 = vpack.c.bf16 %v2632_v33, %v2630_v7 }
 0x3fa   :  { %v2673_v44 = vpack.c.bf16 %v2633_v37, %v2631_v29  ;;  %v2547_v36 = vpop.f32.mrb[112].mxu1 }
 0x3fb   :  { %v4771_v47 = vadd.f32 %v2547_v36, %v5951_v20  ;;  %v2549_v51 = vpop.f32.mrb[113].mxu1  ;;  %v5176_v36 = vld [vmem:[%s6445_s11 + $0x8] sm:$0xff]  }
 0x3fc   :  { %v4772_v40 = vadd.f32 %v2549_v51, %v5954_v13  ;;  %v2551_v55 = vpop.f32.mrb[114].mxu1  ;;  %3028 = vmatprep.mubr.bf16.mxu0 %v2673_v44  ;;  %v2714_v44 = vld [vmem:[#allocation9] sm:$0x3] }
 0x3fd   :  { %v4773_v41 = vadd.f32 %v2551_v55, %v5951_v20  ;;  %v2553_v56 = vpop.f32.mrb[115].mxu1  ;;  %3029 = vmatmul.mubr.bf16.gmra.mrb[172].mxu0 %v2672_v42  ;;  %v2634_v39 = vmax.f32 %v4771_v47, 0.0  ;;  %v5173_v42 = vld [vmem:[%s6445_s11 + $0x40] sm:$0xff]   ;;  %v6033_v47 = vrot.slane %v2714_v44, %v6462_v10  ;;  %v6036_v51 = vrot.slane %v2714_v44, %v6463_v3 }
 0x3fe   :  { %v4774_v2 = vadd.f32 %v2553_v56, %v5954_v13  ;;  %v2635_v57 = vmax.f32 %v4772_v40, 0.0  ;;  %4539 = vmatprep.subr.bf16.mxu1 %v5173_v42 }
 0x3ff   :  { %v2636_v17 = vmax.f32 %v4773_v41, 0.0 }
 0x400   :  { %v2637_v58 = vmax.f32 %v4774_v2, 0.0 }
 0x401   :  { %v2674_v0 = vpack.c.bf16 %v2636_v17, %v2634_v39  ;;  %v5177_v39 = vld [vmem:[%s6445_s11 + $0x50] sm:$0xff]  }
 0x402   :  { %v2675_v25 = vpack.c.bf16 %v2637_v58, %v2635_v57  ;;  %v2557_v15 = vpop.f32.mrb[116].mxu1  ;;  %v5178_v17 = vld [vmem:[%s6445_s11 + $0x10] sm:$0xff]   ;;  %v5179_v57 = vld [vmem:[%s6445_s11 + $0x58] sm:$0xff]  }
 0x403   :  { %v4775_v62 = vadd.f32 %v2557_v15, %v5951_v20  ;;  %v2559_v9 = vpop.f32.mrb[117].mxu1 }
 0x404   :  { %v4776_v59 = vadd.f32 %v2559_v9, %v5954_v13  ;;  %v2561_v53 = vpop.f32.mrb[118].mxu1  ;;  %3038 = vmatprep.mubr.bf16.mxu0 %v2675_v25  ;;  %v5180_v9 = vld [vmem:[%s6445_s11 + $0x18] sm:$0xff]  }
 0x405   :  { %v4777_v45 = vadd.f32 %v2561_v53, %v5951_v20  ;;  %v2563_v6 = vpop.f32.mrb[119].mxu1  ;;  %3039 = vmatmul.mubr.bf16.gmra.mrb[176].mxu0 %v2674_v0  ;;  %v2638_v46 = vmax.f32 %v4775_v62, 0.0  ;;  %v5181_v53 = vld [vmem:[%s6445_s11 + $0x60] sm:$0xff]  }
 0x406   :  { %v4778_v12 = vadd.f32 %v2563_v6, %v5954_v13  ;;  %v2639_v21 = vmax.f32 %v4776_v59, 0.0 }
 0x407   :  { %v2640_v14 = vmax.f32 %v4777_v45, 0.0 }
 0x408   :  { %v2641_v34 = vmax.f32 %v4778_v12, 0.0 }
 0x409   :  { %v2676_v22 = vpack.c.bf16 %v2640_v14, %v2638_v46 }
 0x40a   :  { %v2677_v26 = vpack.c.bf16 %v2641_v34, %v2639_v21  ;;  %v2567_v23 = vpop.f32.mrb[120].mxu1  ;;  %v5182_v34 = vld [vmem:[%s6445_s11 + $0x20] sm:$0xff]  }
 0x40b   :  { %v4779_v16 = vadd.f32 %v2567_v23, %v5951_v20  ;;  %v2569_v18 = vpop.f32.mrb[121].mxu1  ;;  %v5183_v23 = vld [vmem:[%s6445_s11 + $0x68] sm:$0xff]  }
 0x40c   :  { %v4780_v8 = vadd.f32 %v2569_v18, %v5954_v13  ;;  %v2571_v30 = vpop.f32.mrb[122].mxu1  ;;  %3048 = vmatprep.mubr.bf16.mxu0 %v2677_v26 }
 0x40d   :  { %v4781_v1 = vadd.f32 %v2571_v30, %v5951_v20  ;;  %v2573_v31 = vpop.f32.mrb[123].mxu1  ;;  %3049 = vmatmul.mubr.bf16.gmra.mrb[180].mxu0 %v2676_v22  ;;  %v2642_v54 = vmax.f32 %v4779_v16, 0.0 }
 0x40e   :  { %v4782_v48 = vadd.f32 %v2573_v31, %v5954_v13  ;;  %v2643_v43 = vmax.f32 %v4780_v8, 0.0  ;;  %v5184_v31 = vld [vmem:[%s6445_s11 + $0x28] sm:$0xff]  }
 0x40f   :  { %v2644_v35 = vmax.f32 %v4781_v1, 0.0 }
 0x410   :  { %v2645_v19 = vmax.f32 %v4782_v48, 0.0 }
 0x411   :  { %v2678_v32 = vpack.c.bf16 %v2644_v35, %v2642_v54  ;;  %v5185_v54 = vld [vmem:[%s6445_s11 + $0x70] sm:$0xff]  }
 0x412   :  { %v2679_v63 = vpack.c.bf16 %v2645_v19, %v2643_v43  ;;  %v2577_v5 = vpop.f32.mrb[124].mxu1 }
 0x413   :  { %v4783_v52 = vadd.f32 %v2577_v5, %v5951_v20  ;;  %v2579_v61 = vpop.f32.mrb[125].mxu1 }
 0x414   :  { %v4784_v50 = vadd.f32 %v2579_v61, %v5954_v13  ;;  %v2581_v28 = vpop.f32.mrb[126].mxu1  ;;  %3058 = vmatprep.mubr.bf16.mxu0 %v2679_v63 }
 0x415   :  { %v4785_v49 = vadd.f32 %v2581_v28, %v5951_v20  ;;  %v2583_v27 = vpop.f32.mrb[127].mxu1  ;;  %3059 = vmatmul.mubr.bf16.gmra.mrb[184].mxu0 %v2678_v32  ;;  %v2646_v60 = vmax.f32 %v4783_v52, 0.0  ;;  %v5174_v20 = vld [vmem:[%s6445_s11] sm:$0xff]   ;;  %v5186_v52 = vld [vmem:[%s6445_s11 + $0x30] sm:$0xff]   ;;  %v5187_v28 = vld [vmem:[%s6445_s11 + $0x78] sm:$0xff]  }
 0x416   :  { %v4786_v4 = vadd.f32 %v2583_v27, %v5954_v13  ;;  %v2647_v7 = vmax.f32 %v4784_v50, 0.0  ;;  %4540 = vmatpush3.bf16.msra.mxu1 %v5174_v20  ;;  %v5175_v13 = vld [vmem:[%s6445_s11 + $0x48] sm:$0xff]  }
 0x417   :  { %v2648_v24 = vmax.f32 %v4785_v49, 0.0  ;;  %4541 = vmatprep.subr.bf16.mxu1 %v5175_v13 }
 0x418   :  { %v2649_v33 = vmax.f32 %v4786_v4, 0.0 }
 0x419   :  { %v2680_v29 = vpack.c.bf16 %v2648_v24, %v2646_v60 }
 0x41a   :  { %v2681_v37 = vpack.c.bf16 %v2649_v33, %v2647_v7  ;;  %4542 = vmatpush3.bf16.msra.mxu1 %v5176_v36  ;;  %v5188_v7 = vld [vmem:[%s6445_s11 + $0x38] sm:$0xff]  }
 0x41b   :  { %4543 = vmatprep.subr.bf16.mxu1 %v5177_v39 }
 0x41c   :  { %3068 = vmatprep.mubr.bf16.mxu0 %v2681_v37 }
 0x41d   :  { %3069 = vmatmul.mubr.bf16.gmra.mrb[188].mxu0 %v2680_v29 }
 0x41e   :  { %4544 = vmatpush3.bf16.msra.mxu1 %v5178_v17 }
 0x41f   :  { %4545 = vmatprep.subr.bf16.mxu1 %v5179_v57 }
 0x422   :  { %4546 = vmatpush3.bf16.msra.mxu1 %v5180_v9 }
 0x423   :  { %4547 = vmatprep.subr.bf16.mxu1 %v5181_v53 }
 0x426   :  { %4548 = vmatpush3.bf16.msra.mxu1 %v5182_v34 }
 0x427   :  { %4549 = vmatprep.subr.bf16.mxu1 %v5183_v23 }
 0x42a   :  { %4550 = vmatpush3.bf16.msra.mxu1 %v5184_v31 }
 0x42b   :  { %4551 = vmatprep.subr.bf16.mxu1 %v5185_v54 }
 0x42e   :  { %4552 = vmatpush3.bf16.msra.mxu1 %v5186_v52 }
 0x42f   :  { %4553 = vmatprep.subr.bf16.mxu1 %v5187_v28 }
 0x432   :  { %4554 = vmatpush3.bf16.msra.mxu1 %v5188_v7 }
 0x478   :  { %v2920_v40 = vpop.f32.mrb[128].mxu0 }
 0x479   :  { %v2921_v55 = vadd.f32 %v2920_v40, %v6033_v47  ;;  %v2922_v41 = vpop.f32.mrb[129].mxu0 }
 0x47a   :  { %v2923_v56 = vadd.f32 %v2922_v41, %v6036_v51  ;;  %v2924_v11 = vpop.f32.mrb[130].mxu0 }
 0x47b   :  { %v2925_v2 = vadd.f32 %v2924_v11, %v6033_v47  ;;  %v2926_v38 = vpop.f32.mrb[131].mxu0  ;;  %v3079_v0 = vmax.f32 %v2921_v55, 0.0 }
 0x47c   :  { %v2927_v58 = vadd.f32 %v2926_v38, %v6036_v51  ;;  %v3080_v15 = vmax.f32 %v2923_v56, 0.0 }
 0x47d   :  { %v3081_v25 = vmax.f32 %v2925_v2, 0.0 }
 0x47e   :  { %v3082_v62 = vmax.f32 %v2927_v58, 0.0 }
 0x47f   :  { %v3143_v59 = vpack.c.bf16 %v3081_v25, %v3079_v0 }
 0x480   :  { %v3144_v45 = vpack.c.bf16 %v3082_v62, %v3080_v15  ;;  %v2930_v6 = vpop.f32.mrb[132].mxu0 }
 0x481   :  { %v2931_v12 = vadd.f32 %v2930_v6, %v6033_v47  ;;  %v2932_v46 = vpop.f32.mrb[133].mxu0 }
 0x482   :  { %v2933_v14 = vadd.f32 %v2932_v46, %v6036_v51  ;;  %v2934_v21 = vpop.f32.mrb[134].mxu0  ;;  %3411 = vmatprep.mubr.bf16.mxu0 %v3144_v45 }
 0x483   :  { %v2935_v22 = vadd.f32 %v2934_v21, %v6033_v47  ;;  %v2936_v26 = vpop.f32.mrb[135].mxu0  ;;  %3412 = vmatmul.mubr.bf16.vlgmr.msra.gmra.mrb[192].mxu0 %v3143_v59  ;;  %v3083_v18 = vmax.f32 %v2931_v12, 0.0 }
 0x484   :  { %v2937_v16 = vadd.f32 %v2936_v26, %v6036_v51  ;;  %v3084_v30 = vmax.f32 %v2933_v14, 0.0 }
 0x485   :  { %v3085_v8 = vmax.f32 %v2935_v22, 0.0 }
 0x486   :  { %v3086_v1 = vmax.f32 %v2937_v16, 0.0 }
 0x487   :  { %v3145_v48 = vpack.c.bf16 %v3085_v8, %v3083_v18 }
 0x488   :  { %v3146_v35 = vpack.c.bf16 %v3086_v1, %v3084_v30  ;;  %v2940_v43 = vpop.f32.mrb[136].mxu0 }
 0x489   :  { %v2941_v19 = vadd.f32 %v2940_v43, %v6033_v47  ;;  %v2942_v32 = vpop.f32.mrb[137].mxu0 }
 0x48a   :  { %v2943_v63 = vadd.f32 %v2942_v32, %v6036_v51  ;;  %v2944_v5 = vpop.f32.mrb[138].mxu0  ;;  %3421 = vmatprep.mubr.bf16.mxu0 %v3146_v35 }
 0x48b   :  { %v2945_v61 = vadd.f32 %v2944_v5, %v6033_v47  ;;  %v2946_v50 = vpop.f32.mrb[139].mxu0  ;;  %3422 = vmatmul.mubr.bf16.gmra.mrb[196].mxu0 %v3145_v48  ;;  %v3087_v27 = vmax.f32 %v2941_v19, 0.0 }
 0x48c   :  { %v2947_v49 = vadd.f32 %v2946_v50, %v6036_v51  ;;  %v3088_v60 = vmax.f32 %v2943_v63, 0.0 }
 0x48d   :  { %v3089_v4 = vmax.f32 %v2945_v61, 0.0 }
 0x48e   :  { %v3090_v24 = vmax.f32 %v2947_v49, 0.0 }
 0x48f   :  { %v3147_v33 = vpack.c.bf16 %v3089_v4, %v3087_v27 }
 0x490   :  { %v3148_v29 = vpack.c.bf16 %v3090_v24, %v3088_v60  ;;  %v2950_v37 = vpop.f32.mrb[140].mxu0 }
 0x491   :  { %v2951_v42 = vadd.f32 %v2950_v37, %v6033_v47  ;;  %v2952_v20 = vpop.f32.mrb[141].mxu0 }
 0x492   :  { %v2953_v44 = vadd.f32 %v2952_v20, %v6036_v51  ;;  %v2954_v13 = vpop.f32.mrb[142].mxu0  ;;  %3431 = vmatprep.mubr.bf16.mxu0 %v3148_v29 }
 0x493   :  { %v2955_v36 = vadd.f32 %v2954_v13, %v6033_v47  ;;  %v2956_v40 = vpop.f32.mrb[143].mxu0  ;;  %3432 = vmatmul.mubr.bf16.gmra.mrb[200].mxu0 %v3147_v33  ;;  %v3091_v41 = vmax.f32 %v2951_v42, 0.0 }
 0x494   :  { %v2957_v55 = vadd.f32 %v2956_v40, %v6036_v51  ;;  %v3092_v11 = vmax.f32 %v2953_v44, 0.0 }
 0x495   :  { %v3093_v56 = vmax.f32 %v2955_v36, 0.0 }
 0x496   :  { %v3094_v2 = vmax.f32 %v2957_v55, 0.0 }
 0x497   :  { %v3149_v38 = vpack.c.bf16 %v3093_v56, %v3091_v41 }
 0x498   :  { %v3150_v39 = vpack.c.bf16 %v3094_v2, %v3092_v11  ;;  %v2960_v17 = vpop.f32.mrb[144].mxu0 }
 0x499   :  { %v2961_v57 = vadd.f32 %v2960_v17, %v6033_v47  ;;  %v2962_v58 = vpop.f32.mrb[145].mxu0 }
 0x49a   :  { %v2963_v0 = vadd.f32 %v2962_v58, %v6036_v51  ;;  %v2964_v25 = vpop.f32.mrb[146].mxu0  ;;  %3441 = vmatprep.mubr.bf16.mxu0 %v3150_v39 }
 0x49b   :  { %v2965_v15 = vadd.f32 %v2964_v25, %v6033_v47  ;;  %v2966_v62 = vpop.f32.mrb[147].mxu0  ;;  %3442 = vmatmul.mubr.bf16.gmra.mrb[204].mxu0 %v3149_v38  ;;  %v3095_v59 = vmax.f32 %v2961_v57, 0.0 }
 0x49c   :  { %v2967_v9 = vadd.f32 %v2966_v62, %v6036_v51  ;;  %v3096_v45 = vmax.f32 %v2963_v0, 0.0 }
 0x49d   :  { %v3097_v53 = vmax.f32 %v2965_v15, 0.0 }
 0x49e   :  { %v3098_v6 = vmax.f32 %v2967_v9, 0.0 }
 0x49f   :  { %v3151_v12 = vpack.c.bf16 %v3097_v53, %v3095_v59 }
 0x4a0   :  { %v3152_v46 = vpack.c.bf16 %v3098_v6, %v3096_v45  ;;  %v2970_v14 = vpop.f32.mrb[148].mxu0 }
 0x4a1   :  { %v2971_v21 = vadd.f32 %v2970_v14, %v6033_v47  ;;  %v2972_v34 = vpop.f32.mrb[149].mxu0 }
 0x4a2   :  { %v2973_v22 = vadd.f32 %v2972_v34, %v6036_v51  ;;  %v2974_v26 = vpop.f32.mrb[150].mxu0  ;;  %3451 = vmatprep.mubr.bf16.mxu0 %v3152_v46 }
 0x4a3   :  { %v2975_v23 = vadd.f32 %v2974_v26, %v6033_v47  ;;  %v2976_v16 = vpop.f32.mrb[151].mxu0  ;;  %3452 = vmatmul.mubr.bf16.gmra.mrb[208].mxu0 %v3151_v12  ;;  %v3099_v8 = vmax.f32 %v2971_v21, 0.0 }
 0x4a4   :  { %v2977_v18 = vadd.f32 %v2976_v16, %v6036_v51  ;;  %v3100_v1 = vmax.f32 %v2973_v22, 0.0 }
 0x4a5   :  { %v3101_v30 = vmax.f32 %v2975_v23, 0.0 }
 0x4a6   :  { %v3102_v31 = vmax.f32 %v2977_v18, 0.0 }
 0x4a7   :  { %v3153_v48 = vpack.c.bf16 %v3101_v30, %v3099_v8 }
 0x4a8   :  { %v3154_v54 = vpack.c.bf16 %v3102_v31, %v3100_v1  ;;  %v2980_v35 = vpop.f32.mrb[152].mxu0 }
 0x4a9   :  { %v2981_v43 = vadd.f32 %v2980_v35, %v6033_v47  ;;  %v2982_v19 = vpop.f32.mrb[153].mxu0 }
 0x4aa   :  { %v2983_v32 = vadd.f32 %v2982_v19, %v6036_v51  ;;  %v2984_v63 = vpop.f32.mrb[154].mxu0  ;;  %3461 = vmatprep.mubr.bf16.mxu0 %v3154_v54 }
 0x4ab   :  { %v2985_v5 = vadd.f32 %v2984_v63, %v6033_v47  ;;  %v2986_v52 = vpop.f32.mrb[155].mxu0  ;;  %3462 = vmatmul.mubr.bf16.gmra.mrb[212].mxu0 %v3153_v48  ;;  %v3103_v50 = vmax.f32 %v2981_v43, 0.0 }
 0x4ac   :  { %v2987_v61 = vadd.f32 %v2986_v52, %v6036_v51  ;;  %v3104_v49 = vmax.f32 %v2983_v32, 0.0 }
 0x4ad   :  { %v3105_v28 = vmax.f32 %v2985_v5, 0.0 }
 0x4ae   :  { %v3106_v27 = vmax.f32 %v2987_v61, 0.0 }
 0x4af   :  { %v3155_v4 = vpack.c.bf16 %v3105_v28, %v3103_v50 }
 0x4b0   :  { %v3156_v60 = vpack.c.bf16 %v3106_v27, %v3104_v49  ;;  %v2990_v24 = vpop.f32.mrb[156].mxu0 }
 0x4b1   :  { %v2991_v7 = vadd.f32 %v2990_v24, %v6033_v47  ;;  %v2992_v33 = vpop.f32.mrb[157].mxu0 }
 0x4b2   :  { %v2993_v29 = vadd.f32 %v2992_v33, %v6036_v51  ;;  %v2994_v37 = vpop.f32.mrb[158].mxu0  ;;  %3471 = vmatprep.mubr.bf16.mxu0 %v3156_v60 }
 0x4b3   :  { %v2995_v42 = vadd.f32 %v2994_v37, %v6033_v47  ;;  %v2996_v20 = vpop.f32.mrb[159].mxu0  ;;  %3472 = vmatmul.mubr.bf16.gmra.mrb[216].mxu0 %v3155_v4  ;;  %v3107_v13 = vmax.f32 %v2991_v7, 0.0 }
 0x4b4   :  { %v2997_v44 = vadd.f32 %v2996_v20, %v6036_v51  ;;  %v3108_v40 = vmax.f32 %v2993_v29, 0.0 }
 0x4b5   :  { %v3109_v36 = vmax.f32 %v2995_v42, 0.0 }
 0x4b6   :  { %v3110_v55 = vmax.f32 %v2997_v44, 0.0 }
 0x4b7   :  { %v3157_v41 = vpack.c.bf16 %v3109_v36, %v3107_v13 }
 0x4b8   :  { %v3158_v56 = vpack.c.bf16 %v3110_v55, %v3108_v40  ;;  %v3000_v11 = vpop.f32.mrb[160].mxu0 }
 0x4b9   :  { %v3001_v2 = vadd.f32 %v3000_v11, %v6033_v47  ;;  %v3002_v38 = vpop.f32.mrb[161].mxu0 }
 0x4ba   :  { %v3003_v39 = vadd.f32 %v3002_v38, %v6036_v51  ;;  %v3004_v17 = vpop.f32.mrb[162].mxu0  ;;  %3481 = vmatprep.mubr.bf16.mxu0 %v3158_v56 }
 0x4bb   :  { %v3005_v57 = vadd.f32 %v3004_v17, %v6033_v47  ;;  %v3006_v58 = vpop.f32.mrb[163].mxu0  ;;  %3482 = vmatmul.mubr.bf16.gmra.mrb[220].mxu0 %v3157_v41  ;;  %v3111_v25 = vmax.f32 %v3001_v2, 0.0 }
 0x4bc   :  { %v3007_v0 = vadd.f32 %v3006_v58, %v6036_v51  ;;  %v3112_v62 = vmax.f32 %v3003_v39, 0.0 }
 0x4bd   :  { %v3113_v15 = vmax.f32 %v3005_v57, 0.0 }
 0x4be   :  { %v3114_v9 = vmax.f32 %v3007_v0, 0.0 }
 0x4bf   :  { %v3159_v59 = vpack.c.bf16 %v3113_v15, %v3111_v25 }
 0x4c0   :  { %v3160_v53 = vpack.c.bf16 %v3114_v9, %v3112_v62  ;;  %v3010_v45 = vpop.f32.mrb[164].mxu0 }
 0x4c1   :  { %v3011_v6 = vadd.f32 %v3010_v45, %v6033_v47  ;;  %v3012_v12 = vpop.f32.mrb[165].mxu0 }
 0x4c2   :  { %v3013_v46 = vadd.f32 %v3012_v12, %v6036_v51  ;;  %v3014_v14 = vpop.f32.mrb[166].mxu0  ;;  %3491 = vmatprep.mubr.bf16.mxu0 %v3160_v53 }
 0x4c3   :  { %v3015_v21 = vadd.f32 %v3014_v14, %v6033_v47  ;;  %v3016_v34 = vpop.f32.mrb[167].mxu0  ;;  %3492 = vmatmul.mubr.bf16.gmra.mrb[224].mxu0 %v3159_v59  ;;  %v3115_v26 = vmax.f32 %v3011_v6, 0.0 }
 0x4c4   :  { %v3017_v22 = vadd.f32 %v3016_v34, %v6036_v51  ;;  %v3116_v16 = vmax.f32 %v3013_v46, 0.0 }
 0x4c5   :  { %v3117_v23 = vmax.f32 %v3015_v21, 0.0 }
 0x4c6   :  { %v3118_v18 = vmax.f32 %v3017_v22, 0.0 }
 0x4c7   :  { %v3161_v8 = vpack.c.bf16 %v3117_v23, %v3115_v26 }
 0x4c8   :  { %v3162_v30 = vpack.c.bf16 %v3118_v18, %v3116_v16  ;;  %v3020_v1 = vpop.f32.mrb[168].mxu0 }
 0x4c9   :  { %v3021_v31 = vadd.f32 %v3020_v1, %v6033_v47  ;;  %v3022_v48 = vpop.f32.mrb[169].mxu0 }
 0x4ca   :  { %v3023_v54 = vadd.f32 %v3022_v48, %v6036_v51  ;;  %v3024_v35 = vpop.f32.mrb[170].mxu0  ;;  %3501 = vmatprep.mubr.bf16.mxu0 %v3162_v30 }
 0x4cb   :  { %v3025_v43 = vadd.f32 %v3024_v35, %v6033_v47  ;;  %v3026_v19 = vpop.f32.mrb[171].mxu0  ;;  %3502 = vmatmul.mubr.bf16.gmra.mrb[228].mxu0 %v3161_v8  ;;  %v3119_v63 = vmax.f32 %v3021_v31, 0.0 }
 0x4cc   :  { %v3027_v32 = vadd.f32 %v3026_v19, %v6036_v51  ;;  %v3120_v52 = vmax.f32 %v3023_v54, 0.0 }
 0x4cd   :  { %v3121_v5 = vmax.f32 %v3025_v43, 0.0 }
 0x4ce   :  { %v3122_v61 = vmax.f32 %v3027_v32, 0.0 }
 0x4cf   :  { %v3163_v50 = vpack.c.bf16 %v3121_v5, %v3119_v63 }
 0x4d0   :  { %v3164_v28 = vpack.c.bf16 %v3122_v61, %v3120_v52  ;;  %v3030_v49 = vpop.f32.mrb[172].mxu0 }
 0x4d1   :  { %v3031_v27 = vadd.f32 %v3030_v49, %v6033_v47  ;;  %v3032_v4 = vpop.f32.mrb[173].mxu0 }
 0x4d2   :  { %v3033_v60 = vadd.f32 %v3032_v4, %v6036_v51  ;;  %v3034_v24 = vpop.f32.mrb[174].mxu0  ;;  %3511 = vmatprep.mubr.bf16.mxu0 %v3164_v28 }
 0x4d3   :  { %v3035_v7 = vadd.f32 %v3034_v24, %v6033_v47  ;;  %v3036_v33 = vpop.f32.mrb[175].mxu0  ;;  %3512 = vmatmul.mubr.bf16.gmra.mrb[232].mxu0 %v3163_v50  ;;  %v3123_v37 = vmax.f32 %v3031_v27, 0.0 }
 0x4d4   :  { %v3037_v29 = vadd.f32 %v3036_v33, %v6036_v51  ;;  %v3124_v20 = vmax.f32 %v3033_v60, 0.0 }
 0x4d5   :  { %v3125_v42 = vmax.f32 %v3035_v7, 0.0 }
 0x4d6   :  { %v3126_v44 = vmax.f32 %v3037_v29, 0.0 }
 0x4d7   :  { %v3165_v13 = vpack.c.bf16 %v3125_v42, %v3123_v37 }
 0x4d8   :  { %v3166_v36 = vpack.c.bf16 %v3126_v44, %v3124_v20  ;;  %v3040_v40 = vpop.f32.mrb[176].mxu0  ;;  %v3207_v20 = vld [vmem:[#allocation12] sm:$0x3] }
 0x4d9   :  { %v3041_v55 = vadd.f32 %v3040_v40, %v6033_v47  ;;  %v3042_v41 = vpop.f32.mrb[177].mxu0  ;;  %v6139_v44 = vrot.slane %v3207_v20, %v6462_v10  ;;  %v5190_v10 = vld [vmem:[%s6447_s13 + $0x8] sm:$0xff]  }
 0x4da   :  { %v3043_v56 = vadd.f32 %v3042_v41, %v6036_v51  ;;  %v3044_v11 = vpop.f32.mrb[178].mxu0  ;;  %3521 = vmatprep.mubr.bf16.mxu0 %v3166_v36 }
 0x4db   :  { %v3045_v2 = vadd.f32 %v3044_v11, %v6033_v47  ;;  %v3046_v38 = vpop.f32.mrb[179].mxu0  ;;  %3522 = vmatmul.mubr.bf16.gmra.mrb[236].mxu0 %v3165_v13  ;;  %v3127_v17 = vmax.f32 %v3041_v55, 0.0  ;;  %v6142_v13 = vrot.slane %v3207_v20, %v6463_v3  ;;  %v5189_v11 = vld [vmem:[%s6447_s13] sm:$0xff]  }
 0x4dc   :  { %v3047_v39 = vadd.f32 %v3046_v38, %v6036_v51  ;;  %v3128_v58 = vmax.f32 %v3043_v56, 0.0  ;;  %4675 = vmatprep.subr.bf16.mxu0 %v5189_v11 }
 0x4dd   :  { %v3129_v57 = vmax.f32 %v3045_v2, 0.0  ;;  %4676 = vmatpush3.bf16.msra.mxu0 %v5189_v11 }
 0x4de   :  { %v3130_v0 = vmax.f32 %v3047_v39, 0.0  ;;  %4677 = vmatprep.subr.bf16.mxu0 %v5190_v10 }
 0x4df   :  { %v3167_v25 = vpack.c.bf16 %v3129_v57, %v3127_v17 }
 0x4e0   :  { %v3168_v15 = vpack.c.bf16 %v3130_v0, %v3128_v58  ;;  %v3050_v62 = vpop.f32.mrb[180].mxu0  ;;  %v5191_v58 = vld [vmem:[%s6447_s13 + $0x10] sm:$0xff]  }
 0x4e1   :  { %v3051_v9 = vadd.f32 %v3050_v62, %v6033_v47  ;;  %v3052_v59 = vpop.f32.mrb[181].mxu0  ;;  %4678 = vmatpush3.bf16.msra.mxu0 %v5190_v10 }
 0x4e2   :  { %v3053_v53 = vadd.f32 %v3052_v59, %v6036_v51  ;;  %v3054_v45 = vpop.f32.mrb[182].mxu0  ;;  %3531 = vmatprep.mubr.bf16.mxu0 %v3168_v15  ;;  %4679 = vmatprep.subr.bf16.mxu0 %v5191_v58 }
 0x4e3   :  { %v3055_v6 = vadd.f32 %v3054_v45, %v6033_v47  ;;  %v3056_v12 = vpop.f32.mrb[183].mxu0  ;;  %3532 = vmatmul.mubr.bf16.gmra.mrb[240].mxu0 %v3167_v25  ;;  %v3131_v14 = vmax.f32 %v3051_v9, 0.0 }
 0x4e4   :  { %v3057_v46 = vadd.f32 %v3056_v12, %v6036_v51  ;;  %v3132_v34 = vmax.f32 %v3053_v53, 0.0 }
 0x4e5   :  { %v3133_v21 = vmax.f32 %v3055_v6, 0.0  ;;  %v5192_v6 = vld [vmem:[%s6447_s13 + $0x18] sm:$0xff]   ;;  %4680 = vmatpush3.bf16.msra.mxu0 %v5191_v58 }
 0x4e6   :  { %v3134_v22 = vmax.f32 %v3057_v46, 0.0  ;;  %4681 = vmatprep.subr.bf16.mxu0 %v5192_v6 }
 0x4e7   :  { %v3169_v26 = vpack.c.bf16 %v3133_v21, %v3131_v14 }
 0x4e8   :  { %v3170_v23 = vpack.c.bf16 %v3134_v22, %v3132_v34  ;;  %v3060_v16 = vpop.f32.mrb[184].mxu0 }
 0x4e9   :  { %v3061_v18 = vadd.f32 %v3060_v16, %v6033_v47  ;;  %v3062_v8 = vpop.f32.mrb[185].mxu0  ;;  %4682 = vmatpush3.bf16.msra.mxu0 %v5192_v6 }
 0x4ea   :  { %v3063_v30 = vadd.f32 %v3062_v8, %v6036_v51  ;;  %v3064_v1 = vpop.f32.mrb[186].mxu0  ;;  %3541 = vmatprep.mubr.bf16.mxu0 %v3170_v23 }
 0x4eb   :  { %v3065_v31 = vadd.f32 %v3064_v1, %v6033_v47  ;;  %v3066_v48 = vpop.f32.mrb[187].mxu0  ;;  %3542 = vmatmul.mubr.bf16.gmra.mrb[244].mxu0 %v3169_v26  ;;  %v3135_v35 = vmax.f32 %v3061_v18, 0.0 }
 0x4ec   :  { %v3067_v54 = vadd.f32 %v3066_v48, %v6036_v51  ;;  %v3136_v19 = vmax.f32 %v3063_v30, 0.0 }
 0x4ed   :  { %v3137_v43 = vmax.f32 %v3065_v31, 0.0 }
 0x4ee   :  { %v3138_v32 = vmax.f32 %v3067_v54, 0.0 }
 0x4ef   :  { %v3171_v63 = vpack.c.bf16 %v3137_v43, %v3135_v35 }
 0x4f0   :  { %v3172_v5 = vpack.c.bf16 %v3138_v32, %v3136_v19  ;;  %v3070_v52 = vpop.f32.mrb[188].mxu0 }
 0x4f1   :  { %v3071_v61 = vadd.f32 %v3070_v52, %v6033_v47  ;;  %v3072_v50 = vpop.f32.mrb[189].mxu0 }
 0x4f2   :  { %v3073_v28 = vadd.f32 %v3072_v50, %v6036_v51  ;;  %v3074_v49 = vpop.f32.mrb[190].mxu0  ;;  %3551 = vmatprep.mubr.bf16.mxu0 %v3172_v5 }
 0x4f3   :  { %v3075_v27 = vadd.f32 %v3074_v49, %v6033_v47  ;;  %v3076_v4 = vpop.f32.mrb[191].mxu0  ;;  %3552 = vmatmul.mubr.bf16.gmra.mrb[248].mxu0 %v3171_v63  ;;  %v3139_v24 = vmax.f32 %v3071_v61, 0.0 }
 0x4f4   :  { %v3077_v60 = vadd.f32 %v3076_v4, %v6036_v51  ;;  %v3140_v33 = vmax.f32 %v3073_v28, 0.0 }
 0x4f5   :  { %v3141_v7 = vmax.f32 %v3075_v27, 0.0 }
 0x4f6   :  { %v3142_v29 = vmax.f32 %v3077_v60, 0.0 }
 0x4f7   :  { %v3173_v37 = vpack.c.bf16 %v3141_v7, %v3139_v24 }
 0x4f8   :  { %v3174_v42 = vpack.c.bf16 %v3142_v29, %v3140_v33 }
 0x4fa   :  { %3561 = vmatprep.mubr.bf16.mxu0 %v3174_v42 }
 0x4fb   :  { %3562 = vmatmul.mubr.bf16.gmra.mrb[252].mxu0 %v3173_v37 }
 0x556   :  { %v3413_v47 = vpop.f32.mrb[192].mxu0 }
 0x557   :  { %v3414_v36 = vadd.f32 %v3413_v47, %v6139_v44  ;;  %v3415_v40 = vpop.f32.mrb[193].mxu0 }
 0x558   :  { %v3416_v51 = vadd.f32 %v3415_v40, %v6142_v13  ;;  %v3417_v55 = vpop.f32.mrb[194].mxu0 }
 0x559   :  { %v3418_v41 = vadd.f32 %v3417_v55, %v6139_v44  ;;  %v3419_v56 = vpop.f32.mrb[195].mxu0  ;;  %v3572_v2 = vmax.f32 %v3414_v36, 0.0 }
 0x55a   :  { %v3420_v3 = vadd.f32 %v3419_v56, %v6142_v13  ;;  %v3573_v39 = vmax.f32 %v3416_v51, 0.0 }
 0x55b   :  { %v3574_v38 = vmax.f32 %v3418_v41, 0.0 }
 0x55c   :  { %v3575_v17 = vmax.f32 %v3420_v3, 0.0 }
 0x55d   :  { %v3636_v57 = vpack.c.bf16 %v3574_v38, %v3572_v2 }
 0x55e   :  { %v3637_v0 = vpack.c.bf16 %v3575_v17, %v3573_v39  ;;  %v3423_v25 = vpop.f32.mrb[196].mxu0 }
 0x55f   :  { %v3424_v15 = vadd.f32 %v3423_v25, %v6139_v44  ;;  %v3425_v62 = vpop.f32.mrb[197].mxu0 }
 0x560   :  { %v3426_v9 = vadd.f32 %v3425_v62, %v6142_v13  ;;  %v3427_v59 = vpop.f32.mrb[198].mxu0  ;;  %3835 = vmatprep.mubr.bf16.mxu1 %v3637_v0 }
 0x561   :  { %v3428_v53 = vadd.f32 %v3427_v59, %v6139_v44  ;;  %v3429_v45 = vpop.f32.mrb[199].mxu0  ;;  %3836 = vmatmul.mubr.bf16.vlgmr.msra.gmra.mrb[128].mxu1 %v3636_v57  ;;  %v3576_v46 = vmax.f32 %v3424_v15, 0.0 }
 0x562   :  { %v3430_v12 = vadd.f32 %v3429_v45, %v6142_v13  ;;  %v3577_v21 = vmax.f32 %v3426_v9, 0.0 }
 0x563   :  { %v3578_v14 = vmax.f32 %v3428_v53, 0.0 }
 0x564   :  { %v3579_v34 = vmax.f32 %v3430_v12, 0.0 }
 0x565   :  { %v3638_v22 = vpack.c.bf16 %v3578_v14, %v3576_v46 }
 0x566   :  { %v3639_v26 = vpack.c.bf16 %v3579_v34, %v3577_v21  ;;  %v3433_v23 = vpop.f32.mrb[200].mxu0 }
 0x567   :  { %v3434_v16 = vadd.f32 %v3433_v23, %v6139_v44  ;;  %v3435_v18 = vpop.f32.mrb[201].mxu0 }
 0x568   :  { %v3436_v8 = vadd.f32 %v3435_v18, %v6142_v13  ;;  %v3437_v30 = vpop.f32.mrb[202].mxu0  ;;  %3843 = vmatprep.mubr.bf16.mxu1 %v3639_v26 }
 0x569   :  { %v3438_v1 = vadd.f32 %v3437_v30, %v6139_v44  ;;  %v3439_v31 = vpop.f32.mrb[203].mxu0  ;;  %3844 = vmatmul.mubr.bf16.gmra.mrb[132].mxu1 %v3638_v22  ;;  %v3580_v54 = vmax.f32 %v3434_v16, 0.0 }
 0x56a   :  { %v3440_v48 = vadd.f32 %v3439_v31, %v6142_v13  ;;  %v3581_v43 = vmax.f32 %v3436_v8, 0.0 }
 0x56b   :  { %v3582_v35 = vmax.f32 %v3438_v1, 0.0 }
 0x56c   :  { %v3583_v19 = vmax.f32 %v3440_v48, 0.0 }
 0x56d   :  { %v3640_v32 = vpack.c.bf16 %v3582_v35, %v3580_v54 }
 0x56e   :  { %v3641_v63 = vpack.c.bf16 %v3583_v19, %v3581_v43  ;;  %v3443_v5 = vpop.f32.mrb[204].mxu0 }
 0x56f   :  { %v3444_v52 = vadd.f32 %v3443_v5, %v6139_v44  ;;  %v3445_v61 = vpop.f32.mrb[205].mxu0 }
 0x570   :  { %v3446_v50 = vadd.f32 %v3445_v61, %v6142_v13  ;;  %v3447_v28 = vpop.f32.mrb[206].mxu0  ;;  %3851 = vmatprep.mubr.bf16.mxu1 %v3641_v63 }
 0x571   :  { %v3448_v49 = vadd.f32 %v3447_v28, %v6139_v44  ;;  %v3449_v27 = vpop.f32.mrb[207].mxu0  ;;  %3852 = vmatmul.mubr.bf16.gmra.mrb[136].mxu1 %v3640_v32  ;;  %v3584_v60 = vmax.f32 %v3444_v52, 0.0 }
 0x572   :  { %v3450_v4 = vadd.f32 %v3449_v27, %v6142_v13  ;;  %v3585_v7 = vmax.f32 %v3446_v50, 0.0 }
 0x573   :  { %v3586_v24 = vmax.f32 %v3448_v49, 0.0 }
 0x574   :  { %v3587_v33 = vmax.f32 %v3450_v4, 0.0 }
 0x575   :  { %v3642_v29 = vpack.c.bf16 %v3586_v24, %v3584_v60 }
 0x576   :  { %v3643_v37 = vpack.c.bf16 %v3587_v33, %v3585_v7  ;;  %v3453_v42 = vpop.f32.mrb[208].mxu0 }
 0x577   :  { %v3454_v20 = vadd.f32 %v3453_v42, %v6139_v44  ;;  %v3455_v47 = vpop.f32.mrb[209].mxu0 }
 0x578   :  { %v3456_v36 = vadd.f32 %v3455_v47, %v6142_v13  ;;  %v3457_v40 = vpop.f32.mrb[210].mxu0  ;;  %3859 = vmatprep.mubr.bf16.mxu1 %v3643_v37 }
 0x579   :  { %v3458_v51 = vadd.f32 %v3457_v40, %v6139_v44  ;;  %v3459_v55 = vpop.f32.mrb[211].mxu0  ;;  %3860 = vmatmul.mubr.bf16.gmra.mrb[140].mxu1 %v3642_v29  ;;  %v3588_v56 = vmax.f32 %v3454_v20, 0.0 }
 0x57a   :  { %v3460_v41 = vadd.f32 %v3459_v55, %v6142_v13  ;;  %v3589_v10 = vmax.f32 %v3456_v36, 0.0 }
 0x57b   :  { %v3590_v11 = vmax.f32 %v3458_v51, 0.0 }
 0x57c   :  { %v3591_v3 = vmax.f32 %v3460_v41, 0.0 }
 0x57d   :  { %v3644_v2 = vpack.c.bf16 %v3590_v11, %v3588_v56 }
 0x57e   :  { %v3645_v38 = vpack.c.bf16 %v3591_v3, %v3589_v10  ;;  %v3463_v39 = vpop.f32.mrb[212].mxu0 }
 0x57f   :  { %v3464_v17 = vadd.f32 %v3463_v39, %v6139_v44  ;;  %v3465_v57 = vpop.f32.mrb[213].mxu0 }
 0x580   :  { %v3466_v58 = vadd.f32 %v3465_v57, %v6142_v13  ;;  %v3467_v0 = vpop.f32.mrb[214].mxu0  ;;  %3867 = vmatprep.mubr.bf16.mxu1 %v3645_v38 }
 0x581   :  { %v3468_v25 = vadd.f32 %v3467_v0, %v6139_v44  ;;  %v3469_v15 = vpop.f32.mrb[215].mxu0  ;;  %3868 = vmatmul.mubr.bf16.gmra.mrb[144].mxu1 %v3644_v2  ;;  %v3592_v9 = vmax.f32 %v3464_v17, 0.0 }
 0x582   :  { %v3470_v62 = vadd.f32 %v3469_v15, %v6142_v13  ;;  %v3593_v53 = vmax.f32 %v3466_v58, 0.0 }
 0x583   :  { %v3594_v59 = vmax.f32 %v3468_v25, 0.0 }
 0x584   :  { %v3595_v45 = vmax.f32 %v3470_v62, 0.0 }
 0x585   :  { %v3646_v6 = vpack.c.bf16 %v3594_v59, %v3592_v9 }
 0x586   :  { %v3647_v12 = vpack.c.bf16 %v3595_v45, %v3593_v53  ;;  %v3473_v46 = vpop.f32.mrb[216].mxu0 }
 0x587   :  { %v3474_v14 = vadd.f32 %v3473_v46, %v6139_v44  ;;  %v3475_v21 = vpop.f32.mrb[217].mxu0 }
 0x588   :  { %v3476_v34 = vadd.f32 %v3475_v21, %v6142_v13  ;;  %v3477_v22 = vpop.f32.mrb[218].mxu0  ;;  %3875 = vmatprep.mubr.bf16.mxu1 %v3647_v12 }
 0x589   :  { %v3478_v26 = vadd.f32 %v3477_v22, %v6139_v44  ;;  %v3479_v23 = vpop.f32.mrb[219].mxu0  ;;  %3876 = vmatmul.mubr.bf16.gmra.mrb[148].mxu1 %v3646_v6  ;;  %v3596_v18 = vmax.f32 %v3474_v14, 0.0 }
 0x58a   :  { %v3480_v16 = vadd.f32 %v3479_v23, %v6142_v13  ;;  %v3597_v30 = vmax.f32 %v3476_v34, 0.0 }
 0x58b   :  { %v3598_v8 = vmax.f32 %v3478_v26, 0.0 }
 0x58c   :  { %v3599_v1 = vmax.f32 %v3480_v16, 0.0 }
 0x58d   :  { %v3648_v31 = vpack.c.bf16 %v3598_v8, %v3596_v18 }
 0x58e   :  { %v3649_v48 = vpack.c.bf16 %v3599_v1, %v3597_v30  ;;  %v3483_v54 = vpop.f32.mrb[220].mxu0 }
 0x58f   :  { %v3484_v35 = vadd.f32 %v3483_v54, %v6139_v44  ;;  %v3485_v43 = vpop.f32.mrb[221].mxu0 }
 0x590   :  { %v3486_v19 = vadd.f32 %v3485_v43, %v6142_v13  ;;  %v3487_v32 = vpop.f32.mrb[222].mxu0  ;;  %3883 = vmatprep.mubr.bf16.mxu1 %v3649_v48 }
 0x591   :  { %v3488_v63 = vadd.f32 %v3487_v32, %v6139_v44  ;;  %v3489_v5 = vpop.f32.mrb[223].mxu0  ;;  %3884 = vmatmul.mubr.bf16.gmra.mrb[152].mxu1 %v3648_v31  ;;  %v3600_v61 = vmax.f32 %v3484_v35, 0.0 }
 0x592   :  { %v3490_v52 = vadd.f32 %v3489_v5, %v6142_v13  ;;  %v3601_v28 = vmax.f32 %v3486_v19, 0.0 }
 0x593   :  { %v3602_v50 = vmax.f32 %v3488_v63, 0.0 }
 0x594   :  { %v3603_v49 = vmax.f32 %v3490_v52, 0.0 }
 0x595   :  { %v3650_v27 = vpack.c.bf16 %v3602_v50, %v3600_v61  ;;  %v5193_v50 = vld [vmem:[%s6447_s13 + $0x20] sm:$0xff]  }
 0x596   :  { %v3651_v4 = vpack.c.bf16 %v3603_v49, %v3601_v28  ;;  %v3493_v60 = vpop.f32.mrb[224].mxu0  ;;  %4683 = vmatprep.subr.bf16.mxu0 %v5193_v50 }
 0x597   :  { %v3494_v24 = vadd.f32 %v3493_v60, %v6139_v44  ;;  %v3495_v7 = vpop.f32.mrb[225].mxu0  ;;  %4684 = vmatpush3.bf16.msra.mxu0 %v5193_v50 }
 0x598   :  { %v3496_v33 = vadd.f32 %v3495_v7, %v6142_v13  ;;  %v3497_v29 = vpop.f32.mrb[226].mxu0  ;;  %3891 = vmatprep.mubr.bf16.mxu1 %v3651_v4 }
 0x599   :  { %v3498_v37 = vadd.f32 %v3497_v29, %v6139_v44  ;;  %v3499_v42 = vpop.f32.mrb[227].mxu0  ;;  %3892 = vmatmul.mubr.bf16.gmra.mrb[156].mxu1 %v3650_v27  ;;  %v3604_v47 = vmax.f32 %v3494_v24, 0.0 }
 0x59a   :  { %v3500_v20 = vadd.f32 %v3499_v42, %v6142_v13  ;;  %v3605_v40 = vmax.f32 %v3496_v33, 0.0  ;;  %v5194_v33 = vld [vmem:[%s6447_s13 + $0x28] sm:$0xff]  }
 0x59b   :  { %v3606_v36 = vmax.f32 %v3498_v37, 0.0  ;;  %4685 = vmatprep.subr.bf16.mxu0 %v5194_v33 }
 0x59c   :  { %v3607_v51 = vmax.f32 %v3500_v20, 0.0  ;;  %4686 = vmatpush3.bf16.msra.mxu0 %v5194_v33 }
 0x59d   :  { %v3652_v55 = vpack.c.bf16 %v3606_v36, %v3604_v47 }
 0x59e   :  { %v3653_v41 = vpack.c.bf16 %v3607_v51, %v3605_v40  ;;  %v3503_v56 = vpop.f32.mrb[228].mxu0  ;;  %v5195_v51 = vld [vmem:[%s6447_s13 + $0x30] sm:$0xff]  }
 0x59f   :  { %v3504_v11 = vadd.f32 %v3503_v56, %v6139_v44  ;;  %v3505_v10 = vpop.f32.mrb[229].mxu0  ;;  %4687 = vmatprep.subr.bf16.mxu0 %v5195_v51 }
 0x5a0   :  { %v3506_v3 = vadd.f32 %v3505_v10, %v6142_v13  ;;  %v3507_v2 = vpop.f32.mrb[230].mxu0  ;;  %3899 = vmatprep.mubr.bf16.mxu1 %v3653_v41  ;;  %4688 = vmatpush3.bf16.msra.mxu0 %v5195_v51 }
 0x5a1   :  { %v3508_v38 = vadd.f32 %v3507_v2, %v6139_v44  ;;  %v3509_v39 = vpop.f32.mrb[231].mxu0  ;;  %3900 = vmatmul.mubr.bf16.gmra.mrb[160].mxu1 %v3652_v55  ;;  %v3608_v57 = vmax.f32 %v3504_v11, 0.0 }
 0x5a2   :  { %v3510_v17 = vadd.f32 %v3509_v39, %v6142_v13  ;;  %v3609_v0 = vmax.f32 %v3506_v3, 0.0 }
 0x5a3   :  { %v3610_v58 = vmax.f32 %v3508_v38, 0.0  ;;  %v5196_v38 = vld [vmem:[%s6447_s13 + $0x38] sm:$0xff]  }
 0x5a4   :  { %v3611_v25 = vmax.f32 %v3510_v17, 0.0  ;;  %4689 = vmatprep.subr.bf16.mxu0 %v5196_v38 }
 0x5a5   :  { %v3654_v15 = vpack.c.bf16 %v3610_v58, %v3608_v57  ;;  %4690 = vmatpush3.bf16.msra.mxu0 %v5196_v38 }
 0x5a6   :  { %v3655_v62 = vpack.c.bf16 %v3611_v25, %v3609_v0  ;;  %v3513_v9 = vpop.f32.mrb[232].mxu0 }
 0x5a7   :  { %v3514_v59 = vadd.f32 %v3513_v9, %v6139_v44  ;;  %v3515_v53 = vpop.f32.mrb[233].mxu0 }
 0x5a8   :  { %v3516_v45 = vadd.f32 %v3515_v53, %v6142_v13  ;;  %v3517_v6 = vpop.f32.mrb[234].mxu0  ;;  %3907 = vmatprep.mubr.bf16.mxu1 %v3655_v62 }
 0x5a9   :  { %v3518_v12 = vadd.f32 %v3517_v6, %v6139_v44  ;;  %v3519_v46 = vpop.f32.mrb[235].mxu0  ;;  %3908 = vmatmul.mubr.bf16.gmra.mrb[164].mxu1 %v3654_v15  ;;  %v3612_v21 = vmax.f32 %v3514_v59, 0.0 }
 0x5aa   :  { %v3520_v14 = vadd.f32 %v3519_v46, %v6142_v13  ;;  %v3613_v22 = vmax.f32 %v3516_v45, 0.0 }
 0x5ab   :  { %v3614_v34 = vmax.f32 %v3518_v12, 0.0 }
 0x5ac   :  { %v3615_v26 = vmax.f32 %v3520_v14, 0.0 }
 0x5ad   :  { %v3656_v23 = vpack.c.bf16 %v3614_v34, %v3612_v21 }
 0x5ae   :  { %v3657_v16 = vpack.c.bf16 %v3615_v26, %v3613_v22  ;;  %v3523_v18 = vpop.f32.mrb[236].mxu0 }
 0x5af   :  { %v3524_v8 = vadd.f32 %v3523_v18, %v6139_v44  ;;  %v3525_v30 = vpop.f32.mrb[237].mxu0 }
 0x5b0   :  { %v3526_v1 = vadd.f32 %v3525_v30, %v6142_v13  ;;  %v3527_v31 = vpop.f32.mrb[238].mxu0  ;;  %3915 = vmatprep.mubr.bf16.mxu1 %v3657_v16 }
 0x5b1   :  { %v3528_v48 = vadd.f32 %v3527_v31, %v6139_v44  ;;  %v3529_v54 = vpop.f32.mrb[239].mxu0  ;;  %3916 = vmatmul.mubr.bf16.gmra.mrb[168].mxu1 %v3656_v23  ;;  %v3616_v43 = vmax.f32 %v3524_v8, 0.0 }
 0x5b2   :  { %v3530_v35 = vadd.f32 %v3529_v54, %v6142_v13  ;;  %v3617_v32 = vmax.f32 %v3526_v1, 0.0 }
 0x5b3   :  { %v3618_v19 = vmax.f32 %v3528_v48, 0.0 }
 0x5b4   :  { %v3619_v63 = vmax.f32 %v3530_v35, 0.0 }
 0x5b5   :  { %v3658_v5 = vpack.c.bf16 %v3618_v19, %v3616_v43 }
 0x5b6   :  { %v3659_v52 = vpack.c.bf16 %v3619_v63, %v3617_v32  ;;  %v3533_v61 = vpop.f32.mrb[240].mxu0 }
 0x5b7   :  { %v3534_v28 = vadd.f32 %v3533_v61, %v6139_v44  ;;  %v3535_v49 = vpop.f32.mrb[241].mxu0 }
 0x5b8   :  { %v3536_v27 = vadd.f32 %v3535_v49, %v6142_v13  ;;  %v3537_v4 = vpop.f32.mrb[242].mxu0  ;;  %3923 = vmatprep.mubr.bf16.mxu1 %v3659_v52  ;;  %v6235_v52 = vld [vmem:[%s6446_s12] ss:$0 sm:$0xff] }
 0x5b9   :  { %v3538_v60 = vadd.f32 %v3537_v4, %v6139_v44  ;;  %v3539_v24 = vpop.f32.mrb[243].mxu0  ;;  %3924 = vmatmul.mubr.bf16.gmra.mrb[172].mxu1 %v3658_v5  ;;  %v3620_v29 = vmax.f32 %v3534_v28, 0.0 }
 0x5ba   :  { %v3540_v7 = vadd.f32 %v3539_v24, %v6142_v13  ;;  %v3621_v42 = vmax.f32 %v3536_v27, 0.0 }
 0x5bb   :  { %v3622_v37 = vmax.f32 %v3538_v60, 0.0 }
 0x5bc   :  { %v3623_v20 = vmax.f32 %v3540_v7, 0.0 }
 0x5bd   :  { %v3660_v47 = vpack.c.bf16 %v3622_v37, %v3620_v29 }
 0x5be   :  { %v3661_v36 = vpack.c.bf16 %v3623_v20, %v3621_v42  ;;  %v3543_v40 = vpop.f32.mrb[244].mxu0 }
 0x5bf   :  { %v3544_v55 = vadd.f32 %v3543_v40, %v6139_v44  ;;  %v3545_v41 = vpop.f32.mrb[245].mxu0 }
 0x5c0   :  { %v3546_v56 = vadd.f32 %v3545_v41, %v6142_v13  ;;  %v3547_v11 = vpop.f32.mrb[246].mxu0  ;;  %3931 = vmatprep.mubr.bf16.mxu1 %v3661_v36 }
 0x5c1   :  { %v3548_v10 = vadd.f32 %v3547_v11, %v6139_v44  ;;  %v3549_v3 = vpop.f32.mrb[247].mxu0  ;;  %3932 = vmatmul.mubr.bf16.gmra.mrb[176].mxu1 %v3660_v47  ;;  %v3624_v39 = vmax.f32 %v3544_v55, 0.0 }
 0x5c2   :  { %v3550_v2 = vadd.f32 %v3549_v3, %v6142_v13  ;;  %v3625_v57 = vmax.f32 %v3546_v56, 0.0 }
 0x5c3   :  { %v3626_v17 = vmax.f32 %v3548_v10, 0.0 }
 0x5c4   :  { %v3627_v58 = vmax.f32 %v3550_v2, 0.0 }
 0x5c5   :  { %v3662_v0 = vpack.c.bf16 %v3626_v17, %v3624_v39 }
 0x5c6   :  { %v3663_v25 = vpack.c.bf16 %v3627_v58, %v3625_v57  ;;  %v3553_v15 = vpop.f32.mrb[248].mxu0 }
 0x5c7   :  { %v3554_v62 = vadd.f32 %v3553_v15, %v6139_v44  ;;  %v3555_v9 = vpop.f32.mrb[249].mxu0 }
 0x5c8   :  { %v3556_v59 = vadd.f32 %v3555_v9, %v6142_v13  ;;  %v3557_v53 = vpop.f32.mrb[250].mxu0  ;;  %3939 = vmatprep.mubr.bf16.mxu1 %v3663_v25 }
 0x5c9   :  { %v3558_v45 = vadd.f32 %v3557_v53, %v6139_v44  ;;  %v3559_v6 = vpop.f32.mrb[251].mxu0  ;;  %3940 = vmatmul.mubr.bf16.gmra.mrb[180].mxu1 %v3662_v0  ;;  %v3628_v46 = vmax.f32 %v3554_v62, 0.0 }
 0x5ca   :  { %v3560_v12 = vadd.f32 %v3559_v6, %v6142_v13  ;;  %v3629_v21 = vmax.f32 %v3556_v59, 0.0 }
 0x5cb   :  { %v3630_v14 = vmax.f32 %v3558_v45, 0.0 }
 0x5cc   :  { %v3631_v34 = vmax.f32 %v3560_v12, 0.0 }
 0x5cd   :  { %v3664_v22 = vpack.c.bf16 %v3630_v14, %v3628_v46 }
 0x5ce   :  { %v3665_v26 = vpack.c.bf16 %v3631_v34, %v3629_v21  ;;  %v3563_v23 = vpop.f32.mrb[252].mxu0 }
 0x5cf   :  { %v3564_v16 = vadd.f32 %v3563_v23, %v6139_v44  ;;  %v3565_v18 = vpop.f32.mrb[253].mxu0 }
 0x5d0   :  { %v3566_v8 = vadd.f32 %v3565_v18, %v6142_v13  ;;  %v3567_v30 = vpop.f32.mrb[254].mxu0  ;;  %3947 = vmatprep.mubr.bf16.mxu1 %v3665_v26 }
 0x5d1   :  { %v3568_v1 = vadd.f32 %v3567_v30, %v6139_v44  ;;  %v3569_v31 = vpop.f32.mrb[255].mxu0  ;;  %3948 = vmatmul.mubr.bf16.gmra.mrb[184].mxu1 %v3664_v22  ;;  %v3632_v54 = vmax.f32 %v3564_v16, 0.0 }
 0x5d2   :  { %v3570_v48 = vadd.f32 %v3569_v31, %v6142_v13  ;;  %v3633_v43 = vmax.f32 %v3566_v8, 0.0 }
 0x5d3   :  { %v3634_v35 = vmax.f32 %v3568_v1, 0.0 }
 0x5d4   :  { %v3635_v19 = vmax.f32 %v3570_v48, 0.0 }
 0x5d5   :  { %v3666_v32 = vpack.c.bf16 %v3634_v35, %v3632_v54 }
 0x5d6   :  { %v3667_v63 = vpack.c.bf16 %v3635_v19, %v3633_v43 }
 0x5d8   :  { %3955 = vmatprep.mubr.bf16.mxu1 %v3667_v63 }
 0x5d9   :  { %3956 = vmatmul.mubr.bf16.gmra.mrb[188].mxu1 %v3666_v32 }
 0x634   :  { %v4555_v5 = vpop.f32.mrb[128].mxu1 }
 0x635   :  { %v4556_v61 = vpop.f32.mrb[129].mxu1 }
 0x636   :  { %v4557_v44 = vadd.f32 %v4556_v61, %v4555_v5  ;;  %v4558_v50 = vpop.f32.mrb[130].mxu1 }
 0x637   :  { %v4559_v28 = vpop.f32.mrb[131].mxu1 }
 0x638   :  { %v3838_v13 = vadd.f32 %v4557_v44, %v6235_v52  ;;  %v4560_v49 = vadd.f32 %v4559_v28, %v4558_v50 }
 0x63a   :  { %v3841_v27 = vadd.f32 %v4560_v49, %v6235_v52  ;;  %v3964_v4 = vmax.f32 %v3838_v13, 0.0 }
 0x63c   :  { %v3965_v60 = vmax.f32 %v3841_v27, 0.0  ;;  %v4561_v24 = vpop.f32.mrb[132].mxu1 }
 0x63d   :  { %v4562_v7 = vpop.f32.mrb[133].mxu1 }
 0x63e   :  { %v4563_v33 = vadd.f32 %v4562_v7, %v4561_v24  ;;  %v4564_v29 = vpop.f32.mrb[134].mxu1  ;;  %v3996_v37 = vpack.c.bf16 %v3965_v60, %v3964_v4 }
 0x63f   :  { %v4565_v42 = vpop.f32.mrb[135].mxu1 }
 0x640   :  { %v3846_v20 = vadd.f32 %v4563_v33, %v6235_v52  ;;  %v4566_v47 = vadd.f32 %v4565_v42, %v4564_v29  ;;  %4691 = vmatprep.mubr.bf16.mxu0 %v3996_v37 }
 0x642   :  { %v3849_v36 = vadd.f32 %v4566_v47, %v6235_v52  ;;  %v3966_v40 = vmax.f32 %v3846_v20, 0.0 }
 0x644   :  { %v3967_v51 = vmax.f32 %v3849_v36, 0.0  ;;  %v4567_v55 = vpop.f32.mrb[136].mxu1 }
 0x645   :  { %v4568_v41 = vpop.f32.mrb[137].mxu1 }
 0x646   :  { %v3997_v56 = vpack.c.bf16 %v3967_v51, %v3966_v40  ;;  %v4569_v11 = vadd.f32 %v4568_v41, %v4567_v55  ;;  %v4570_v10 = vpop.f32.mrb[138].mxu1 }
 0x647   :  { %v4571_v3 = vpop.f32.mrb[139].mxu1 }
 0x648   :  { %v3854_v2 = vadd.f32 %v4569_v11, %v6235_v52  ;;  %v4572_v38 = vadd.f32 %v4571_v3, %v4570_v10  ;;  %4692 = vmatmul.mubr.bf16.vlgmr.msra.gmra.mrb[0].mxu0 %v3997_v56 }
 0x64a   :  { %v3857_v39 = vadd.f32 %v4572_v38, %v6235_v52  ;;  %v3968_v17 = vmax.f32 %v3854_v2, 0.0 }
 0x64c   :  { %v3969_v57 = vmax.f32 %v3857_v39, 0.0  ;;  %v4573_v58 = vpop.f32.mrb[140].mxu1 }
 0x64d   :  { %v4574_v0 = vpop.f32.mrb[141].mxu1 }
 0x64e   :  { %v4575_v25 = vadd.f32 %v4574_v0, %v4573_v58  ;;  %v4576_v15 = vpop.f32.mrb[142].mxu1  ;;  %v3998_v62 = vpack.c.bf16 %v3969_v57, %v3968_v17 }
 0x64f   :  { %v4577_v9 = vpop.f32.mrb[143].mxu1 }
 0x650   :  { %v3862_v59 = vadd.f32 %v4575_v25, %v6235_v52  ;;  %v4578_v53 = vadd.f32 %v4577_v9, %v4576_v15  ;;  %4695 = vmatprep.mubr.bf16.mxu0 %v3998_v62 }
 0x652   :  { %v3865_v45 = vadd.f32 %v4578_v53, %v6235_v52  ;;  %v3970_v6 = vmax.f32 %v3862_v59, 0.0 }
 0x654   :  { %v3971_v12 = vmax.f32 %v3865_v45, 0.0  ;;  %v4579_v46 = vpop.f32.mrb[144].mxu1 }
 0x655   :  { %v4580_v14 = vpop.f32.mrb[145].mxu1 }
 0x656   :  { %v3999_v21 = vpack.c.bf16 %v3971_v12, %v3970_v6  ;;  %v4581_v34 = vadd.f32 %v4580_v14, %v4579_v46  ;;  %v4582_v22 = vpop.f32.mrb[146].mxu1 }
 0x657   :  { %v4583_v26 = vpop.f32.mrb[147].mxu1 }
 0x658   :  { %v3870_v23 = vadd.f32 %v4581_v34, %v6235_v52  ;;  %v4584_v16 = vadd.f32 %v4583_v26, %v4582_v22  ;;  %4696 = vmatmul.mubr.bf16.gmra.mrb[4].mxu0 %v3999_v21 }
 0x65a   :  { %v3873_v18 = vadd.f32 %v4584_v16, %v6235_v52  ;;  %v3972_v8 = vmax.f32 %v3870_v23, 0.0 }
 0x65c   :  { %v3973_v30 = vmax.f32 %v3873_v18, 0.0  ;;  %v4585_v1 = vpop.f32.mrb[148].mxu1 }
 0x65d   :  { %v4586_v31 = vpop.f32.mrb[149].mxu1 }
 0x65e   :  { %v4587_v48 = vadd.f32 %v4586_v31, %v4585_v1  ;;  %v4588_v54 = vpop.f32.mrb[150].mxu1  ;;  %v4000_v35 = vpack.c.bf16 %v3973_v30, %v3972_v8 }
 0x65f   :  { %v4589_v43 = vpop.f32.mrb[151].mxu1 }
 0x660   :  { %v3878_v19 = vadd.f32 %v4587_v48, %v6235_v52  ;;  %v4590_v32 = vadd.f32 %v4589_v43, %v4588_v54  ;;  %4699 = vmatprep.mubr.bf16.mxu0 %v4000_v35 }
 0x662   :  { %v3881_v63 = vadd.f32 %v4590_v32, %v6235_v52  ;;  %v3974_v5 = vmax.f32 %v3878_v19, 0.0 }
 0x664   :  { %v3975_v61 = vmax.f32 %v3881_v63, 0.0  ;;  %v4591_v44 = vpop.f32.mrb[152].mxu1 }
 0x665   :  { %v4592_v50 = vpop.f32.mrb[153].mxu1 }
 0x666   :  { %v4001_v28 = vpack.c.bf16 %v3975_v61, %v3974_v5  ;;  %v4593_v13 = vadd.f32 %v4592_v50, %v4591_v44  ;;  %v4594_v49 = vpop.f32.mrb[154].mxu1 }
 0x667   :  { %v4595_v27 = vpop.f32.mrb[155].mxu1 }
 0x668   :  { %v3886_v4 = vadd.f32 %v4593_v13, %v6235_v52  ;;  %v4596_v60 = vadd.f32 %v4595_v27, %v4594_v49  ;;  %4700 = vmatmul.mubr.bf16.gmra.mrb[8].mxu0 %v4001_v28 }
 0x66a   :  { %v3889_v24 = vadd.f32 %v4596_v60, %v6235_v52  ;;  %v3976_v7 = vmax.f32 %v3886_v4, 0.0 }
 0x66c   :  { %v3977_v33 = vmax.f32 %v3889_v24, 0.0  ;;  %v4597_v29 = vpop.f32.mrb[156].mxu1 }
 0x66d   :  { %v4598_v37 = vpop.f32.mrb[157].mxu1 }
 0x66e   :  { %v4599_v42 = vadd.f32 %v4598_v37, %v4597_v29  ;;  %v4600_v20 = vpop.f32.mrb[158].mxu1  ;;  %v4002_v47 = vpack.c.bf16 %v3977_v33, %v3976_v7 }
 0x66f   :  { %v4601_v36 = vpop.f32.mrb[159].mxu1 }
 0x670   :  { %v3894_v40 = vadd.f32 %v4599_v42, %v6235_v52  ;;  %v4602_v51 = vadd.f32 %v4601_v36, %v4600_v20  ;;  %4703 = vmatprep.mubr.bf16.mxu0 %v4002_v47 }
 0x672   :  { %v3897_v55 = vadd.f32 %v4602_v51, %v6235_v52  ;;  %v3978_v41 = vmax.f32 %v3894_v40, 0.0 }
 0x674   :  { %v3979_v56 = vmax.f32 %v3897_v55, 0.0  ;;  %v4603_v11 = vpop.f32.mrb[160].mxu1 }
 0x675   :  { %v4604_v10 = vpop.f32.mrb[161].mxu1 }
 0x676   :  { %v4003_v3 = vpack.c.bf16 %v3979_v56, %v3978_v41  ;;  %v4605_v2 = vadd.f32 %v4604_v10, %v4603_v11  ;;  %v4606_v38 = vpop.f32.mrb[162].mxu1 }
 0x677   :  { %v4607_v39 = vpop.f32.mrb[163].mxu1 }
 0x678   :  { %v3902_v17 = vadd.f32 %v4605_v2, %v6235_v52  ;;  %v4608_v57 = vadd.f32 %v4607_v39, %v4606_v38  ;;  %4704 = vmatmul.mubr.bf16.gmra.mrb[12].mxu0 %v4003_v3 }
 0x67a   :  { %v3905_v58 = vadd.f32 %v4608_v57, %v6235_v52  ;;  %v3980_v0 = vmax.f32 %v3902_v17, 0.0 }
 0x67c   :  { %v3981_v25 = vmax.f32 %v3905_v58, 0.0  ;;  %v4609_v15 = vpop.f32.mrb[164].mxu1 }
 0x67d   :  { %v4610_v62 = vpop.f32.mrb[165].mxu1 }
 0x67e   :  { %v4611_v9 = vadd.f32 %v4610_v62, %v4609_v15  ;;  %v4612_v59 = vpop.f32.mrb[166].mxu1  ;;  %v4004_v53 = vpack.c.bf16 %v3981_v25, %v3980_v0 }
 0x67f   :  { %v4613_v45 = vpop.f32.mrb[167].mxu1 }
 0x680   :  { %v3910_v6 = vadd.f32 %v4611_v9, %v6235_v52  ;;  %v4614_v12 = vadd.f32 %v4613_v45, %v4612_v59  ;;  %4707 = vmatprep.mubr.bf16.mxu0 %v4004_v53 }
 0x682   :  { %v3913_v46 = vadd.f32 %v4614_v12, %v6235_v52  ;;  %v3982_v14 = vmax.f32 %v3910_v6, 0.0 }
 0x684   :  { %v3983_v21 = vmax.f32 %v3913_v46, 0.0  ;;  %v4615_v34 = vpop.f32.mrb[168].mxu1 }
 0x685   :  { %v4616_v22 = vpop.f32.mrb[169].mxu1 }
 0x686   :  { %v4005_v26 = vpack.c.bf16 %v3983_v21, %v3982_v14  ;;  %v4617_v23 = vadd.f32 %v4616_v22, %v4615_v34  ;;  %v4618_v16 = vpop.f32.mrb[170].mxu1 }
 0x687   :  { %v4619_v18 = vpop.f32.mrb[171].mxu1 }
 0x688   :  { %v3918_v8 = vadd.f32 %v4617_v23, %v6235_v52  ;;  %v4620_v30 = vadd.f32 %v4619_v18, %v4618_v16  ;;  %4708 = vmatmul.mubr.bf16.gmra.mrb[16].mxu0 %v4005_v26  ;;  %v6272_v16 = vld [vmem:[%s6448_s14] ss:$0 sm:$0xff] }
 0x68a   :  { %v3921_v1 = vadd.f32 %v4620_v30, %v6235_v52  ;;  %v3984_v31 = vmax.f32 %v3918_v8, 0.0 }
 0x68c   :  { %v3985_v48 = vmax.f32 %v3921_v1, 0.0  ;;  %v4621_v54 = vpop.f32.mrb[172].mxu1 }
 0x68d   :  { %v4622_v35 = vpop.f32.mrb[173].mxu1 }
 0x68e   :  { %v4623_v43 = vadd.f32 %v4622_v35, %v4621_v54  ;;  %v4624_v19 = vpop.f32.mrb[174].mxu1  ;;  %v4006_v32 = vpack.c.bf16 %v3985_v48, %v3984_v31 }
 0x68f   :  { %v4625_v63 = vpop.f32.mrb[175].mxu1 }
 0x690   :  { %v3926_v5 = vadd.f32 %v4623_v43, %v6235_v52  ;;  %v4626_v61 = vadd.f32 %v4625_v63, %v4624_v19  ;;  %4711 = vmatprep.mubr.bf16.mxu0 %v4006_v32 }
 0x692   :  { %v3929_v44 = vadd.f32 %v4626_v61, %v6235_v52  ;;  %v3986_v50 = vmax.f32 %v3926_v5, 0.0 }
 0x694   :  { %v3987_v28 = vmax.f32 %v3929_v44, 0.0  ;;  %v4627_v13 = vpop.f32.mrb[176].mxu1 }
 0x695   :  { %v4628_v49 = vpop.f32.mrb[177].mxu1 }
 0x696   :  { %v4007_v27 = vpack.c.bf16 %v3987_v28, %v3986_v50  ;;  %v4629_v4 = vadd.f32 %v4628_v49, %v4627_v13  ;;  %v4630_v60 = vpop.f32.mrb[178].mxu1 }
 0x697   :  { %v4631_v24 = vpop.f32.mrb[179].mxu1 }
 0x698   :  { %v3934_v7 = vadd.f32 %v4629_v4, %v6235_v52  ;;  %v4632_v33 = vadd.f32 %v4631_v24, %v4630_v60  ;;  %4712 = vmatmul.mubr.bf16.gmra.mrb[20].mxu0 %v4007_v27 }
 0x69a   :  { %v3937_v29 = vadd.f32 %v4632_v33, %v6235_v52  ;;  %v3988_v37 = vmax.f32 %v3934_v7, 0.0 }
 0x69c   :  { %v3989_v42 = vmax.f32 %v3937_v29, 0.0  ;;  %v4633_v20 = vpop.f32.mrb[180].mxu1 }
 0x69d   :  { %v4634_v47 = vpop.f32.mrb[181].mxu1 }
 0x69e   :  { %v4635_v36 = vadd.f32 %v4634_v47, %v4633_v20  ;;  %v4636_v40 = vpop.f32.mrb[182].mxu1  ;;  %v4008_v51 = vpack.c.bf16 %v3989_v42, %v3988_v37 }
 0x69f   :  { %v4637_v55 = vpop.f32.mrb[183].mxu1 }
 0x6a0   :  { %v3942_v41 = vadd.f32 %v4635_v36, %v6235_v52  ;;  %v4638_v56 = vadd.f32 %v4637_v55, %v4636_v40  ;;  %4715 = vmatprep.mubr.bf16.mxu0 %v4008_v51 }
 0x6a2   :  { %v3945_v11 = vadd.f32 %v4638_v56, %v6235_v52  ;;  %v3990_v10 = vmax.f32 %v3942_v41, 0.0 }
 0x6a4   :  { %v3991_v3 = vmax.f32 %v3945_v11, 0.0  ;;  %v4639_v2 = vpop.f32.mrb[184].mxu1 }
 0x6a5   :  { %v4640_v38 = vpop.f32.mrb[185].mxu1 }
 0x6a6   :  { %v4009_v39 = vpack.c.bf16 %v3991_v3, %v3990_v10  ;;  %v4641_v17 = vadd.f32 %v4640_v38, %v4639_v2  ;;  %v4642_v57 = vpop.f32.mrb[186].mxu1 }
 0x6a7   :  { %v4643_v58 = vpop.f32.mrb[187].mxu1 }
 0x6a8   :  { %v3950_v0 = vadd.f32 %v4641_v17, %v6235_v52  ;;  %v4644_v25 = vadd.f32 %v4643_v58, %v4642_v57  ;;  %4716 = vmatmul.mubr.bf16.gmra.mrb[24].mxu0 %v4009_v39 }
 0x6aa   :  { %v3953_v15 = vadd.f32 %v4644_v25, %v6235_v52  ;;  %v3992_v62 = vmax.f32 %v3950_v0, 0.0 }
 0x6ac   :  { %v3993_v9 = vmax.f32 %v3953_v15, 0.0  ;;  %v4645_v59 = vpop.f32.mrb[188].mxu1 }
 0x6ad   :  { %v4646_v53 = vpop.f32.mrb[189].mxu1 }
 0x6ae   :  { %v4647_v45 = vadd.f32 %v4646_v53, %v4645_v59  ;;  %v4648_v6 = vpop.f32.mrb[190].mxu1  ;;  %v4010_v12 = vpack.c.bf16 %v3993_v9, %v3992_v62 }
 0x6af   :  { %v4649_v46 = vpop.f32.mrb[191].mxu1 }
 0x6b0   :  { %v3958_v14 = vadd.f32 %v4647_v45, %v6235_v52  ;;  %v4650_v21 = vadd.f32 %v4649_v46, %v4648_v6  ;;  %4719 = vmatprep.mubr.bf16.mxu0 %v4010_v12 }
 0x6b2   :  { %v3961_v34 = vadd.f32 %v4650_v21, %v6235_v52  ;;  %v3994_v22 = vmax.f32 %v3958_v14, 0.0 }
 0x6b4   :  { %v3995_v26 = vmax.f32 %v3961_v34, 0.0 }
 0x6b6   :  { %v4011_v23 = vpack.c.bf16 %v3995_v26, %v3994_v22 }
 0x6b8   :  { %4720 = vmatmul.mubr.bf16.gmra.mrb[28].mxu0 %v4011_v23 }
 0x71b   :  { %v4693_v18 = vpop.f32.mrb[0].mxu0 }
 0x71c   :  { %v4126_v8 = vadd.f32 %v4693_v18, %v6272_v16  ;;  %v4117_v30 = vpop.f32.mrb[1].mxu0 }
 0x71d   :  { %v4118_v1 = vadd.f32 %v6272_v16, %v4117_v30  ;;  %v4694_v31 = vpop.f32.mrb[2].mxu0 }
 0x71e   :  { %4247 = vst.msk [vmem:[%s6464_s2 + $0x10] sm:$0xff] %vm4244_vm1, %v4126_v8  ;;  %v4129_v52 = vadd.f32 %v4694_v31, %v6272_v16  ;;  %v4120_v48 = vpop.f32.mrb[3].mxu0 }
 0x71f   :  { %4245 = vst.msk [vmem:[%s6464_s2] sm:$0xff] %vm4244_vm1, %v4118_v1  ;;  %v4121_v54 = vadd.f32 %v6272_v16, %v4120_v48 }
 0x720   :  { %4248 = vst.msk [vmem:[%s6464_s2 + $0x18] sm:$0xff] %vm4244_vm1, %v4129_v52 }
 0x721   :  { %4246 = vst.msk [vmem:[%s6464_s2 + $0x8] sm:$0xff] %vm4244_vm1, %v4121_v54 }
 0x72b   :  { %v4697_v35 = vpop.f32.mrb[4].mxu0 }
 0x72c   :  { %v4142_v43 = vadd.f32 %v4697_v35, %v6272_v16  ;;  %v4133_v19 = vpop.f32.mrb[5].mxu0 }
 0x72d   :  { %v4134_v32 = vadd.f32 %v6272_v16, %v4133_v19  ;;  %v4698_v63 = vpop.f32.mrb[6].mxu0 }
 0x72e   :  { %4251 = vst.msk [vmem:[%s6464_s2 + $0x30] sm:$0xff] %vm4244_vm1, %v4142_v43  ;;  %v4145_v5 = vadd.f32 %v4698_v63, %v6272_v16  ;;  %v4136_v61 = vpop.f32.mrb[7].mxu0 }
 0x72f   :  { %4249 = vst.msk [vmem:[%s6464_s2 + $0x20] sm:$0xff] %vm4244_vm1, %v4134_v32  ;;  %v4137_v44 = vadd.f32 %v6272_v16, %v4136_v61 }
 0x730   :  { %4252 = vst.msk [vmem:[%s6464_s2 + $0x38] sm:$0xff] %vm4244_vm1, %v4145_v5 }
 0x731   :  { %4250 = vst.msk [vmem:[%s6464_s2 + $0x28] sm:$0xff] %vm4244_vm1, %v4137_v44 }
 0x73b   :  { %v4701_v50 = vpop.f32.mrb[8].mxu0 }
 0x73c   :  { %v4158_v28 = vadd.f32 %v4701_v50, %v6272_v16  ;;  %v4149_v13 = vpop.f32.mrb[9].mxu0 }
 0x73d   :  { %v4150_v49 = vadd.f32 %v6272_v16, %v4149_v13  ;;  %v4702_v27 = vpop.f32.mrb[10].mxu0 }
 0x73e   :  { %4255 = vst.msk [vmem:[%s6464_s2 + $0x50] sm:$0xff] %vm4244_vm1, %v4158_v28  ;;  %v4161_v4 = vadd.f32 %v4702_v27, %v6272_v16  ;;  %v4152_v60 = vpop.f32.mrb[11].mxu0 }
 0x73f   :  { %4253 = vst.msk [vmem:[%s6464_s2 + $0x40] sm:$0xff] %vm4244_vm1, %v4150_v49  ;;  %v4153_v24 = vadd.f32 %v6272_v16, %v4152_v60 }
 0x740   :  { %4256 = vst.msk [vmem:[%s6464_s2 + $0x58] sm:$0xff] %vm4244_vm1, %v4161_v4 }
 0x741   :  { %4254 = vst.msk [vmem:[%s6464_s2 + $0x48] sm:$0xff] %vm4244_vm1, %v4153_v24 }
 0x74b   :  { %v4705_v7 = vpop.f32.mrb[12].mxu0 }
 0x74c   :  { %v4174_v33 = vadd.f32 %v4705_v7, %v6272_v16  ;;  %v4165_v29 = vpop.f32.mrb[13].mxu0 }
 0x74d   :  { %v4166_v37 = vadd.f32 %v6272_v16, %v4165_v29  ;;  %v4706_v42 = vpop.f32.mrb[14].mxu0 }
 0x74e   :  { %4259 = vst.msk [vmem:[%s6464_s2 + $0x70] sm:$0xff] %vm4244_vm1, %v4174_v33  ;;  %v4177_v20 = vadd.f32 %v4706_v42, %v6272_v16  ;;  %v4168_v47 = vpop.f32.mrb[15].mxu0 }
 0x74f   :  { %4257 = vst.msk [vmem:[%s6464_s2 + $0x60] sm:$0xff] %vm4244_vm1, %v4166_v37  ;;  %v4169_v36 = vadd.f32 %v6272_v16, %v4168_v47 }
 0x750   :  { %4260 = vst.msk [vmem:[%s6464_s2 + $0x78] sm:$0xff] %vm4244_vm1, %v4177_v20 }
 0x751   :  { %4258 = vst.msk [vmem:[%s6464_s2 + $0x68] sm:$0xff] %vm4244_vm1, %v4169_v36 }
 0x75b   :  { %v4709_v40 = vpop.f32.mrb[16].mxu0 }
 0x75c   :  { %v4190_v51 = vadd.f32 %v4709_v40, %v6272_v16  ;;  %v4181_v55 = vpop.f32.mrb[17].mxu0 }
 0x75d   :  { %v4182_v41 = vadd.f32 %v6272_v16, %v4181_v55  ;;  %v4710_v56 = vpop.f32.mrb[18].mxu0 }
 0x75e   :  { %4263 = vst.msk [vmem:[%s6464_s2 + $0x90] sm:$0xff] %vm4244_vm1, %v4190_v51  ;;  %v4193_v11 = vadd.f32 %v4710_v56, %v6272_v16  ;;  %v4184_v10 = vpop.f32.mrb[19].mxu0 }
 0x75f   :  { %4261 = vst.msk [vmem:[%s6464_s2 + $0x80] sm:$0xff] %vm4244_vm1, %v4182_v41  ;;  %v4185_v3 = vadd.f32 %v6272_v16, %v4184_v10 }
 0x760   :  { %4264 = vst.msk [vmem:[%s6464_s2 + $0x98] sm:$0xff] %vm4244_vm1, %v4193_v11 }
 0x761   :  { %4262 = vst.msk [vmem:[%s6464_s2 + $0x88] sm:$0xff] %vm4244_vm1, %v4185_v3 }
 0x76b   :  { %v4713_v2 = vpop.f32.mrb[20].mxu0 }
 0x76c   :  { %v4206_v38 = vadd.f32 %v4713_v2, %v6272_v16  ;;  %v4197_v39 = vpop.f32.mrb[21].mxu0 }
 0x76d   :  { %v4198_v17 = vadd.f32 %v6272_v16, %v4197_v39  ;;  %v4714_v57 = vpop.f32.mrb[22].mxu0 }
 0x76e   :  { %4267 = vst.msk [vmem:[%s6464_s2 + $0xb0] sm:$0xff] %vm4244_vm1, %v4206_v38  ;;  %v4209_v58 = vadd.f32 %v4714_v57, %v6272_v16  ;;  %v4200_v0 = vpop.f32.mrb[23].mxu0 }
 0x76f   :  { %4265 = vst.msk [vmem:[%s6464_s2 + $0xa0] sm:$0xff] %vm4244_vm1, %v4198_v17  ;;  %v4201_v25 = vadd.f32 %v6272_v16, %v4200_v0 }
 0x770   :  { %4268 = vst.msk [vmem:[%s6464_s2 + $0xb8] sm:$0xff] %vm4244_vm1, %v4209_v58 }
 0x771   :  { %4266 = vst.msk [vmem:[%s6464_s2 + $0xa8] sm:$0xff] %vm4244_vm1, %v4201_v25 }
 0x77b   :  { %v4717_v15 = vpop.f32.mrb[24].mxu0 }
 0x77c   :  { %v4222_v62 = vadd.f32 %v4717_v15, %v6272_v16  ;;  %v4213_v9 = vpop.f32.mrb[25].mxu0 }
 0x77d   :  { %v4214_v59 = vadd.f32 %v6272_v16, %v4213_v9  ;;  %v4718_v53 = vpop.f32.mrb[26].mxu0 }
 0x77e   :  { %4271 = vst.msk [vmem:[%s6464_s2 + $0xd0] sm:$0xff] %vm4244_vm1, %v4222_v62  ;;  %v4225_v45 = vadd.f32 %v4718_v53, %v6272_v16  ;;  %v4216_v6 = vpop.f32.mrb[27].mxu0 }
 0x77f   :  { %4269 = vst.msk [vmem:[%s6464_s2 + $0xc0] sm:$0xff] %vm4244_vm1, %v4214_v59  ;;  %v4217_v12 = vadd.f32 %v6272_v16, %v4216_v6 }
 0x780   :  { %4272 = vst.msk [vmem:[%s6464_s2 + $0xd8] sm:$0xff] %vm4244_vm1, %v4225_v45 }
 0x781   :  { %4270 = vst.msk [vmem:[%s6464_s2 + $0xc8] sm:$0xff] %vm4244_vm1, %v4217_v12 }
 0x78b   :  { %v4721_v46 = vpop.f32.mrb[28].mxu0 }
 0x78c   :  { %v4238_v14 = vadd.f32 %v4721_v46, %v6272_v16  ;;  %v4229_v21 = vpop.f32.mrb[29].mxu0 }
 0x78d   :  { %v4230_v34 = vadd.f32 %v6272_v16, %v4229_v21  ;;  %v4722_v22 = vpop.f32.mrb[30].mxu0 }
 0x78e   :  { %4275 = vst.msk [vmem:[%s6464_s2 + $0xf0] sm:$0xff] %vm4244_vm1, %v4238_v14  ;;  %v4241_v26 = vadd.f32 %v4722_v22, %v6272_v16  ;;  %v4232_v23 = vpop.f32.mrb[31].mxu0 }
 0x78f   :  { %4273 = vst.msk [vmem:[%s6464_s2 + $0xe0] sm:$0xff] %vm4244_vm1, %v4230_v34  ;;  %v4233_v18 = vadd.f32 %v6272_v16, %v4232_v23 }
 0x790   :  { %4276 = vst.msk [vmem:[%s6464_s2 + $0xf8] sm:$0xff] %vm4244_vm1, %v4241_v26 }
 0x791   :  { %4274 = vst.msk [vmem:[%s6464_s2 + $0xe8] sm:$0xff] %vm4244_vm1, %v4233_v18 }
 0x792   :  { %4281 = vsyncpa [#allocation3], 1 }
 0x793   :  { %4282 = vsyncpa [#allocation5], 1 }
 0x794   :  { %4283 = vsyncpa [#allocation8], 1 }
 0x795   :  { %4284 = vsyncpa [#allocation11], 1 }

</bundles_post_ra>
